<compile_context>
chip_gen: v7x
topology: tpu7x:2x2x1
jax: 0.10.0
libtpu: 0.0.40
codegen_flags: <defaults>
</compile_context>

<pallas_src>
import math
import functools

import jax
import jax.numpy as jnp
from jax.experimental import pallas as pl
from jax.experimental.pallas import tpu as pltpu


# ----------------------------------------------------------------------------
# In-kernel helpers (operate on VMEM-resident values)
# ----------------------------------------------------------------------------

def _layernorm(x, g, b, eps=1e-5):
    # PyTorch nn.LayerNorm: population variance, eps=1e-5.
    mean = jnp.mean(x, axis=-1, keepdims=True)
    var = jnp.mean(jnp.square(x - mean), axis=-1, keepdims=True)
    return (x - mean) * jax.lax.rsqrt(var + eps) * g + b


def _softmax_rows(s):
    s = s - jnp.max(s, axis=-1, keepdims=True)
    p = jnp.exp(s)
    return p / jnp.sum(p, axis=-1, keepdims=True)   # exact reciprocal


def _attend(q_all, k_all, v_all, wo, bo_row, *, B, Sq, Sk, nhead):
    # q_all: (B*Sq, d), k_all/v_all: (B*Sk, d) with heads grouped along lanes.
    # Batch/heads are handled with statically unrolled loops (B, nhead small);
    # per-head contexts are concatenated so a single o-projection matmul runs.
    d = wo.shape[0]
    hd = d // nhead
    scale = 1.0 / math.sqrt(hd)
    ctx_rows = []
    for b in range(B):
        head_outs = []
        for h in range(nhead):
            q = q_all[b * Sq:(b + 1) * Sq, h * hd:(h + 1) * hd] * scale
            k = k_all[b * Sk:(b + 1) * Sk, h * hd:(h + 1) * hd]
            v = v_all[b * Sk:(b + 1) * Sk, h * hd:(h + 1) * hd]
            s = jax.lax.dot_general(q, k, (((1,), (1,)), ((), ())),
                                    preferred_element_type=jnp.float32)   # (Sq, Sk)
            p = _softmax_rows(s)
            head_outs.append(jnp.dot(p, v, preferred_element_type=jnp.float32))
        ctx_rows.append(jnp.concatenate(head_outs, axis=-1) if nhead > 1
                        else head_outs[0])
    ctx = jnp.concatenate(ctx_rows, axis=0) if B > 1 else ctx_rows[0]     # (B*Sq, d)
    return jnp.dot(ctx, wo, preferred_element_type=jnp.float32) + bo_row


def _grn(x, w, b_rows):
    # GatedResidualNetwork with Identity skip (input_dim == output_dim).
    # w: (d, 4d) slab [glu1.fc1 | glu1.fc2 | glu2.fc1 | glu2.fc2]
    # b_rows: (4, d) biases in the same order.  Each GLU is one fused (d, 2d) dot.
    d = x.shape[-1]
    h12 = jnp.dot(x, w[:, 0:2 * d], preferred_element_type=jnp.float32)
    h = (h12[:, 0:d] + b_rows[0:1, :]) * jax.nn.sigmoid(h12[:, d:2 * d] + b_rows[1:2, :])
    g12 = jnp.dot(h, w[:, 2 * d:4 * d], preferred_element_type=jnp.float32)
    g = (g12[:, 0:d] + b_rows[2:3, :]) * jax.nn.sigmoid(g12[:, d:2 * d] + b_rows[3:4, :])
    return jnp.maximum(g + x, 0.0)


# ----------------------------------------------------------------------------
# Fused stack kernels (one per stack, grid over layers)
# ----------------------------------------------------------------------------

def _encoder_stack_kernel(x_in_ref, pe_ref, emb_w_ref, emb_p_ref,
                          wslab_ref, bslab_ref, o_ref, act_ref,
                          *, nhead, B, S):
    # Weight slab columns (width d each unless noted):
    #   [0,3d): Wq|Wk|Wv  [3d,4d): Wo  [4d,8d): GRN  [8d,9d): FF.w1  [9d,10d): FF.w2
    # Bias rows: 0-2 bq/bk/bv, 3 bo, 4-5 norm1 g/b, 6-9 GRN biases,
    #            10-11 norm2 g/b, 12 bf1, 13 bf2
    d = act_ref.shape[-1]
    l = pl.program_id(0)

    @pl.when(l == 0)
    def _():
        # fused embedding: linear(input_dim -> d) + LayerNorm
        y = (jnp.dot(x_in_ref[...], emb_w_ref[...],
                     preferred_element_type=jnp.float32) + emb_p_ref[0:1, :])
        act_ref[...] = _layernorm(y, emb_p_ref[1:2, :], emb_p_ref[2:3, :])

    W = wslab_ref[0]          # (d, 10d)  -- this layer's weights, streamed
    Bv = bslab_ref[0]         # (14, d)

    x = act_ref[...] + pe_ref[...]        # PE added at the top of every layer (as in ref)

    # self-attention (single qkv matmul, grouped Q|K|V columns)
    qkv = jnp.dot(x, W[:, 0:3 * d], preferred_element_type=jnp.float32)
    attn = _attend(qkv[:, 0:d] + Bv[0:1, :],
                   qkv[:, d:2 * d] + Bv[1:2, :],
                   qkv[:, 2 * d:3 * d] + Bv[2:3, :],
                   W[:, 3 * d:4 * d], Bv[3:4, :],
                   B=B, Sq=S, Sk=S, nhead=nhead)
    x = _layernorm(x + attn, Bv[4:5, :], Bv[5:6, :])

    grn = _grn(x, W[:, 4 * d:8 * d], Bv[6:10, :])
    x = _layernorm(x + grn, Bv[10:11, :], Bv[11:12, :])

    # positionwise feed-forward (no residual in the reference encoder)
    h = jnp.maximum(jnp.dot(x, W[:, 8 * d:9 * d],
                            preferred_element_type=jnp.float32) + Bv[12:13, :], 0.0)
    # TODO(synk): Dropout(p=0.1) treated as identity (inference/eval semantics).
    y = jnp.dot(h, W[:, 9 * d:10 * d],
                preferred_element_type=jnp.float32) + Bv[13:14, :]

    act_ref[...] = y

    @pl.when(l == pl.num_programs(0) - 1)
    def _():
        o_ref[...] = y


def _decoder_stack_kernel(x_in_ref, mem_ref, pe_ref, emb_w_ref, emb_p_ref,
                          wslab_ref, bslab_ref, head_w_ref, head_p_ref,
                          o_ref, act_ref,
                          *, nhead, B, S, Sm):
    # Weight slab columns: [0,3d) self Wq|Wk|Wv, [3d,4d) self Wo, [4d,8d) GRN1,
    #   [8d,9d) cross Wq, [9d,11d) cross Wk|Wv, [11d,12d) cross Wo,
    #   [12d,16d) GRN2, [16d,17d) FF.w1, [17d,18d) FF.w2
    # Bias rows: 0-2 self bq/bk/bv, 3 self bo, 4-5 norm1, 6-9 GRN1, 10-11 norm2,
    #   12 cross bq, 13-14 cross bk/bv, 15 cross bo, 16-17 norm3, 18-21 GRN2,
    #   22-23 norm4, 24 bf1, 25 bf2
    d = act_ref.shape[-1]
    l = pl.program_id(0)
    last = pl.num_programs(0) - 1

    @pl.when(l == 0)
    def _():
        y = (jnp.dot(x_in_ref[...], emb_w_ref[...],
                     preferred_element_type=jnp.float32) + emb_p_ref[0:1, :])
        act_ref[...] = _layernorm(y, emb_p_ref[1:2, :], emb_p_ref[2:3, :])

    W = wslab_ref[0]          # (d, 18d)
    Bv = bslab_ref[0]         # (26, d)
    mem = mem_ref[...]        # (B*Sm, d), VMEM-resident across all layers

    x = act_ref[...] + pe_ref[...]

    # self-attention
    qkv = jnp.dot(x, W[:, 0:3 * d], preferred_element_type=jnp.float32)
    attn = _attend(qkv[:, 0:d] + Bv[0:1, :],
                   qkv[:, d:2 * d] + Bv[1:2, :],
                   qkv[:, 2 * d:3 * d] + Bv[2:3, :],
                   W[:, 3 * d:4 * d], Bv[3:4, :],
                   B=B, Sq=S, Sk=S, nhead=nhead)
    x = _layernorm(x + attn, Bv[4:5, :], Bv[5:6, :])

    grn1 = _grn(x, W[:, 4 * d:8 * d], Bv[6:10, :])
    x = _layernorm(x + grn1, Bv[10:11, :], Bv[11:12, :])

    # cross-attention against encoder memory
    q_all = jnp.dot(x, W[:, 8 * d:9 * d],
                    preferred_element_type=jnp.float32) + Bv[12:13, :]
    kv = jnp.dot(mem, W[:, 9 * d:11 * d], preferred_element_type=jnp.float32)
    cross = _attend(q_all,
                    kv[:, 0:d] + Bv[13:14, :],
                    kv[:, d:2 * d] + Bv[14:15, :],
                    W[:, 11 * d:12 * d], Bv[15:16, :],
                    B=B, Sq=S, Sk=Sm, nhead=nhead)
    x = _layernorm(x + cross, Bv[16:17, :], Bv[17:18, :])

    grn2 = _grn(x, W[:, 12 * d:16 * d], Bv[18:22, :])
    x = _layernorm(x + grn2, Bv[22:23, :], Bv[23:24, :])

    h = jnp.maximum(jnp.dot(x, W[:, 16 * d:17 * d],
                            preferred_element_type=jnp.float32) + Bv[24:25, :], 0.0)
    # TODO(synk): Dropout(p=0.1) treated as identity (inference/eval semantics).
    y = jnp.dot(h, W[:, 17 * d:18 * d],
                preferred_element_type=jnp.float32) + Bv[25:26, :]

    act_ref[...] = y

    @pl.when(l == last)
    def _():
        # fused head: linear1 + ReLU + linear2 (linear2 zero-padded to d columns
        # so the final store stays lane-dense; wrapper slices to output_dim).
        hh = jnp.maximum(jnp.dot(y, head_w_ref[:, 0:d],
                                 preferred_element_type=jnp.float32)
                         + head_p_ref[0:1, :], 0.0)
        o_ref[...] = jnp.dot(hh, head_w_ref[:, d:2 * d],
                             preferred_element_type=jnp.float32) + head_p_ref[1:2, :]


# ----------------------------------------------------------------------------
# pallas_call wrappers
# ----------------------------------------------------------------------------

def encoder_stack_pallas(x2, pe2, emb_w, emb_p, wslab, bslab, *, nhead, B, S):
    BS, Din = x2.shape
    L, d, Wc = wslab.shape
    Rb = bslab.shape[1]
    kernel = functools.partial(_encoder_stack_kernel, nhead=nhead, B=B, S=S)
    return pl.pallas_call(
        kernel,
        grid=(L,),
        in_specs=[
            pl.BlockSpec((BS, Din), lambda l: (0, 0)),          # encoder input (resident)
            pl.BlockSpec((BS, d), lambda l: (0, 0)),            # tiled PE (resident)
            pl.BlockSpec((Din, d), lambda l: (0, 0)),           # embed weight
            pl.BlockSpec((3, d), lambda l: (0, 0)),             # embed bias + LN g/b
            pl.BlockSpec((1, d, Wc), lambda l: (l, 0, 0)),      # per-layer weight slab
            pl.BlockSpec((1, Rb, d), lambda l: (l, 0, 0)),      # per-layer bias/LN slab
        ],
        out_specs=pl.BlockSpec((BS, d), lambda l: (0, 0)),
        out_shape=jax.ShapeDtypeStruct((BS, d), jnp.float32),
        scratch_shapes=[pltpu.VMEM((BS, d), jnp.float32)],       # activation carried over layers
        compiler_params=pltpu.CompilerParams(dimension_semantics=("arbitrary",)),
    )(x2, pe2, emb_w, emb_p, wslab, bslab)


def decoder_stack_pallas(x2, mem, pe2, emb_w, emb_p, wslab, bslab, head_w, head_p,
                         *, nhead, B, S, Sm):
    BS, Din = x2.shape
    L, d, Wc = wslab.shape
    Rb = bslab.shape[1]
    BSm = mem.shape[0]
    kernel = functools.partial(_decoder_stack_kernel, nhead=nhead, B=B, S=S, Sm=Sm)
    return pl.pallas_call(
        kernel,
        grid=(L,),
        in_specs=[
            pl.BlockSpec((BS, Din), lambda l: (0, 0)),          # decoder input (resident)
            pl.BlockSpec((BSm, d), lambda l: (0, 0)),           # encoder memory (resident)
            pl.BlockSpec((BS, d), lambda l: (0, 0)),            # tiled PE (resident)
            pl.BlockSpec((Din, d), lambda l: (0, 0)),           # embed weight
            pl.BlockSpec((3, d), lambda l: (0, 0)),             # embed bias + LN g/b
            pl.BlockSpec((1, d, Wc), lambda l: (l, 0, 0)),      # per-layer weight slab
            pl.BlockSpec((1, Rb, d), lambda l: (l, 0, 0)),      # per-layer bias/LN slab
            pl.BlockSpec((d, 2 * d), lambda l: (0, 0)),         # head weights [w1 | w2_pad]
            pl.BlockSpec((2, d), lambda l: (0, 0)),             # head biases  [b1 ; b2_pad]
        ],
        out_specs=pl.BlockSpec((BS, d), lambda l: (0, 0)),
        out_shape=jax.ShapeDtypeStruct((BS, d), jnp.float32),
        scratch_shapes=[pltpu.VMEM((BS, d), jnp.float32)],
        compiler_params=pltpu.CompilerParams(dimension_semantics=("arbitrary",)),
    )(x2, mem, pe2, emb_w, emb_p, wslab, bslab, head_w, head_p)


# ----------------------------------------------------------------------------
# Parameter init (deterministic, mirrors the PyTorch module __init__)
# ----------------------------------------------------------------------------

class KeyGen:
    def __init__(self, seed):
        self._base = jax.random.PRNGKey(seed)
        self._i = 0

    def __call__(self):
        self._i += 1
        return jax.random.fold_in(self._base, self._i)


def init_linear(kg, din, dout):
    bound = 1.0 / math.sqrt(din)
    w = jax.random.uniform(kg(), (din, dout), jnp.float32, -bound, bound)
    b = jax.random.uniform(kg(), (dout,), jnp.float32, -bound, bound)
    return {"w": w, "b": b}


def init_xavier_linear(kg, din, dout):
    limit = math.sqrt(6.0 / (din + dout))
    w = jax.random.uniform(kg(), (din, dout), jnp.float32, -limit, limit)
    b = jnp.zeros((dout,), jnp.float32)
    return {"w": w, "b": b}


def init_layernorm(d):
    return {"g": jnp.ones((d,), jnp.float32), "b": jnp.zeros((d,), jnp.float32)}


def init_glu(kg, din, dout):
    return {"fc1": init_linear(kg, din, dout), "fc2": init_linear(kg, din, dout)}


def init_grn(kg, din, dout, hidden):
    # skip connection is Identity here since din == dout in this model.
    return {"glu1": init_glu(kg, din, hidden), "glu2": init_glu(kg, hidden, dout)}


def init_self_attn(kg, d):
    return {"qkv": init_xavier_linear(kg, d, 3 * d),
            "o": init_xavier_linear(kg, d, d)}


def init_cross_attn(kg, d):
    return {"q": init_xavier_linear(kg, d, d),
            "kv": init_xavier_linear(kg, d, 2 * d),
            "o": init_xavier_linear(kg, d, d)}


def init_ff(kg, d, hidden):
    return {"linear1": init_linear(kg, d, hidden),
            "linear2": init_linear(kg, hidden, d)}


def init_encoder(kg, d, hidden):
    return {"self_attn": init_self_attn(kg, d), "norm1": init_layernorm(d),
            "gating": init_grn(kg, d, d, hidden), "norm2": init_layernorm(d),
            "ff": init_ff(kg, d, hidden)}


def init_decoder(kg, d, hidden):
    return {"self_attn": init_self_attn(kg, d), "norm1": init_layernorm(d),
            "gating1": init_grn(kg, d, d, hidden), "norm2": init_layernorm(d),
            "cross_attn": init_cross_attn(kg, d), "norm3": init_layernorm(d),
            "gating2": init_grn(kg, d, d, hidden), "norm4": init_layernorm(d),
            "ff": init_ff(kg, d, hidden)}


def build_pe(d_model, max_len):
    position = jnp.arange(max_len, dtype=jnp.float32)[:, None]
    div_term = jnp.exp(jnp.arange(0, d_model, 2, dtype=jnp.float32)
                       * (-math.log(10000.0) / d_model))
    pe = jnp.zeros((max_len, d_model), jnp.float32)
    pe = pe.at[:, 0::2].set(jnp.sin(position * div_term))
    pe = pe.at[:, 1::2].set(jnp.cos(position * div_term))
    return pe


def init_transformer(seed, input_dim, output_dim, time_window, nhead, hidden_dim, layers):
    kg = KeyGen(seed)
    d = hidden_dim          # in the reference module d_model == hidden_dim
    return {
        "pe": build_pe(d, time_window),
        "linear_enc": init_linear(kg, input_dim, d),
        "ln_enc": init_layernorm(d),
        "linear_dec": init_linear(kg, input_dim, d),
        "ln_dec": init_layernorm(d),
        "encoders": [init_encoder(kg, d, hidden_dim) for _ in range(layers)],
        "decoders": [init_decoder(kg, d, hidden_dim) for _ in range(layers)],
        "linear1": init_linear(kg, d, d),
        "linear2": init_linear(kg, d, output_dim),
    }


# ----------------------------------------------------------------------------
# Pack weights into per-stack slabs (stacked along a leading layer axis)
# ----------------------------------------------------------------------------

def _regroup_heads(w, b, nhead, nsplit):
    # Reference forward splits proj output per row as [h0: q|k|v, h1: q|k|v, ...]
    # (reshape(B, S, H, nsplit*hd)); regroup columns to contiguous [Q | K | V]
    # blocks of width d so head slices are clean aligned sub-blocks.
    d = w.shape[0]
    hd = d // nhead
    wg = w.reshape(d, nhead, nsplit, hd).transpose(0, 2, 1, 3).reshape(d, nsplit * d)
    bg = b.reshape(nhead, nsplit, hd).transpose(1, 0, 2).reshape(nsplit, d)
    return wg, bg


def pack_params(params, nhead, output_dim):
    d = params["linear_enc"]["w"].shape[1]

    def enc_layer(p):
        wqkv, bqkv = _regroup_heads(p["self_attn"]["qkv"]["w"],
                                    p["self_attn"]["qkv"]["b"], nhead, 3)
        w = jnp.concatenate([
            wqkv, p["self_attn"]["o"]["w"],
            p["gating"]["glu1"]["fc1"]["w"], p["gating"]["glu1"]["fc2"]["w"],
            p["gating"]["glu2"]["fc1"]["w"], p["gating"]["glu2"]["fc2"]["w"],
            p["ff"]["linear1"]["w"], p["ff"]["linear2"]["w"]], axis=1)
        b = jnp.stack([
            bqkv[0], bqkv[1], bqkv[2],
            p["self_attn"]["o"]["b"],
            p["norm1"]["g"], p["norm1"]["b"],
            p["gating"]["glu1"]["fc1"]["b"], p["gating"]["glu1"]["fc2"]["b"],
            p["gating"]["glu2"]["fc1"]["b"], p["gating"]["glu2"]["fc2"]["b"],
            p["norm2"]["g"], p["norm2"]["b"],
            p["ff"]["linear1"]["b"], p["ff"]["linear2"]["b"]], axis=0)
        return w, b

    def dec_layer(p):
        wqkv, bqkv = _regroup_heads(p["self_attn"]["qkv"]["w"],
                                    p["self_attn"]["qkv"]["b"], nhead, 3)
        wkv, bkv = _regroup_heads(p["cross_attn"]["kv"]["w"],
                                  p["cross_attn"]["kv"]["b"], nhead, 2)
        w = jnp.concatenate([
            wqkv, p["self_attn"]["o"]["w"],
            p["gating1"]["glu1"]["fc1"]["w"], p["gating1"]["glu1"]["fc2"]["w"],
            p["gating1"]["glu2"]["fc1"]["w"], p["gating1"]["glu2"]["fc2"]["w"],
            p["cross_attn"]["q"]["w"], wkv, p["cross_attn"]["o"]["w"],
            p["gating2"]["glu1"]["fc1"]["w"], p["gating2"]["glu1"]["fc2"]["w"],
            p["gating2"]["glu2"]["fc1"]["w"], p["gating2"]["glu2"]["fc2"]["w"],
            p["ff"]["linear1"]["w"], p["ff"]["linear2"]["w"]], axis=1)
        b = jnp.stack([
            bqkv[0], bqkv[1], bqkv[2],
            p["self_attn"]["o"]["b"],
            p["norm1"]["g"], p["norm1"]["b"],
            p["gating1"]["glu1"]["fc1"]["b"], p["gating1"]["glu1"]["fc2"]["b"],
            p["gating1"]["glu2"]["fc1"]["b"], p["gating1"]["glu2"]["fc2"]["b"],
            p["norm2"]["g"], p["norm2"]["b"],
            p["cross_attn"]["q"]["b"],
            bkv[0], bkv[1],
            p["cross_attn"]["o"]["b"],
            p["norm3"]["g"], p["norm3"]["b"],
            p["gating2"]["glu1"]["fc1"]["b"], p["gating2"]["glu1"]["fc2"]["b"],
            p["gating2"]["glu2"]["fc1"]["b"], p["gating2"]["glu2"]["fc2"]["b"],
            p["norm4"]["g"], p["norm4"]["b"],
            p["ff"]["linear1"]["b"], p["ff"]["linear2"]["b"]], axis=0)
        return w, b

    enc = [enc_layer(p) for p in params["encoders"]]
    dec = [dec_layer(p) for p in params["decoders"]]

    # head linear2 zero-padded to d output columns (lane-dense final store).
    w2 = params["linear2"]["w"]
    b2 = params["linear2"]["b"]
    w2p = jnp.zeros((d, d), jnp.float32).at[:, :output_dim].set(w2)
    b2p = jnp.zeros((d,), jnp.float32).at[:output_dim].set(b2)

    return {
        "pe": params["pe"],
        "enc_emb_w": params["linear_enc"]["w"],
        "enc_emb_p": jnp.stack([params["linear_enc"]["b"],
                                params["ln_enc"]["g"], params["ln_enc"]["b"]], axis=0),
        "dec_emb_w": params["linear_dec"]["w"],
        "dec_emb_p": jnp.stack([params["linear_dec"]["b"],
                                params["ln_dec"]["g"], params["ln_dec"]["b"]], axis=0),
        "enc_wslab": jnp.stack([w for w, _ in enc], axis=0),   # (L, d, 10d)
        "enc_bslab": jnp.stack([b for _, b in enc], axis=0),   # (L, 14, d)
        "dec_wslab": jnp.stack([w for w, _ in dec], axis=0),   # (L, d, 18d)
        "dec_bslab": jnp.stack([b for _, b in dec], axis=0),   # (L, 26, d)
        "head_w": jnp.concatenate([params["linear1"]["w"], w2p], axis=1),  # (d, 2d)
        "head_p": jnp.stack([params["linear1"]["b"], b2p], axis=0),        # (2, d)
    }


# ----------------------------------------------------------------------------
# Forward pass: 2 fused pallas_calls total (encoder stack, decoder stack+head)
# ----------------------------------------------------------------------------

def transformer_forward(packed, encoder_input, decoder_input, *, nhead, output_dim):
    B, S, Din = encoder_input.shape
    Bd, Sd, _ = decoder_input.shape
    d = packed["enc_emb_w"].shape[1]

    pe_enc = jnp.tile(packed["pe"][:S], (B, 1))        # (B*S, d), batch-folded row order
    memory = encoder_stack_pallas(
        encoder_input.reshape(B * S, Din), pe_enc,
        packed["enc_emb_w"], packed["enc_emb_p"],
        packed["enc_wslab"], packed["enc_bslab"],
        nhead=nhead, B=B, S=S)

    pe_dec = jnp.tile(packed["pe"][:Sd], (Bd, 1))
    out = decoder_stack_pallas(
        decoder_input.reshape(Bd * Sd, Din), memory, pe_dec,
        packed["dec_emb_w"], packed["dec_emb_p"],
        packed["dec_wslab"], packed["dec_bslab"],
        packed["head_w"], packed["head_p"],
        nhead=nhead, B=Bd, S=Sd, Sm=S)

    return out[:, :output_dim].reshape(Bd, Sd, output_dim)


# ----------------------------------------------------------------------------
# Example run
# ----------------------------------------------------------------------------

if __name__ == "__main__":
    INPUT_DIM = 4
    OUTPUT_DIM = 2
    TIME_WINDOW = 8      # seq length / PE max_len
    NHEAD = 2
    HIDDEN_DIM = 32      # d_model == GRN/FF hidden (as in the reference module)
    LAYERS = 2
    BATCH = 2

    params = init_transformer(seed=0,
                              input_dim=INPUT_DIM, output_dim=OUTPUT_DIM,
                              time_window=TIME_WINDOW, nhead=NHEAD,
                              hidden_dim=HIDDEN_DIM, layers=LAYERS)
    packed = pack_params(params, NHEAD, OUTPUT_DIM)

    key = jax.random.PRNGKey(0)
    k_enc, k_dec = jax.random.split(key)
    encoder_input = jax.random.normal(k_enc, (BATCH, TIME_WINDOW, INPUT_DIM),
                                      dtype=jnp.float32)
    decoder_input = jax.random.normal(k_dec, (BATCH, TIME_WINDOW, INPUT_DIM),
                                      dtype=jnp.float32)

    fwd = jax.jit(functools.partial(transformer_forward,
                                    nhead=NHEAD, output_dim=OUTPUT_DIM))
    out = fwd(packed, encoder_input, decoder_input)
    out = jax.block_until_ready(out)
    assert out.shape == (BATCH, TIME_WINDOW, OUTPUT_DIM)
    assert bool(jnp.all(jnp.isfinite(out)))
    print("KERNEL_OK")
</pallas_src>

<mosaic_0001>
module attributes {stable_mosaic.version = 11 : i64} {
  func.func @_encoder_stack_kernel(%arg0: i32, %arg1: memref<16x4xf32, #tpu.memory_space<vmem>>, %arg2: memref<16x32xf32, #tpu.memory_space<vmem>>, %arg3: memref<4x32xf32, #tpu.memory_space<vmem>>, %arg4: memref<3x32xf32, #tpu.memory_space<vmem>>, %arg5: memref<1x32x320xf32, #tpu.memory_space<vmem>>, %arg6: memref<1x14x32xf32, #tpu.memory_space<vmem>>, %arg7: memref<16x32xf32, #tpu.memory_space<vmem>>, %arg8: memref<16x32xf32, #tpu.memory_space<vmem>>) attributes {dimension_semantics = [#tpu.dimension_semantics<arbitrary>], iteration_bounds = array<i64: 2>, scalar_prefetch = 0 : i64, scratch_operands = 1 : i64, tpu.core_type = #tpu.core_type<tc>, window_params = [{pipeline_mode = #tpu.pipeline_mode<synchronous>, transform_indices = @transform_0, window_bounds = array<i64: 16, 4>}, {pipeline_mode = #tpu.pipeline_mode<synchronous>, transform_indices = @transform_1, window_bounds = array<i64: 16, 32>}, {pipeline_mode = #tpu.pipeline_mode<synchronous>, transform_indices = @transform_2, window_bounds = array<i64: 4, 32>}, {pipeline_mode = #tpu.pipeline_mode<synchronous>, transform_indices = @transform_3, window_bounds = array<i64: 3, 32>}, {transform_indices = @transform_4, window_bounds = array<i64: 1, 32, 320>}, {transform_indices = @transform_5, window_bounds = array<i64: 1, 14, 32>}, {pipeline_mode = #tpu.pipeline_mode<synchronous>, transform_indices = @transform_6, window_bounds = array<i64: 16, 32>}]} {
    %c0_i32 = arith.constant 0 : i32
    %0 = arith.cmpi eq, %arg0, %c0_i32 : i32
    %1 = arith.extui %0 : i1 to i32
    %c0_i32_0 = arith.constant 0 : i32
    %2 = arith.cmpi ne, %1, %c0_i32_0 : i32
    scf.if %2 {
      %c0_52 = arith.constant 0 : index
      %c0_53 = arith.constant 0 : index
      %199 = vector.load %arg1[%c0_52, %c0_53] : memref<16x4xf32, #tpu.memory_space<vmem>>, vector<16x4xf32>
      %c0_54 = arith.constant 0 : index
      %c0_55 = arith.constant 0 : index
      %200 = vector.load %arg3[%c0_54, %c0_55] : memref<4x32xf32, #tpu.memory_space<vmem>>, vector<4x32xf32>
      %cst_56 = arith.constant dense<0.000000e+00> : vector<16x32xf32>
      %201 = tpu.matmul %199, %200, %cst_56 {dimension_numbers = #tpu.dot_dimension_numbers<[1], [0], [0], [1], [0, 0, 1, 1], [], []>} : vector<16x4xf32>, vector<4x32xf32>, vector<16x32xf32> -> vector<16x32xf32>
      %c0_57 = arith.constant 0 : index
      %c0_58 = arith.constant 0 : index
      %202 = vector.load %arg4[%c0_57, %c0_58] : memref<3x32xf32, #tpu.memory_space<vmem>>, vector<1x32xf32>
      %203 = vector.broadcast %202 : vector<1x32xf32> to vector<16x32xf32>
      %204 = arith.addf %201, %203 : vector<16x32xf32>
      %c1 = arith.constant 1 : index
      %c0_59 = arith.constant 0 : index
      %205 = vector.load %arg4[%c1, %c0_59] : memref<3x32xf32, #tpu.memory_space<vmem>>, vector<1x32xf32>
      %c2 = arith.constant 2 : index
      %c0_60 = arith.constant 0 : index
      %206 = vector.load %arg4[%c2, %c0_60] : memref<3x32xf32, #tpu.memory_space<vmem>>, vector<1x32xf32>
      %cst_61 = arith.constant dense<0.000000e+00> : vector<16xf32>
      %207 = vector.multi_reduction <add>, %204, %cst_61 [1] : vector<16x32xf32> to vector<16xf32>
      %208 = vector.shape_cast %207 : vector<16xf32> to vector<16x1xf32>
      %cst_62 = arith.constant 3.200000e+01 : f32
      %209 = vector.broadcast %cst_62 : f32 to vector<16x1xf32>
      %210 = arith.divf %208, %209 : vector<16x1xf32>
      %211 = vector.broadcast %210 : vector<16x1xf32> to vector<16x32xf32>
      %212 = arith.subf %204, %211 : vector<16x32xf32>
      %213 = arith.mulf %212, %212 : vector<16x32xf32>
      %cst_63 = arith.constant dense<0.000000e+00> : vector<16xf32>
      %214 = vector.multi_reduction <add>, %213, %cst_63 [1] : vector<16x32xf32> to vector<16xf32>
      %215 = vector.shape_cast %214 : vector<16xf32> to vector<16x1xf32>
      %cst_64 = arith.constant 3.200000e+01 : f32
      %216 = vector.broadcast %cst_64 : f32 to vector<16x1xf32>
      %217 = arith.divf %215, %216 : vector<16x1xf32>
      %218 = vector.broadcast %210 : vector<16x1xf32> to vector<16x32xf32>
      %219 = arith.subf %204, %218 : vector<16x32xf32>
      %cst_65 = arith.constant 9.99999974E-6 : f32
      %220 = vector.broadcast %cst_65 : f32 to vector<16x1xf32>
      %221 = arith.addf %217, %220 : vector<16x1xf32>
      %222 = math.rsqrt %221 : vector<16x1xf32>
      %223 = vector.broadcast %222 : vector<16x1xf32> to vector<16x32xf32>
      %224 = arith.mulf %219, %223 : vector<16x32xf32>
      %225 = vector.broadcast %205 : vector<1x32xf32> to vector<16x32xf32>
      %226 = arith.mulf %224, %225 : vector<16x32xf32>
      %227 = vector.broadcast %206 : vector<1x32xf32> to vector<16x32xf32>
      %228 = arith.addf %226, %227 : vector<16x32xf32>
      %c0_66 = arith.constant 0 : index
      %c0_67 = arith.constant 0 : index
      %229 = vector.load %arg8[%c0_66, %c0_67] : memref<16x32xf32, #tpu.memory_space<vmem>>, vector<16x32xf32>
      tpu.vector_store %arg8[%c0_66, %c0_67], %228 {strides = array<i32>} : memref<16x32xf32, #tpu.memory_space<vmem>>, vector<16x32xf32>,
    } else {
    }
    %c0 = arith.constant 0 : index
    %c0_1 = arith.constant 0 : index
    %c0_2 = arith.constant 0 : index
    %3 = vector.load %arg5[%c0, %c0_1, %c0_2] : memref<1x32x320xf32, #tpu.memory_space<vmem>>, vector<1x32x320xf32>
    %4 = vector.shape_cast %3 : vector<1x32x320xf32> to vector<32x320xf32>
    %c0_3 = arith.constant 0 : index
    %c0_4 = arith.constant 0 : index
    %c0_5 = arith.constant 0 : index
    %5 = vector.load %arg6[%c0_3, %c0_4, %c0_5] : memref<1x14x32xf32, #tpu.memory_space<vmem>>, vector<1x14x32xf32>
    %6 = vector.shape_cast %5 : vector<1x14x32xf32> to vector<14x32xf32>
    %c0_6 = arith.constant 0 : index
    %c0_7 = arith.constant 0 : index
    %7 = vector.load %arg8[%c0_6, %c0_7] : memref<16x32xf32, #tpu.memory_space<vmem>>, vector<16x32xf32>
    %c0_8 = arith.constant 0 : index
    %c0_9 = arith.constant 0 : index
    %8 = vector.load %arg2[%c0_8, %c0_9] : memref<16x32xf32, #tpu.memory_space<vmem>>, vector<16x32xf32>
    %9 = arith.addf %7, %8 : vector<16x32xf32>
    %10 = vector.extract_strided_slice %4 {offsets = [0, 0], sizes = [32, 96], strides = [1, 1]} : vector<32x320xf32> to vector<32x96xf32>
    %cst = arith.constant dense<0.000000e+00> : vector<16x96xf32>
    %11 = tpu.matmul %9, %10, %cst {dimension_numbers = #tpu.dot_dimension_numbers<[1], [0], [0], [1], [0, 0, 1, 1], [], []>} : vector<16x32xf32>, vector<32x96xf32>, vector<16x96xf32> -> vector<16x96xf32>
    %12 = vector.extract_strided_slice %11 {offsets = [0, 0], sizes = [16, 32], strides = [1, 1]} : vector<16x96xf32> to vector<16x32xf32>
    %13 = vector.extract_strided_slice %6 {offsets = [0, 0], sizes = [1, 32], strides = [1, 1]} : vector<14x32xf32> to vector<1x32xf32>
    %14 = vector.broadcast %13 : vector<1x32xf32> to vector<16x32xf32>
    %15 = arith.addf %12, %14 : vector<16x32xf32>
    %16 = vector.extract_strided_slice %11 {offsets = [0, 32], sizes = [16, 32], strides = [1, 1]} : vector<16x96xf32> to vector<16x32xf32>
    %17 = vector.extract_strided_slice %6 {offsets = [1, 0], sizes = [1, 32], strides = [1, 1]} : vector<14x32xf32> to vector<1x32xf32>
    %18 = vector.broadcast %17 : vector<1x32xf32> to vector<16x32xf32>
    %19 = arith.addf %16, %18 : vector<16x32xf32>
    %20 = vector.extract_strided_slice %11 {offsets = [0, 64], sizes = [16, 32], strides = [1, 1]} : vector<16x96xf32> to vector<16x32xf32>
    %21 = vector.extract_strided_slice %6 {offsets = [2, 0], sizes = [1, 32], strides = [1, 1]} : vector<14x32xf32> to vector<1x32xf32>
    %22 = vector.broadcast %21 : vector<1x32xf32> to vector<16x32xf32>
    %23 = arith.addf %20, %22 : vector<16x32xf32>
    %24 = vector.extract_strided_slice %4 {offsets = [0, 96], sizes = [32, 32], strides = [1, 1]} : vector<32x320xf32> to vector<32x32xf32>
    %25 = vector.extract_strided_slice %6 {offsets = [3, 0], sizes = [1, 32], strides = [1, 1]} : vector<14x32xf32> to vector<1x32xf32>
    %26 = vector.extract_strided_slice %15 {offsets = [0, 0], sizes = [8, 16], strides = [1, 1]} : vector<16x32xf32> to vector<8x16xf32>
    %cst_10 = arith.constant 2.500000e-01 : f32
    %27 = vector.broadcast %cst_10 : f32 to vector<8x16xf32>
    %28 = arith.mulf %26, %27 : vector<8x16xf32>
    %29 = vector.extract_strided_slice %19 {offsets = [0, 0], sizes = [8, 16], strides = [1, 1]} : vector<16x32xf32> to vector<8x16xf32>
    %30 = vector.extract_strided_slice %23 {offsets = [0, 0], sizes = [8, 16], strides = [1, 1]} : vector<16x32xf32> to vector<8x16xf32>
    %cst_11 = arith.constant dense<0.000000e+00> : vector<8x8xf32>
    %31 = tpu.matmul %28, %29, %cst_11 {dimension_numbers = #tpu.dot_dimension_numbers<[1], [1], [0], [0], [0, 0, 1, 0], [], []>} : vector<8x16xf32>, vector<8x16xf32>, vector<8x8xf32> -> vector<8x8xf32>
    %cst_12 = arith.constant dense<0xFF800000> : vector<8xf32>
    %32 = vector.multi_reduction <maximumf>, %31, %cst_12 [1] : vector<8x8xf32> to vector<8xf32>
    %33 = vector.shape_cast %32 : vector<8xf32> to vector<8x1xf32>
    %34 = vector.broadcast %33 : vector<8x1xf32> to vector<8x8xf32>
    %35 = arith.subf %31, %34 : vector<8x8xf32>
    %36 = math.exp %35 : vector<8x8xf32>
    %cst_13 = arith.constant dense<0.000000e+00> : vector<8xf32>
    %37 = vector.multi_reduction <add>, %36, %cst_13 [1] : vector<8x8xf32> to vector<8xf32>
    %38 = vector.shape_cast %37 : vector<8xf32> to vector<8x1xf32>
    %39 = vector.broadcast %38 : vector<8x1xf32> to vector<8x8xf32>
    %40 = arith.divf %36, %39 : vector<8x8xf32>
    %cst_14 = arith.constant dense<0.000000e+00> : vector<8x16xf32>
    %41 = tpu.matmul %40, %30, %cst_14 {dimension_numbers = #tpu.dot_dimension_numbers<[1], [0], [0], [1], [0, 0, 1, 1], [], []>} : vector<8x8xf32>, vector<8x16xf32>, vector<8x16xf32> -> vector<8x16xf32>
    %42 = vector.extract_strided_slice %15 {offsets = [0, 16], sizes = [8, 16], strides = [1, 1]} : vector<16x32xf32> to vector<8x16xf32>
    %cst_15 = arith.constant 2.500000e-01 : f32
    %43 = vector.broadcast %cst_15 : f32 to vector<8x16xf32>
    %44 = arith.mulf %42, %43 : vector<8x16xf32>
    %45 = vector.extract_strided_slice %19 {offsets = [0, 16], sizes = [8, 16], strides = [1, 1]} : vector<16x32xf32> to vector<8x16xf32>
    %46 = vector.extract_strided_slice %23 {offsets = [0, 16], sizes = [8, 16], strides = [1, 1]} : vector<16x32xf32> to vector<8x16xf32>
    %cst_16 = arith.constant dense<0.000000e+00> : vector<8x8xf32>
    %47 = tpu.matmul %44, %45, %cst_16 {dimension_numbers = #tpu.dot_dimension_numbers<[1], [1], [0], [0], [0, 0, 1, 0], [], []>} : vector<8x16xf32>, vector<8x16xf32>, vector<8x8xf32> -> vector<8x8xf32>
    %cst_17 = arith.constant dense<0xFF800000> : vector<8xf32>
    %48 = vector.multi_reduction <maximumf>, %47, %cst_17 [1] : vector<8x8xf32> to vector<8xf32>
    %49 = vector.shape_cast %48 : vector<8xf32> to vector<8x1xf32>
    %50 = vector.broadcast %49 : vector<8x1xf32> to vector<8x8xf32>
    %51 = arith.subf %47, %50 : vector<8x8xf32>
    %52 = math.exp %51 : vector<8x8xf32>
    %cst_18 = arith.constant dense<0.000000e+00> : vector<8xf32>
    %53 = vector.multi_reduction <add>, %52, %cst_18 [1] : vector<8x8xf32> to vector<8xf32>
    %54 = vector.shape_cast %53 : vector<8xf32> to vector<8x1xf32>
    %55 = vector.broadcast %54 : vector<8x1xf32> to vector<8x8xf32>
    %56 = arith.divf %52, %55 : vector<8x8xf32>
    %cst_19 = arith.constant dense<0.000000e+00> : vector<8x16xf32>
    %57 = tpu.matmul %56, %46, %cst_19 {dimension_numbers = #tpu.dot_dimension_numbers<[1], [0], [0], [1], [0, 0, 1, 1], [], []>} : vector<8x8xf32>, vector<8x16xf32>, vector<8x16xf32> -> vector<8x16xf32>
    %58 = tpu.concatenate %41, %57 in 1 : vector<8x16xf32>, vector<8x16xf32> -> vector<8x32xf32>
    %59 = vector.extract_strided_slice %15 {offsets = [8, 0], sizes = [8, 16], strides = [1, 1]} : vector<16x32xf32> to vector<8x16xf32>
    %cst_20 = arith.constant 2.500000e-01 : f32
    %60 = vector.broadcast %cst_20 : f32 to vector<8x16xf32>
    %61 = arith.mulf %59, %60 : vector<8x16xf32>
    %62 = vector.extract_strided_slice %19 {offsets = [8, 0], sizes = [8, 16], strides = [1, 1]} : vector<16x32xf32> to vector<8x16xf32>
    %63 = vector.extract_strided_slice %23 {offsets = [8, 0], sizes = [8, 16], strides = [1, 1]} : vector<16x32xf32> to vector<8x16xf32>
    %cst_21 = arith.constant dense<0.000000e+00> : vector<8x8xf32>
    %64 = tpu.matmul %61, %62, %cst_21 {dimension_numbers = #tpu.dot_dimension_numbers<[1], [1], [0], [0], [0, 0, 1, 0], [], []>} : vector<8x16xf32>, vector<8x16xf32>, vector<8x8xf32> -> vector<8x8xf32>
    %cst_22 = arith.constant dense<0xFF800000> : vector<8xf32>
    %65 = vector.multi_reduction <maximumf>, %64, %cst_22 [1] : vector<8x8xf32> to vector<8xf32>
    %66 = vector.shape_cast %65 : vector<8xf32> to vector<8x1xf32>
    %67 = vector.broadcast %66 : vector<8x1xf32> to vector<8x8xf32>
    %68 = arith.subf %64, %67 : vector<8x8xf32>
    %69 = math.exp %68 : vector<8x8xf32>
    %cst_23 = arith.constant dense<0.000000e+00> : vector<8xf32>
    %70 = vector.multi_reduction <add>, %69, %cst_23 [1] : vector<8x8xf32> to vector<8xf32>
    %71 = vector.shape_cast %70 : vector<8xf32> to vector<8x1xf32>
    %72 = vector.broadcast %71 : vector<8x1xf32> to vector<8x8xf32>
    %73 = arith.divf %69, %72 : vector<8x8xf32>
    %cst_24 = arith.constant dense<0.000000e+00> : vector<8x16xf32>
    %74 = tpu.matmul %73, %63, %cst_24 {dimension_numbers = #tpu.dot_dimension_numbers<[1], [0], [0], [1], [0, 0, 1, 1], [], []>} : vector<8x8xf32>, vector<8x16xf32>, vector<8x16xf32> -> vector<8x16xf32>
    %75 = vector.extract_strided_slice %15 {offsets = [8, 16], sizes = [8, 16], strides = [1, 1]} : vector<16x32xf32> to vector<8x16xf32>
    %cst_25 = arith.constant 2.500000e-01 : f32
    %76 = vector.broadcast %cst_25 : f32 to vector<8x16xf32>
    %77 = arith.mulf %75, %76 : vector<8x16xf32>
    %78 = vector.extract_strided_slice %19 {offsets = [8, 16], sizes = [8, 16], strides = [1, 1]} : vector<16x32xf32> to vector<8x16xf32>
    %79 = vector.extract_strided_slice %23 {offsets = [8, 16], sizes = [8, 16], strides = [1, 1]} : vector<16x32xf32> to vector<8x16xf32>
    %cst_26 = arith.constant dense<0.000000e+00> : vector<8x8xf32>
    %80 = tpu.matmul %77, %78, %cst_26 {dimension_numbers = #tpu.dot_dimension_numbers<[1], [1], [0], [0], [0, 0, 1, 0], [], []>} : vector<8x16xf32>, vector<8x16xf32>, vector<8x8xf32> -> vector<8x8xf32>
    %cst_27 = arith.constant dense<0xFF800000> : vector<8xf32>
    %81 = vector.multi_reduction <maximumf>, %80, %cst_27 [1] : vector<8x8xf32> to vector<8xf32>
    %82 = vector.shape_cast %81 : vector<8xf32> to vector<8x1xf32>
    %83 = vector.broadcast %82 : vector<8x1xf32> to vector<8x8xf32>
    %84 = arith.subf %80, %83 : vector<8x8xf32>
    %85 = math.exp %84 : vector<8x8xf32>
    %cst_28 = arith.constant dense<0.000000e+00> : vector<8xf32>
    %86 = vector.multi_reduction <add>, %85, %cst_28 [1] : vector<8x8xf32> to vector<8xf32>
    %87 = vector.shape_cast %86 : vector<8xf32> to vector<8x1xf32>
    %88 = vector.broadcast %87 : vector<8x1xf32> to vector<8x8xf32>
    %89 = arith.divf %85, %88 : vector<8x8xf32>
    %cst_29 = arith.constant dense<0.000000e+00> : vector<8x16xf32>
    %90 = tpu.matmul %89, %79, %cst_29 {dimension_numbers = #tpu.dot_dimension_numbers<[1], [0], [0], [1], [0, 0, 1, 1], [], []>} : vector<8x8xf32>, vector<8x16xf32>, vector<8x16xf32> -> vector<8x16xf32>
    %91 = tpu.concatenate %74, %90 in 1 : vector<8x16xf32>, vector<8x16xf32> -> vector<8x32xf32>
    %92 = tpu.concatenate %58, %91 in 0 : vector<8x32xf32>, vector<8x32xf32> -> vector<16x32xf32>
    %cst_30 = arith.constant dense<0.000000e+00> : vector<16x32xf32>
    %93 = tpu.matmul %92, %24, %cst_30 {dimension_numbers = #tpu.dot_dimension_numbers<[1], [0], [0], [1], [0, 0, 1, 1], [], []>} : vector<16x32xf32>, vector<32x32xf32>, vector<16x32xf32> -> vector<16x32xf32>
    %94 = vector.broadcast %25 : vector<1x32xf32> to vector<16x32xf32>
    %95 = arith.addf %93, %94 : vector<16x32xf32>
    %96 = arith.addf %9, %95 : vector<16x32xf32>
    %97 = vector.extract_strided_slice %6 {offsets = [4, 0], sizes = [1, 32], strides = [1, 1]} : vector<14x32xf32> to vector<1x32xf32>
    %98 = vector.extract_strided_slice %6 {offsets = [5, 0], sizes = [1, 32], strides = [1, 1]} : vector<14x32xf32> to vector<1x32xf32>
    %cst_31 = arith.constant dense<0.000000e+00> : vector<16xf32>
    %99 = vector.multi_reduction <add>, %96, %cst_31 [1] : vector<16x32xf32> to vector<16xf32>
    %100 = vector.shape_cast %99 : vector<16xf32> to vector<16x1xf32>
    %cst_32 = arith.constant 3.200000e+01 : f32
    %101 = vector.broadcast %cst_32 : f32 to vector<16x1xf32>
    %102 = arith.divf %100, %101 : vector<16x1xf32>
    %103 = vector.broadcast %102 : vector<16x1xf32> to vector<16x32xf32>
    %104 = arith.subf %96, %103 : vector<16x32xf32>
    %105 = arith.mulf %104, %104 : vector<16x32xf32>
    %cst_33 = arith.constant dense<0.000000e+00> : vector<16xf32>
    %106 = vector.multi_reduction <add>, %105, %cst_33 [1] : vector<16x32xf32> to vector<16xf32>
    %107 = vector.shape_cast %106 : vector<16xf32> to vector<16x1xf32>
    %cst_34 = arith.constant 3.200000e+01 : f32
    %108 = vector.broadcast %cst_34 : f32 to vector<16x1xf32>
    %109 = arith.divf %107, %108 : vector<16x1xf32>
    %110 = vector.broadcast %102 : vector<16x1xf32> to vector<16x32xf32>
    %111 = arith.subf %96, %110 : vector<16x32xf32>
    %cst_35 = arith.constant 9.99999974E-6 : f32
    %112 = vector.broadcast %cst_35 : f32 to vector<16x1xf32>
    %113 = arith.addf %109, %112 : vector<16x1xf32>
    %114 = math.rsqrt %113 : vector<16x1xf32>
    %115 = vector.broadcast %114 : vector<16x1xf32> to vector<16x32xf32>
    %116 = arith.mulf %111, %115 : vector<16x32xf32>
    %117 = vector.broadcast %97 : vector<1x32xf32> to vector<16x32xf32>
    %118 = arith.mulf %116, %117 : vector<16x32xf32>
    %119 = vector.broadcast %98 : vector<1x32xf32> to vector<16x32xf32>
    %120 = arith.addf %118, %119 : vector<16x32xf32>
    %121 = vector.extract_strided_slice %4 {offsets = [0, 128], sizes = [32, 128], strides = [1, 1]} : vector<32x320xf32> to vector<32x128xf32>
    %122 = vector.extract_strided_slice %6 {offsets = [6, 0], sizes = [4, 32], strides = [1, 1]} : vector<14x32xf32> to vector<4x32xf32>
    %123 = vector.extract_strided_slice %121 {offsets = [0, 0], sizes = [32, 64], strides = [1, 1]} : vector<32x128xf32> to vector<32x64xf32>
    %cst_36 = arith.constant dense<0.000000e+00> : vector<16x64xf32>
    %124 = tpu.matmul %120, %123, %cst_36 {dimension_numbers = #tpu.dot_dimension_numbers<[1], [0], [0], [1], [0, 0, 1, 1], [], []>} : vector<16x32xf32>, vector<32x64xf32>, vector<16x64xf32> -> vector<16x64xf32>
    %125 = vector.extract_strided_slice %124 {offsets = [0, 0], sizes = [16, 32], strides = [1, 1]} : vector<16x64xf32> to vector<16x32xf32>
    %126 = vector.extract_strided_slice %122 {offsets = [0, 0], sizes = [1, 32], strides = [1, 1]} : vector<4x32xf32> to vector<1x32xf32>
    %127 = vector.broadcast %126 : vector<1x32xf32> to vector<16x32xf32>
    %128 = arith.addf %125, %127 : vector<16x32xf32>
    %129 = vector.extract_strided_slice %124 {offsets = [0, 32], sizes = [16, 32], strides = [1, 1]} : vector<16x64xf32> to vector<16x32xf32>
    %130 = vector.extract_strided_slice %122 {offsets = [1, 0], sizes = [1, 32], strides = [1, 1]} : vector<4x32xf32> to vector<1x32xf32>
    %131 = vector.broadcast %130 : vector<1x32xf32> to vector<16x32xf32>
    %132 = arith.addf %129, %131 : vector<16x32xf32>
    %133 = arith.negf %132 : vector<16x32xf32>
    %134 = math.exp %133 : vector<16x32xf32>
    %cst_37 = arith.constant 1.000000e+00 : f32
    %135 = vector.broadcast %cst_37 : f32 to vector<16x32xf32>
    %136 = arith.addf %135, %134 : vector<16x32xf32>
    %137 = arith.divf %135, %136 : vector<16x32xf32>
    %138 = arith.mulf %128, %137 : vector<16x32xf32>
    %139 = vector.extract_strided_slice %121 {offsets = [0, 64], sizes = [32, 64], strides = [1, 1]} : vector<32x128xf32> to vector<32x64xf32>
    %cst_38 = arith.constant dense<0.000000e+00> : vector<16x64xf32>
    %140 = tpu.matmul %138, %139, %cst_38 {dimension_numbers = #tpu.dot_dimension_numbers<[1], [0], [0], [1], [0, 0, 1, 1], [], []>} : vector<16x32xf32>, vector<32x64xf32>, vector<16x64xf32> -> vector<16x64xf32>
    %141 = vector.extract_strided_slice %140 {offsets = [0, 0], sizes = [16, 32], strides = [1, 1]} : vector<16x64xf32> to vector<16x32xf32>
    %142 = vector.extract_strided_slice %122 {offsets = [2, 0], sizes = [1, 32], strides = [1, 1]} : vector<4x32xf32> to vector<1x32xf32>
    %143 = vector.broadcast %142 : vector<1x32xf32> to vector<16x32xf32>
    %144 = arith.addf %141, %143 : vector<16x32xf32>
    %145 = vector.extract_strided_slice %140 {offsets = [0, 32], sizes = [16, 32], strides = [1, 1]} : vector<16x64xf32> to vector<16x32xf32>
    %146 = vector.extract_strided_slice %122 {offsets = [3, 0], sizes = [1, 32], strides = [1, 1]} : vector<4x32xf32> to vector<1x32xf32>
    %147 = vector.broadcast %146 : vector<1x32xf32> to vector<16x32xf32>
    %148 = arith.addf %145, %147 : vector<16x32xf32>
    %149 = arith.negf %148 : vector<16x32xf32>
    %150 = math.exp %149 : vector<16x32xf32>
    %cst_39 = arith.constant 1.000000e+00 : f32
    %151 = vector.broadcast %cst_39 : f32 to vector<16x32xf32>
    %152 = arith.addf %151, %150 : vector<16x32xf32>
    %153 = arith.divf %151, %152 : vector<16x32xf32>
    %154 = arith.mulf %144, %153 : vector<16x32xf32>
    %155 = arith.addf %154, %120 : vector<16x32xf32>
    %cst_40 = arith.constant 0.000000e+00 : f32
    %156 = vector.broadcast %cst_40 : f32 to vector<16x32xf32>
    %157 = arith.maximumf %155, %156 : vector<16x32xf32>
    %158 = arith.addf %120, %157 : vector<16x32xf32>
    %159 = vector.extract_strided_slice %6 {offsets = [10, 0], sizes = [1, 32], strides = [1, 1]} : vector<14x32xf32> to vector<1x32xf32>
    %160 = vector.extract_strided_slice %6 {offsets = [11, 0], sizes = [1, 32], strides = [1, 1]} : vector<14x32xf32> to vector<1x32xf32>
    %cst_41 = arith.constant dense<0.000000e+00> : vector<16xf32>
    %161 = vector.multi_reduction <add>, %158, %cst_41 [1] : vector<16x32xf32> to vector<16xf32>
    %162 = vector.shape_cast %161 : vector<16xf32> to vector<16x1xf32>
    %cst_42 = arith.constant 3.200000e+01 : f32
    %163 = vector.broadcast %cst_42 : f32 to vector<16x1xf32>
    %164 = arith.divf %162, %163 : vector<16x1xf32>
    %165 = vector.broadcast %164 : vector<16x1xf32> to vector<16x32xf32>
    %166 = arith.subf %158, %165 : vector<16x32xf32>
    %167 = arith.mulf %166, %166 : vector<16x32xf32>
    %cst_43 = arith.constant dense<0.000000e+00> : vector<16xf32>
    %168 = vector.multi_reduction <add>, %167, %cst_43 [1] : vector<16x32xf32> to vector<16xf32>
    %169 = vector.shape_cast %168 : vector<16xf32> to vector<16x1xf32>
    %cst_44 = arith.constant 3.200000e+01 : f32
    %170 = vector.broadcast %cst_44 : f32 to vector<16x1xf32>
    %171 = arith.divf %169, %170 : vector<16x1xf32>
    %172 = vector.broadcast %164 : vector<16x1xf32> to vector<16x32xf32>
    %173 = arith.subf %158, %172 : vector<16x32xf32>
    %cst_45 = arith.constant 9.99999974E-6 : f32
    %174 = vector.broadcast %cst_45 : f32 to vector<16x1xf32>
    %175 = arith.addf %171, %174 : vector<16x1xf32>
    %176 = math.rsqrt %175 : vector<16x1xf32>
    %177 = vector.broadcast %176 : vector<16x1xf32> to vector<16x32xf32>
    %178 = arith.mulf %173, %177 : vector<16x32xf32>
    %179 = vector.broadcast %159 : vector<1x32xf32> to vector<16x32xf32>
    %180 = arith.mulf %178, %179 : vector<16x32xf32>
    %181 = vector.broadcast %160 : vector<1x32xf32> to vector<16x32xf32>
    %182 = arith.addf %180, %181 : vector<16x32xf32>
    %183 = vector.extract_strided_slice %4 {offsets = [0, 256], sizes = [32, 32], strides = [1, 1]} : vector<32x320xf32> to vector<32x32xf32>
    %cst_46 = arith.constant dense<0.000000e+00> : vector<16x32xf32>
    %184 = tpu.matmul %182, %183, %cst_46 {dimension_numbers = #tpu.dot_dimension_numbers<[1], [0], [0], [1], [0, 0, 1, 1], [], []>} : vector<16x32xf32>, vector<32x32xf32>, vector<16x32xf32> -> vector<16x32xf32>
    %185 = vector.extract_strided_slice %6 {offsets = [12, 0], sizes = [1, 32], strides = [1, 1]} : vector<14x32xf32> to vector<1x32xf32>
    %186 = vector.broadcast %185 : vector<1x32xf32> to vector<16x32xf32>
    %187 = arith.addf %184, %186 : vector<16x32xf32>
    %cst_47 = arith.constant 0.000000e+00 : f32
    %188 = vector.broadcast %cst_47 : f32 to vector<16x32xf32>
    %189 = arith.maximumf %187, %188 : vector<16x32xf32>
    %190 = vector.extract_strided_slice %4 {offsets = [0, 288], sizes = [32, 32], strides = [1, 1]} : vector<32x320xf32> to vector<32x32xf32>
    %cst_48 = arith.constant dense<0.000000e+00> : vector<16x32xf32>
    %191 = tpu.matmul %189, %190, %cst_48 {dimension_numbers = #tpu.dot_dimension_numbers<[1], [0], [0], [1], [0, 0, 1, 1], [], []>} : vector<16x32xf32>, vector<32x32xf32>, vector<16x32xf32> -> vector<16x32xf32>
    %192 = vector.extract_strided_slice %6 {offsets = [13, 0], sizes = [1, 32], strides = [1, 1]} : vector<14x32xf32> to vector<1x32xf32>
    %193 = vector.broadcast %192 : vector<1x32xf32> to vector<16x32xf32>
    %194 = arith.addf %191, %193 : vector<16x32xf32>
    %c0_49 = arith.constant 0 : index
    %c0_50 = arith.constant 0 : index
    %195 = vector.load %arg8[%c0_49, %c0_50] : memref<16x32xf32, #tpu.memory_space<vmem>>, vector<16x32xf32>
    tpu.vector_store %arg8[%c0_49, %c0_50], %194 {strides = array<i32>} : memref<16x32xf32, #tpu.memory_space<vmem>>, vector<16x32xf32>,
    %c1_i32 = arith.constant 1 : i32
    %196 = arith.cmpi eq, %arg0, %c1_i32 : i32
    %197 = arith.extui %196 : i1 to i32
    %c0_i32_51 = arith.constant 0 : i32
    %198 = arith.cmpi ne, %197, %c0_i32_51 : i32
    scf.if %198 {
      %c0_52 = arith.constant 0 : index
      %c0_53 = arith.constant 0 : index
      %199 = vector.load %arg7[%c0_52, %c0_53] : memref<16x32xf32, #tpu.memory_space<vmem>>, vector<16x32xf32>
      tpu.vector_store %arg7[%c0_52, %c0_53], %194 {strides = array<i32>} : memref<16x32xf32, #tpu.memory_space<vmem>>, vector<16x32xf32>,
    } else {
    }
    return
  }
  func.func @transform_0(%arg0: i32) -> (i32, i32) {
    %c0_i32 = arith.constant 0 : i32
    %c0_i32_0 = arith.constant 0 : i32
    %c0_i32_1 = arith.constant 0 : i32
    return %c0_i32, %c0_i32_0 : i32, i32
  }
  func.func @transform_1(%arg0: i32) -> (i32, i32) {
    %c0_i32 = arith.constant 0 : i32
    %c0_i32_0 = arith.constant 0 : i32
    %c0_i32_1 = arith.constant 0 : i32
    return %c0_i32, %c0_i32_0 : i32, i32
  }
  func.func @transform_2(%arg0: i32) -> (i32, i32) {
    %c0_i32 = arith.constant 0 : i32
    %c0_i32_0 = arith.constant 0 : i32
    %c0_i32_1 = arith.constant 0 : i32
    return %c0_i32, %c0_i32_0 : i32, i32
  }
  func.func @transform_3(%arg0: i32) -> (i32, i32) {
    %c0_i32 = arith.constant 0 : i32
    %c0_i32_0 = arith.constant 0 : i32
    %c0_i32_1 = arith.constant 0 : i32
    return %c0_i32, %c0_i32_0 : i32, i32
  }
  func.func @transform_4(%arg0: i32) -> (i32, i32, i32) {
    %c0_i32 = arith.constant 0 : i32
    %c0_i32_0 = arith.constant 0 : i32
    %c0_i32_1 = arith.constant 0 : i32
    return %arg0, %c0_i32, %c0_i32_0 : i32, i32, i32
  }
  func.func @transform_5(%arg0: i32) -> (i32, i32, i32) {
    %c0_i32 = arith.constant 0 : i32
    %c0_i32_0 = arith.constant 0 : i32
    %c0_i32_1 = arith.constant 0 : i32
    return %arg0, %c0_i32, %c0_i32_0 : i32, i32, i32
  }
  func.func @transform_6(%arg0: i32) -> (i32, i32) {
    %c0_i32 = arith.constant 0 : i32
    %c0_i32_0 = arith.constant 0 : i32
    %c0_i32_1 = arith.constant 0 : i32
    return %c0_i32, %c0_i32_0 : i32, i32
  }
}

module attributes {stable_mosaic.version = 11 : i64} {
  func.func @_decoder_stack_kernel(%arg0: i32, %arg1: memref<16x4xf32, #tpu.memory_space<vmem>>, %arg2: memref<16x32xf32, #tpu.memory_space<vmem>>, %arg3: memref<16x32xf32, #tpu.memory_space<vmem>>, %arg4: memref<4x32xf32, #tpu.memory_space<vmem>>, %arg5: memref<3x32xf32, #tpu.memory_space<vmem>>, %arg6: memref<1x32x576xf32, #tpu.memory_space<vmem>>, %arg7: memref<1x26x32xf32, #tpu.memory_space<vmem>>, %arg8: memref<32x64xf32, #tpu.memory_space<vmem>>, %arg9: memref<2x32xf32, #tpu.memory_space<vmem>>, %arg10: memref<16x32xf32, #tpu.memory_space<vmem>>, %arg11: memref<16x32xf32, #tpu.memory_space<vmem>>) attributes {dimension_semantics = [#tpu.dimension_semantics<arbitrary>], iteration_bounds = array<i64: 2>, scalar_prefetch = 0 : i64, scratch_operands = 1 : i64, tpu.core_type = #tpu.core_type<tc>, window_params = [{pipeline_mode = #tpu.pipeline_mode<synchronous>, transform_indices = @transform_0, window_bounds = array<i64: 16, 4>}, {pipeline_mode = #tpu.pipeline_mode<synchronous>, transform_indices = @transform_1, window_bounds = array<i64: 16, 32>}, {pipeline_mode = #tpu.pipeline_mode<synchronous>, transform_indices = @transform_2, window_bounds = array<i64: 16, 32>}, {pipeline_mode = #tpu.pipeline_mode<synchronous>, transform_indices = @transform_3, window_bounds = array<i64: 4, 32>}, {pipeline_mode = #tpu.pipeline_mode<synchronous>, transform_indices = @transform_4, window_bounds = array<i64: 3, 32>}, {transform_indices = @transform_5, window_bounds = array<i64: 1, 32, 576>}, {transform_indices = @transform_6, window_bounds = array<i64: 1, 26, 32>}, {pipeline_mode = #tpu.pipeline_mode<synchronous>, transform_indices = @transform_7, window_bounds = array<i64: 32, 64>}, {pipeline_mode = #tpu.pipeline_mode<synchronous>, transform_indices = @transform_8, window_bounds = array<i64: 2, 32>}, {pipeline_mode = #tpu.pipeline_mode<synchronous>, transform_indices = @transform_9, window_bounds = array<i64: 16, 32>}]} {
    %c0_i32 = arith.constant 0 : i32
    %0 = arith.cmpi eq, %arg0, %c0_i32 : i32
    %1 = arith.extui %0 : i1 to i32
    %c0_i32_0 = arith.constant 0 : i32
    %2 = arith.cmpi ne, %1, %c0_i32_0 : i32
    scf.if %2 {
      %c0_92 = arith.constant 0 : index
      %c0_93 = arith.constant 0 : index
      %374 = vector.load %arg1[%c0_92, %c0_93] : memref<16x4xf32, #tpu.memory_space<vmem>>, vector<16x4xf32>
      %c0_94 = arith.constant 0 : index
      %c0_95 = arith.constant 0 : index
      %375 = vector.load %arg4[%c0_94, %c0_95] : memref<4x32xf32, #tpu.memory_space<vmem>>, vector<4x32xf32>
      %cst_96 = arith.constant dense<0.000000e+00> : vector<16x32xf32>
      %376 = tpu.matmul %374, %375, %cst_96 {dimension_numbers = #tpu.dot_dimension_numbers<[1], [0], [0], [1], [0, 0, 1, 1], [], []>} : vector<16x4xf32>, vector<4x32xf32>, vector<16x32xf32> -> vector<16x32xf32>
      %c0_97 = arith.constant 0 : index
      %c0_98 = arith.constant 0 : index
      %377 = vector.load %arg5[%c0_97, %c0_98] : memref<3x32xf32, #tpu.memory_space<vmem>>, vector<1x32xf32>
      %378 = vector.broadcast %377 : vector<1x32xf32> to vector<16x32xf32>
      %379 = arith.addf %376, %378 : vector<16x32xf32>
      %c1 = arith.constant 1 : index
      %c0_99 = arith.constant 0 : index
      %380 = vector.load %arg5[%c1, %c0_99] : memref<3x32xf32, #tpu.memory_space<vmem>>, vector<1x32xf32>
      %c2 = arith.constant 2 : index
      %c0_100 = arith.constant 0 : index
      %381 = vector.load %arg5[%c2, %c0_100] : memref<3x32xf32, #tpu.memory_space<vmem>>, vector<1x32xf32>
      %cst_101 = arith.constant dense<0.000000e+00> : vector<16xf32>
      %382 = vector.multi_reduction <add>, %379, %cst_101 [1] : vector<16x32xf32> to vector<16xf32>
      %383 = vector.shape_cast %382 : vector<16xf32> to vector<16x1xf32>
      %cst_102 = arith.constant 3.200000e+01 : f32
      %384 = vector.broadcast %cst_102 : f32 to vector<16x1xf32>
      %385 = arith.divf %383, %384 : vector<16x1xf32>
      %386 = vector.broadcast %385 : vector<16x1xf32> to vector<16x32xf32>
      %387 = arith.subf %379, %386 : vector<16x32xf32>
      %388 = arith.mulf %387, %387 : vector<16x32xf32>
      %cst_103 = arith.constant dense<0.000000e+00> : vector<16xf32>
      %389 = vector.multi_reduction <add>, %388, %cst_103 [1] : vector<16x32xf32> to vector<16xf32>
      %390 = vector.shape_cast %389 : vector<16xf32> to vector<16x1xf32>
      %cst_104 = arith.constant 3.200000e+01 : f32
      %391 = vector.broadcast %cst_104 : f32 to vector<16x1xf32>
      %392 = arith.divf %390, %391 : vector<16x1xf32>
      %393 = vector.broadcast %385 : vector<16x1xf32> to vector<16x32xf32>
      %394 = arith.subf %379, %393 : vector<16x32xf32>
      %cst_105 = arith.constant 9.99999974E-6 : f32
      %395 = vector.broadcast %cst_105 : f32 to vector<16x1xf32>
      %396 = arith.addf %392, %395 : vector<16x1xf32>
      %397 = math.rsqrt %396 : vector<16x1xf32>
      %398 = vector.broadcast %397 : vector<16x1xf32> to vector<16x32xf32>
      %399 = arith.mulf %394, %398 : vector<16x32xf32>
      %400 = vector.broadcast %380 : vector<1x32xf32> to vector<16x32xf32>
      %401 = arith.mulf %399, %400 : vector<16x32xf32>
      %402 = vector.broadcast %381 : vector<1x32xf32> to vector<16x32xf32>
      %403 = arith.addf %401, %402 : vector<16x32xf32>
      %c0_106 = arith.constant 0 : index
      %c0_107 = arith.constant 0 : index
      %404 = vector.load %arg11[%c0_106, %c0_107] : memref<16x32xf32, #tpu.memory_space<vmem>>, vector<16x32xf32>
      tpu.vector_store %arg11[%c0_106, %c0_107], %403 {strides = array<i32>} : memref<16x32xf32, #tpu.memory_space<vmem>>, vector<16x32xf32>,
    } else {
    }
    %c0 = arith.constant 0 : index
    %c0_1 = arith.constant 0 : index
    %c0_2 = arith.constant 0 : index
    %3 = vector.load %arg6[%c0, %c0_1, %c0_2] : memref<1x32x576xf32, #tpu.memory_space<vmem>>, vector<1x32x576xf32>
    %4 = vector.shape_cast %3 : vector<1x32x576xf32> to vector<32x576xf32>
    %c0_3 = arith.constant 0 : index
    %c0_4 = arith.constant 0 : index
    %c0_5 = arith.constant 0 : index
    %5 = vector.load %arg7[%c0_3, %c0_4, %c0_5] : memref<1x26x32xf32, #tpu.memory_space<vmem>>, vector<1x26x32xf32>
    %6 = vector.shape_cast %5 : vector<1x26x32xf32> to vector<26x32xf32>
    %c0_6 = arith.constant 0 : index
    %c0_7 = arith.constant 0 : index
    %7 = vector.load %arg2[%c0_6, %c0_7] : memref<16x32xf32, #tpu.memory_space<vmem>>, vector<16x32xf32>
    %c0_8 = arith.constant 0 : index
    %c0_9 = arith.constant 0 : index
    %8 = vector.load %arg11[%c0_8, %c0_9] : memref<16x32xf32, #tpu.memory_space<vmem>>, vector<16x32xf32>
    %c0_10 = arith.constant 0 : index
    %c0_11 = arith.constant 0 : index
    %9 = vector.load %arg3[%c0_10, %c0_11] : memref<16x32xf32, #tpu.memory_space<vmem>>, vector<16x32xf32>
    %10 = arith.addf %8, %9 : vector<16x32xf32>
    %11 = vector.extract_strided_slice %4 {offsets = [0, 0], sizes = [32, 96], strides = [1, 1]} : vector<32x576xf32> to vector<32x96xf32>
    %cst = arith.constant dense<0.000000e+00> : vector<16x96xf32>
    %12 = tpu.matmul %10, %11, %cst {dimension_numbers = #tpu.dot_dimension_numbers<[1], [0], [0], [1], [0, 0, 1, 1], [], []>} : vector<16x32xf32>, vector<32x96xf32>, vector<16x96xf32> -> vector<16x96xf32>
    %13 = vector.extract_strided_slice %12 {offsets = [0, 0], sizes = [16, 32], strides = [1, 1]} : vector<16x96xf32> to vector<16x32xf32>
    %14 = vector.extract_strided_slice %6 {offsets = [0, 0], sizes = [1, 32], strides = [1, 1]} : vector<26x32xf32> to vector<1x32xf32>
    %15 = vector.broadcast %14 : vector<1x32xf32> to vector<16x32xf32>
    %16 = arith.addf %13, %15 : vector<16x32xf32>
    %17 = vector.extract_strided_slice %12 {offsets = [0, 32], sizes = [16, 32], strides = [1, 1]} : vector<16x96xf32> to vector<16x32xf32>
    %18 = vector.extract_strided_slice %6 {offsets = [1, 0], sizes = [1, 32], strides = [1, 1]} : vector<26x32xf32> to vector<1x32xf32>
    %19 = vector.broadcast %18 : vector<1x32xf32> to vector<16x32xf32>
    %20 = arith.addf %17, %19 : vector<16x32xf32>
    %21 = vector.extract_strided_slice %12 {offsets = [0, 64], sizes = [16, 32], strides = [1, 1]} : vector<16x96xf32> to vector<16x32xf32>
    %22 = vector.extract_strided_slice %6 {offsets = [2, 0], sizes = [1, 32], strides = [1, 1]} : vector<26x32xf32> to vector<1x32xf32>
    %23 = vector.broadcast %22 : vector<1x32xf32> to vector<16x32xf32>
    %24 = arith.addf %21, %23 : vector<16x32xf32>
    %25 = vector.extract_strided_slice %4 {offsets = [0, 96], sizes = [32, 32], strides = [1, 1]} : vector<32x576xf32> to vector<32x32xf32>
    %26 = vector.extract_strided_slice %6 {offsets = [3, 0], sizes = [1, 32], strides = [1, 1]} : vector<26x32xf32> to vector<1x32xf32>
    %27 = vector.extract_strided_slice %16 {offsets = [0, 0], sizes = [8, 16], strides = [1, 1]} : vector<16x32xf32> to vector<8x16xf32>
    %cst_12 = arith.constant 2.500000e-01 : f32
    %28 = vector.broadcast %cst_12 : f32 to vector<8x16xf32>
    %29 = arith.mulf %27, %28 : vector<8x16xf32>
    %30 = vector.extract_strided_slice %20 {offsets = [0, 0], sizes = [8, 16], strides = [1, 1]} : vector<16x32xf32> to vector<8x16xf32>
    %31 = vector.extract_strided_slice %24 {offsets = [0, 0], sizes = [8, 16], strides = [1, 1]} : vector<16x32xf32> to vector<8x16xf32>
    %cst_13 = arith.constant dense<0.000000e+00> : vector<8x8xf32>
    %32 = tpu.matmul %29, %30, %cst_13 {dimension_numbers = #tpu.dot_dimension_numbers<[1], [1], [0], [0], [0, 0, 1, 0], [], []>} : vector<8x16xf32>, vector<8x16xf32>, vector<8x8xf32> -> vector<8x8xf32>
    %cst_14 = arith.constant dense<0xFF800000> : vector<8xf32>
    %33 = vector.multi_reduction <maximumf>, %32, %cst_14 [1] : vector<8x8xf32> to vector<8xf32>
    %34 = vector.shape_cast %33 : vector<8xf32> to vector<8x1xf32>
    %35 = vector.broadcast %34 : vector<8x1xf32> to vector<8x8xf32>
    %36 = arith.subf %32, %35 : vector<8x8xf32>
    %37 = math.exp %36 : vector<8x8xf32>
    %cst_15 = arith.constant dense<0.000000e+00> : vector<8xf32>
    %38 = vector.multi_reduction <add>, %37, %cst_15 [1] : vector<8x8xf32> to vector<8xf32>
    %39 = vector.shape_cast %38 : vector<8xf32> to vector<8x1xf32>
    %40 = vector.broadcast %39 : vector<8x1xf32> to vector<8x8xf32>
    %41 = arith.divf %37, %40 : vector<8x8xf32>
    %cst_16 = arith.constant dense<0.000000e+00> : vector<8x16xf32>
    %42 = tpu.matmul %41, %31, %cst_16 {dimension_numbers = #tpu.dot_dimension_numbers<[1], [0], [0], [1], [0, 0, 1, 1], [], []>} : vector<8x8xf32>, vector<8x16xf32>, vector<8x16xf32> -> vector<8x16xf32>
    %43 = vector.extract_strided_slice %16 {offsets = [0, 16], sizes = [8, 16], strides = [1, 1]} : vector<16x32xf32> to vector<8x16xf32>
    %cst_17 = arith.constant 2.500000e-01 : f32
    %44 = vector.broadcast %cst_17 : f32 to vector<8x16xf32>
    %45 = arith.mulf %43, %44 : vector<8x16xf32>
    %46 = vector.extract_strided_slice %20 {offsets = [0, 16], sizes = [8, 16], strides = [1, 1]} : vector<16x32xf32> to vector<8x16xf32>
    %47 = vector.extract_strided_slice %24 {offsets = [0, 16], sizes = [8, 16], strides = [1, 1]} : vector<16x32xf32> to vector<8x16xf32>
    %cst_18 = arith.constant dense<0.000000e+00> : vector<8x8xf32>
    %48 = tpu.matmul %45, %46, %cst_18 {dimension_numbers = #tpu.dot_dimension_numbers<[1], [1], [0], [0], [0, 0, 1, 0], [], []>} : vector<8x16xf32>, vector<8x16xf32>, vector<8x8xf32> -> vector<8x8xf32>
    %cst_19 = arith.constant dense<0xFF800000> : vector<8xf32>
    %49 = vector.multi_reduction <maximumf>, %48, %cst_19 [1] : vector<8x8xf32> to vector<8xf32>
    %50 = vector.shape_cast %49 : vector<8xf32> to vector<8x1xf32>
    %51 = vector.broadcast %50 : vector<8x1xf32> to vector<8x8xf32>
    %52 = arith.subf %48, %51 : vector<8x8xf32>
    %53 = math.exp %52 : vector<8x8xf32>
    %cst_20 = arith.constant dense<0.000000e+00> : vector<8xf32>
    %54 = vector.multi_reduction <add>, %53, %cst_20 [1] : vector<8x8xf32> to vector<8xf32>
    %55 = vector.shape_cast %54 : vector<8xf32> to vector<8x1xf32>
    %56 = vector.broadcast %55 : vector<8x1xf32> to vector<8x8xf32>
    %57 = arith.divf %53, %56 : vector<8x8xf32>
    %cst_21 = arith.constant dense<0.000000e+00> : vector<8x16xf32>
    %58 = tpu.matmul %57, %47, %cst_21 {dimension_numbers = #tpu.dot_dimension_numbers<[1], [0], [0], [1], [0, 0, 1, 1], [], []>} : vector<8x8xf32>, vector<8x16xf32>, vector<8x16xf32> -> vector<8x16xf32>
    %59 = tpu.concatenate %42, %58 in 1 : vector<8x16xf32>, vector<8x16xf32> -> vector<8x32xf32>
    %60 = vector.extract_strided_slice %16 {offsets = [8, 0], sizes = [8, 16], strides = [1, 1]} : vector<16x32xf32> to vector<8x16xf32>
    %cst_22 = arith.constant 2.500000e-01 : f32
    %61 = vector.broadcast %cst_22 : f32 to vector<8x16xf32>
    %62 = arith.mulf %60, %61 : vector<8x16xf32>
    %63 = vector.extract_strided_slice %20 {offsets = [8, 0], sizes = [8, 16], strides = [1, 1]} : vector<16x32xf32> to vector<8x16xf32>
    %64 = vector.extract_strided_slice %24 {offsets = [8, 0], sizes = [8, 16], strides = [1, 1]} : vector<16x32xf32> to vector<8x16xf32>
    %cst_23 = arith.constant dense<0.000000e+00> : vector<8x8xf32>
    %65 = tpu.matmul %62, %63, %cst_23 {dimension_numbers = #tpu.dot_dimension_numbers<[1], [1], [0], [0], [0, 0, 1, 0], [], []>} : vector<8x16xf32>, vector<8x16xf32>, vector<8x8xf32> -> vector<8x8xf32>
    %cst_24 = arith.constant dense<0xFF800000> : vector<8xf32>
    %66 = vector.multi_reduction <maximumf>, %65, %cst_24 [1] : vector<8x8xf32> to vector<8xf32>
    %67 = vector.shape_cast %66 : vector<8xf32> to vector<8x1xf32>
    %68 = vector.broadcast %67 : vector<8x1xf32> to vector<8x8xf32>
    %69 = arith.subf %65, %68 : vector<8x8xf32>
    %70 = math.exp %69 : vector<8x8xf32>
    %cst_25 = arith.constant dense<0.000000e+00> : vector<8xf32>
    %71 = vector.multi_reduction <add>, %70, %cst_25 [1] : vector<8x8xf32> to vector<8xf32>
    %72 = vector.shape_cast %71 : vector<8xf32> to vector<8x1xf32>
    %73 = vector.broadcast %72 : vector<8x1xf32> to vector<8x8xf32>
    %74 = arith.divf %70, %73 : vector<8x8xf32>
    %cst_26 = arith.constant dense<0.000000e+00> : vector<8x16xf32>
    %75 = tpu.matmul %74, %64, %cst_26 {dimension_numbers = #tpu.dot_dimension_numbers<[1], [0], [0], [1], [0, 0, 1, 1], [], []>} : vector<8x8xf32>, vector<8x16xf32>, vector<8x16xf32> -> vector<8x16xf32>
    %76 = vector.extract_strided_slice %16 {offsets = [8, 16], sizes = [8, 16], strides = [1, 1]} : vector<16x32xf32> to vector<8x16xf32>
    %cst_27 = arith.constant 2.500000e-01 : f32
    %77 = vector.broadcast %cst_27 : f32 to vector<8x16xf32>
    %78 = arith.mulf %76, %77 : vector<8x16xf32>
    %79 = vector.extract_strided_slice %20 {offsets = [8, 16], sizes = [8, 16], strides = [1, 1]} : vector<16x32xf32> to vector<8x16xf32>
    %80 = vector.extract_strided_slice %24 {offsets = [8, 16], sizes = [8, 16], strides = [1, 1]} : vector<16x32xf32> to vector<8x16xf32>
    %cst_28 = arith.constant dense<0.000000e+00> : vector<8x8xf32>
    %81 = tpu.matmul %78, %79, %cst_28 {dimension_numbers = #tpu.dot_dimension_numbers<[1], [1], [0], [0], [0, 0, 1, 0], [], []>} : vector<8x16xf32>, vector<8x16xf32>, vector<8x8xf32> -> vector<8x8xf32>
    %cst_29 = arith.constant dense<0xFF800000> : vector<8xf32>
    %82 = vector.multi_reduction <maximumf>, %81, %cst_29 [1] : vector<8x8xf32> to vector<8xf32>
    %83 = vector.shape_cast %82 : vector<8xf32> to vector<8x1xf32>
    %84 = vector.broadcast %83 : vector<8x1xf32> to vector<8x8xf32>
    %85 = arith.subf %81, %84 : vector<8x8xf32>
    %86 = math.exp %85 : vector<8x8xf32>
    %cst_30 = arith.constant dense<0.000000e+00> : vector<8xf32>
    %87 = vector.multi_reduction <add>, %86, %cst_30 [1] : vector<8x8xf32> to vector<8xf32>
    %88 = vector.shape_cast %87 : vector<8xf32> to vector<8x1xf32>
    %89 = vector.broadcast %88 : vector<8x1xf32> to vector<8x8xf32>
    %90 = arith.divf %86, %89 : vector<8x8xf32>
    %cst_31 = arith.constant dense<0.000000e+00> : vector<8x16xf32>
    %91 = tpu.matmul %90, %80, %cst_31 {dimension_numbers = #tpu.dot_dimension_numbers<[1], [0], [0], [1], [0, 0, 1, 1], [], []>} : vector<8x8xf32>, vector<8x16xf32>, vector<8x16xf32> -> vector<8x16xf32>
    %92 = tpu.concatenate %75, %91 in 1 : vector<8x16xf32>, vector<8x16xf32> -> vector<8x32xf32>
    %93 = tpu.concatenate %59, %92 in 0 : vector<8x32xf32>, vector<8x32xf32> -> vector<16x32xf32>
    %cst_32 = arith.constant dense<0.000000e+00> : vector<16x32xf32>
    %94 = tpu.matmul %93, %25, %cst_32 {dimension_numbers = #tpu.dot_dimension_numbers<[1], [0], [0], [1], [0, 0, 1, 1], [], []>} : vector<16x32xf32>, vector<32x32xf32>, vector<16x32xf32> -> vector<16x32xf32>
    %95 = vector.broadcast %26 : vector<1x32xf32> to vector<16x32xf32>
    %96 = arith.addf %94, %95 : vector<16x32xf32>
    %97 = arith.addf %10, %96 : vector<16x32xf32>
    %98 = vector.extract_strided_slice %6 {offsets = [4, 0], sizes = [1, 32], strides = [1, 1]} : vector<26x32xf32> to vector<1x32xf32>
    %99 = vector.extract_strided_slice %6 {offsets = [5, 0], sizes = [1, 32], strides = [1, 1]} : vector<26x32xf32> to vector<1x32xf32>
    %cst_33 = arith.constant dense<0.000000e+00> : vector<16xf32>
    %100 = vector.multi_reduction <add>, %97, %cst_33 [1] : vector<16x32xf32> to vector<16xf32>
    %101 = vector.shape_cast %100 : vector<16xf32> to vector<16x1xf32>
    %cst_34 = arith.constant 3.200000e+01 : f32
    %102 = vector.broadcast %cst_34 : f32 to vector<16x1xf32>
    %103 = arith.divf %101, %102 : vector<16x1xf32>
    %104 = vector.broadcast %103 : vector<16x1xf32> to vector<16x32xf32>
    %105 = arith.subf %97, %104 : vector<16x32xf32>
    %106 = arith.mulf %105, %105 : vector<16x32xf32>
    %cst_35 = arith.constant dense<0.000000e+00> : vector<16xf32>
    %107 = vector.multi_reduction <add>, %106, %cst_35 [1] : vector<16x32xf32> to vector<16xf32>
    %108 = vector.shape_cast %107 : vector<16xf32> to vector<16x1xf32>
    %cst_36 = arith.constant 3.200000e+01 : f32
    %109 = vector.broadcast %cst_36 : f32 to vector<16x1xf32>
    %110 = arith.divf %108, %109 : vector<16x1xf32>
    %111 = vector.broadcast %103 : vector<16x1xf32> to vector<16x32xf32>
    %112 = arith.subf %97, %111 : vector<16x32xf32>
    %cst_37 = arith.constant 9.99999974E-6 : f32
    %113 = vector.broadcast %cst_37 : f32 to vector<16x1xf32>
    %114 = arith.addf %110, %113 : vector<16x1xf32>
    %115 = math.rsqrt %114 : vector<16x1xf32>
    %116 = vector.broadcast %115 : vector<16x1xf32> to vector<16x32xf32>
    %117 = arith.mulf %112, %116 : vector<16x32xf32>
    %118 = vector.broadcast %98 : vector<1x32xf32> to vector<16x32xf32>
    %119 = arith.mulf %117, %118 : vector<16x32xf32>
    %120 = vector.broadcast %99 : vector<1x32xf32> to vector<16x32xf32>
    %121 = arith.addf %119, %120 : vector<16x32xf32>
    %122 = vector.extract_strided_slice %4 {offsets = [0, 128], sizes = [32, 128], strides = [1, 1]} : vector<32x576xf32> to vector<32x128xf32>
    %123 = vector.extract_strided_slice %6 {offsets = [6, 0], sizes = [4, 32], strides = [1, 1]} : vector<26x32xf32> to vector<4x32xf32>
    %124 = vector.extract_strided_slice %122 {offsets = [0, 0], sizes = [32, 64], strides = [1, 1]} : vector<32x128xf32> to vector<32x64xf32>
    %cst_38 = arith.constant dense<0.000000e+00> : vector<16x64xf32>
    %125 = tpu.matmul %121, %124, %cst_38 {dimension_numbers = #tpu.dot_dimension_numbers<[1], [0], [0], [1], [0, 0, 1, 1], [], []>} : vector<16x32xf32>, vector<32x64xf32>, vector<16x64xf32> -> vector<16x64xf32>
    %126 = vector.extract_strided_slice %125 {offsets = [0, 0], sizes = [16, 32], strides = [1, 1]} : vector<16x64xf32> to vector<16x32xf32>
    %127 = vector.extract_strided_slice %123 {offsets = [0, 0], sizes = [1, 32], strides = [1, 1]} : vector<4x32xf32> to vector<1x32xf32>
    %128 = vector.broadcast %127 : vector<1x32xf32> to vector<16x32xf32>
    %129 = arith.addf %126, %128 : vector<16x32xf32>
    %130 = vector.extract_strided_slice %125 {offsets = [0, 32], sizes = [16, 32], strides = [1, 1]} : vector<16x64xf32> to vector<16x32xf32>
    %131 = vector.extract_strided_slice %123 {offsets = [1, 0], sizes = [1, 32], strides = [1, 1]} : vector<4x32xf32> to vector<1x32xf32>
    %132 = vector.broadcast %131 : vector<1x32xf32> to vector<16x32xf32>
    %133 = arith.addf %130, %132 : vector<16x32xf32>
    %134 = arith.negf %133 : vector<16x32xf32>
    %135 = math.exp %134 : vector<16x32xf32>
    %cst_39 = arith.constant 1.000000e+00 : f32
    %136 = vector.broadcast %cst_39 : f32 to vector<16x32xf32>
    %137 = arith.addf %136, %135 : vector<16x32xf32>
    %138 = arith.divf %136, %137 : vector<16x32xf32>
    %139 = arith.mulf %129, %138 : vector<16x32xf32>
    %140 = vector.extract_strided_slice %122 {offsets = [0, 64], sizes = [32, 64], strides = [1, 1]} : vector<32x128xf32> to vector<32x64xf32>
    %cst_40 = arith.constant dense<0.000000e+00> : vector<16x64xf32>
    %141 = tpu.matmul %139, %140, %cst_40 {dimension_numbers = #tpu.dot_dimension_numbers<[1], [0], [0], [1], [0, 0, 1, 1], [], []>} : vector<16x32xf32>, vector<32x64xf32>, vector<16x64xf32> -> vector<16x64xf32>
    %142 = vector.extract_strided_slice %141 {offsets = [0, 0], sizes = [16, 32], strides = [1, 1]} : vector<16x64xf32> to vector<16x32xf32>
    %143 = vector.extract_strided_slice %123 {offsets = [2, 0], sizes = [1, 32], strides = [1, 1]} : vector<4x32xf32> to vector<1x32xf32>
    %144 = vector.broadcast %143 : vector<1x32xf32> to vector<16x32xf32>
    %145 = arith.addf %142, %144 : vector<16x32xf32>
    %146 = vector.extract_strided_slice %141 {offsets = [0, 32], sizes = [16, 32], strides = [1, 1]} : vector<16x64xf32> to vector<16x32xf32>
    %147 = vector.extract_strided_slice %123 {offsets = [3, 0], sizes = [1, 32], strides = [1, 1]} : vector<4x32xf32> to vector<1x32xf32>
    %148 = vector.broadcast %147 : vector<1x32xf32> to vector<16x32xf32>
    %149 = arith.addf %146, %148 : vector<16x32xf32>
    %150 = arith.negf %149 : vector<16x32xf32>
    %151 = math.exp %150 : vector<16x32xf32>
    %cst_41 = arith.constant 1.000000e+00 : f32
    %152 = vector.broadcast %cst_41 : f32 to vector<16x32xf32>
    %153 = arith.addf %152, %151 : vector<16x32xf32>
    %154 = arith.divf %152, %153 : vector<16x32xf32>
    %155 = arith.mulf %145, %154 : vector<16x32xf32>
    %156 = arith.addf %155, %121 : vector<16x32xf32>
    %cst_42 = arith.constant 0.000000e+00 : f32
    %157 = vector.broadcast %cst_42 : f32 to vector<16x32xf32>
    %158 = arith.maximumf %156, %157 : vector<16x32xf32>
    %159 = arith.addf %121, %158 : vector<16x32xf32>
    %160 = vector.extract_strided_slice %6 {offsets = [10, 0], sizes = [1, 32], strides = [1, 1]} : vector<26x32xf32> to vector<1x32xf32>
    %161 = vector.extract_strided_slice %6 {offsets = [11, 0], sizes = [1, 32], strides = [1, 1]} : vector<26x32xf32> to vector<1x32xf32>
    %cst_43 = arith.constant dense<0.000000e+00> : vector<16xf32>
    %162 = vector.multi_reduction <add>, %159, %cst_43 [1] : vector<16x32xf32> to vector<16xf32>
    %163 = vector.shape_cast %162 : vector<16xf32> to vector<16x1xf32>
    %cst_44 = arith.constant 3.200000e+01 : f32
    %164 = vector.broadcast %cst_44 : f32 to vector<16x1xf32>
    %165 = arith.divf %163, %164 : vector<16x1xf32>
    %166 = vector.broadcast %165 : vector<16x1xf32> to vector<16x32xf32>
    %167 = arith.subf %159, %166 : vector<16x32xf32>
    %168 = arith.mulf %167, %167 : vector<16x32xf32>
    %cst_45 = arith.constant dense<0.000000e+00> : vector<16xf32>
    %169 = vector.multi_reduction <add>, %168, %cst_45 [1] : vector<16x32xf32> to vector<16xf32>
    %170 = vector.shape_cast %169 : vector<16xf32> to vector<16x1xf32>
    %cst_46 = arith.constant 3.200000e+01 : f32
    %171 = vector.broadcast %cst_46 : f32 to vector<16x1xf32>
    %172 = arith.divf %170, %171 : vector<16x1xf32>
    %173 = vector.broadcast %165 : vector<16x1xf32> to vector<16x32xf32>
    %174 = arith.subf %159, %173 : vector<16x32xf32>
    %cst_47 = arith.constant 9.99999974E-6 : f32
    %175 = vector.broadcast %cst_47 : f32 to vector<16x1xf32>
    %176 = arith.addf %172, %175 : vector<16x1xf32>
    %177 = math.rsqrt %176 : vector<16x1xf32>
    %178 = vector.broadcast %177 : vector<16x1xf32> to vector<16x32xf32>
    %179 = arith.mulf %174, %178 : vector<16x32xf32>
    %180 = vector.broadcast %160 : vector<1x32xf32> to vector<16x32xf32>
    %181 = arith.mulf %179, %180 : vector<16x32xf32>
    %182 = vector.broadcast %161 : vector<1x32xf32> to vector<16x32xf32>
    %183 = arith.addf %181, %182 : vector<16x32xf32>
    %184 = vector.extract_strided_slice %4 {offsets = [0, 256], sizes = [32, 32], strides = [1, 1]} : vector<32x576xf32> to vector<32x32xf32>
    %cst_48 = arith.constant dense<0.000000e+00> : vector<16x32xf32>
    %185 = tpu.matmul %183, %184, %cst_48 {dimension_numbers = #tpu.dot_dimension_numbers<[1], [0], [0], [1], [0, 0, 1, 1], [], []>} : vector<16x32xf32>, vector<32x32xf32>, vector<16x32xf32> -> vector<16x32xf32>
    %186 = vector.extract_strided_slice %6 {offsets = [12, 0], sizes = [1, 32], strides = [1, 1]} : vector<26x32xf32> to vector<1x32xf32>
    %187 = vector.broadcast %186 : vector<1x32xf32> to vector<16x32xf32>
    %188 = arith.addf %185, %187 : vector<16x32xf32>
    %189 = vector.extract_strided_slice %4 {offsets = [0, 288], sizes = [32, 64], strides = [1, 1]} : vector<32x576xf32> to vector<32x64xf32>
    %cst_49 = arith.constant dense<0.000000e+00> : vector<16x64xf32>
    %190 = tpu.matmul %7, %189, %cst_49 {dimension_numbers = #tpu.dot_dimension_numbers<[1], [0], [0], [1], [0, 0, 1, 1], [], []>} : vector<16x32xf32>, vector<32x64xf32>, vector<16x64xf32> -> vector<16x64xf32>
    %191 = vector.extract_strided_slice %190 {offsets = [0, 0], sizes = [16, 32], strides = [1, 1]} : vector<16x64xf32> to vector<16x32xf32>
    %192 = vector.extract_strided_slice %6 {offsets = [13, 0], sizes = [1, 32], strides = [1, 1]} : vector<26x32xf32> to vector<1x32xf32>
    %193 = vector.broadcast %192 : vector<1x32xf32> to vector<16x32xf32>
    %194 = arith.addf %191, %193 : vector<16x32xf32>
    %195 = vector.extract_strided_slice %190 {offsets = [0, 32], sizes = [16, 32], strides = [1, 1]} : vector<16x64xf32> to vector<16x32xf32>
    %196 = vector.extract_strided_slice %6 {offsets = [14, 0], sizes = [1, 32], strides = [1, 1]} : vector<26x32xf32> to vector<1x32xf32>
    %197 = vector.broadcast %196 : vector<1x32xf32> to vector<16x32xf32>
    %198 = arith.addf %195, %197 : vector<16x32xf32>
    %199 = vector.extract_strided_slice %4 {offsets = [0, 352], sizes = [32, 32], strides = [1, 1]} : vector<32x576xf32> to vector<32x32xf32>
    %200 = vector.extract_strided_slice %6 {offsets = [15, 0], sizes = [1, 32], strides = [1, 1]} : vector<26x32xf32> to vector<1x32xf32>
    %201 = vector.extract_strided_slice %188 {offsets = [0, 0], sizes = [8, 16], strides = [1, 1]} : vector<16x32xf32> to vector<8x16xf32>
    %cst_50 = arith.constant 2.500000e-01 : f32
    %202 = vector.broadcast %cst_50 : f32 to vector<8x16xf32>
    %203 = arith.mulf %201, %202 : vector<8x16xf32>
    %204 = vector.extract_strided_slice %194 {offsets = [0, 0], sizes = [8, 16], strides = [1, 1]} : vector<16x32xf32> to vector<8x16xf32>
    %205 = vector.extract_strided_slice %198 {offsets = [0, 0], sizes = [8, 16], strides = [1, 1]} : vector<16x32xf32> to vector<8x16xf32>
    %cst_51 = arith.constant dense<0.000000e+00> : vector<8x8xf32>
    %206 = tpu.matmul %203, %204, %cst_51 {dimension_numbers = #tpu.dot_dimension_numbers<[1], [1], [0], [0], [0, 0, 1, 0], [], []>} : vector<8x16xf32>, vector<8x16xf32>, vector<8x8xf32> -> vector<8x8xf32>
    %cst_52 = arith.constant dense<0xFF800000> : vector<8xf32>
    %207 = vector.multi_reduction <maximumf>, %206, %cst_52 [1] : vector<8x8xf32> to vector<8xf32>
    %208 = vector.shape_cast %207 : vector<8xf32> to vector<8x1xf32>
    %209 = vector.broadcast %208 : vector<8x1xf32> to vector<8x8xf32>
    %210 = arith.subf %206, %209 : vector<8x8xf32>
    %211 = math.exp %210 : vector<8x8xf32>
    %cst_53 = arith.constant dense<0.000000e+00> : vector<8xf32>
    %212 = vector.multi_reduction <add>, %211, %cst_53 [1] : vector<8x8xf32> to vector<8xf32>
    %213 = vector.shape_cast %212 : vector<8xf32> to vector<8x1xf32>
    %214 = vector.broadcast %213 : vector<8x1xf32> to vector<8x8xf32>
    %215 = arith.divf %211, %214 : vector<8x8xf32>
    %cst_54 = arith.constant dense<0.000000e+00> : vector<8x16xf32>
    %216 = tpu.matmul %215, %205, %cst_54 {dimension_numbers = #tpu.dot_dimension_numbers<[1], [0], [0], [1], [0, 0, 1, 1], [], []>} : vector<8x8xf32>, vector<8x16xf32>, vector<8x16xf32> -> vector<8x16xf32>
    %217 = vector.extract_strided_slice %188 {offsets = [0, 16], sizes = [8, 16], strides = [1, 1]} : vector<16x32xf32> to vector<8x16xf32>
    %cst_55 = arith.constant 2.500000e-01 : f32
    %218 = vector.broadcast %cst_55 : f32 to vector<8x16xf32>
    %219 = arith.mulf %217, %218 : vector<8x16xf32>
    %220 = vector.extract_strided_slice %194 {offsets = [0, 16], sizes = [8, 16], strides = [1, 1]} : vector<16x32xf32> to vector<8x16xf32>
    %221 = vector.extract_strided_slice %198 {offsets = [0, 16], sizes = [8, 16], strides = [1, 1]} : vector<16x32xf32> to vector<8x16xf32>
    %cst_56 = arith.constant dense<0.000000e+00> : vector<8x8xf32>
    %222 = tpu.matmul %219, %220, %cst_56 {dimension_numbers = #tpu.dot_dimension_numbers<[1], [1], [0], [0], [0, 0, 1, 0], [], []>} : vector<8x16xf32>, vector<8x16xf32>, vector<8x8xf32> -> vector<8x8xf32>
    %cst_57 = arith.constant dense<0xFF800000> : vector<8xf32>
    %223 = vector.multi_reduction <maximumf>, %222, %cst_57 [1] : vector<8x8xf32> to vector<8xf32>
    %224 = vector.shape_cast %223 : vector<8xf32> to vector<8x1xf32>
    %225 = vector.broadcast %224 : vector<8x1xf32> to vector<8x8xf32>
    %226 = arith.subf %222, %225 : vector<8x8xf32>
    %227 = math.exp %226 : vector<8x8xf32>
    %cst_58 = arith.constant dense<0.000000e+00> : vector<8xf32>
    %228 = vector.multi_reduction <add>, %227, %cst_58 [1] : vector<8x8xf32> to vector<8xf32>
    %229 = vector.shape_cast %228 : vector<8xf32> to vector<8x1xf32>
    %230 = vector.broadcast %229 : vector<8x1xf32> to vector<8x8xf32>
    %231 = arith.divf %227, %230 : vector<8x8xf32>
    %cst_59 = arith.constant dense<0.000000e+00> : vector<8x16xf32>
    %232 = tpu.matmul %231, %221, %cst_59 {dimension_numbers = #tpu.dot_dimension_numbers<[1], [0], [0], [1], [0, 0, 1, 1], [], []>} : vector<8x8xf32>, vector<8x16xf32>, vector<8x16xf32> -> vector<8x16xf32>
    %233 = tpu.concatenate %216, %232 in 1 : vector<8x16xf32>, vector<8x16xf32> -> vector<8x32xf32>
    %234 = vector.extract_strided_slice %188 {offsets = [8, 0], sizes = [8, 16], strides = [1, 1]} : vector<16x32xf32> to vector<8x16xf32>
    %cst_60 = arith.constant 2.500000e-01 : f32
    %235 = vector.broadcast %cst_60 : f32 to vector<8x16xf32>
    %236 = arith.mulf %234, %235 : vector<8x16xf32>
    %237 = vector.extract_strided_slice %194 {offsets = [8, 0], sizes = [8, 16], strides = [1, 1]} : vector<16x32xf32> to vector<8x16xf32>
    %238 = vector.extract_strided_slice %198 {offsets = [8, 0], sizes = [8, 16], strides = [1, 1]} : vector<16x32xf32> to vector<8x16xf32>
    %cst_61 = arith.constant dense<0.000000e+00> : vector<8x8xf32>
    %239 = tpu.matmul %236, %237, %cst_61 {dimension_numbers = #tpu.dot_dimension_numbers<[1], [1], [0], [0], [0, 0, 1, 0], [], []>} : vector<8x16xf32>, vector<8x16xf32>, vector<8x8xf32> -> vector<8x8xf32>
    %cst_62 = arith.constant dense<0xFF800000> : vector<8xf32>
    %240 = vector.multi_reduction <maximumf>, %239, %cst_62 [1] : vector<8x8xf32> to vector<8xf32>
    %241 = vector.shape_cast %240 : vector<8xf32> to vector<8x1xf32>
    %242 = vector.broadcast %241 : vector<8x1xf32> to vector<8x8xf32>
    %243 = arith.subf %239, %242 : vector<8x8xf32>
    %244 = math.exp %243 : vector<8x8xf32>
    %cst_63 = arith.constant dense<0.000000e+00> : vector<8xf32>
    %245 = vector.multi_reduction <add>, %244, %cst_63 [1] : vector<8x8xf32> to vector<8xf32>
    %246 = vector.shape_cast %245 : vector<8xf32> to vector<8x1xf32>
    %247 = vector.broadcast %246 : vector<8x1xf32> to vector<8x8xf32>
    %248 = arith.divf %244, %247 : vector<8x8xf32>
    %cst_64 = arith.constant dense<0.000000e+00> : vector<8x16xf32>
    %249 = tpu.matmul %248, %238, %cst_64 {dimension_numbers = #tpu.dot_dimension_numbers<[1], [0], [0], [1], [0, 0, 1, 1], [], []>} : vector<8x8xf32>, vector<8x16xf32>, vector<8x16xf32> -> vector<8x16xf32>
    %250 = vector.extract_strided_slice %188 {offsets = [8, 16], sizes = [8, 16], strides = [1, 1]} : vector<16x32xf32> to vector<8x16xf32>
    %cst_65 = arith.constant 2.500000e-01 : f32
    %251 = vector.broadcast %cst_65 : f32 to vector<8x16xf32>
    %252 = arith.mulf %250, %251 : vector<8x16xf32>
    %253 = vector.extract_strided_slice %194 {offsets = [8, 16], sizes = [8, 16], strides = [1, 1]} : vector<16x32xf32> to vector<8x16xf32>
    %254 = vector.extract_strided_slice %198 {offsets = [8, 16], sizes = [8, 16], strides = [1, 1]} : vector<16x32xf32> to vector<8x16xf32>
    %cst_66 = arith.constant dense<0.000000e+00> : vector<8x8xf32>
    %255 = tpu.matmul %252, %253, %cst_66 {dimension_numbers = #tpu.dot_dimension_numbers<[1], [1], [0], [0], [0, 0, 1, 0], [], []>} : vector<8x16xf32>, vector<8x16xf32>, vector<8x8xf32> -> vector<8x8xf32>
    %cst_67 = arith.constant dense<0xFF800000> : vector<8xf32>
    %256 = vector.multi_reduction <maximumf>, %255, %cst_67 [1] : vector<8x8xf32> to vector<8xf32>
    %257 = vector.shape_cast %256 : vector<8xf32> to vector<8x1xf32>
    %258 = vector.broadcast %257 : vector<8x1xf32> to vector<8x8xf32>
    %259 = arith.subf %255, %258 : vector<8x8xf32>
    %260 = math.exp %259 : vector<8x8xf32>
    %cst_68 = arith.constant dense<0.000000e+00> : vector<8xf32>
    %261 = vector.multi_reduction <add>, %260, %cst_68 [1] : vector<8x8xf32> to vector<8xf32>
    %262 = vector.shape_cast %261 : vector<8xf32> to vector<8x1xf32>
    %263 = vector.broadcast %262 : vector<8x1xf32> to vector<8x8xf32>
    %264 = arith.divf %260, %263 : vector<8x8xf32>
    %cst_69 = arith.constant dense<0.000000e+00> : vector<8x16xf32>
    %265 = tpu.matmul %264, %254, %cst_69 {dimension_numbers = #tpu.dot_dimension_numbers<[1], [0], [0], [1], [0, 0, 1, 1], [], []>} : vector<8x8xf32>, vector<8x16xf32>, vector<8x16xf32> -> vector<8x16xf32>
    %266 = tpu.concatenate %249, %265 in 1 : vector<8x16xf32>, vector<8x16xf32> -> vector<8x32xf32>
    %267 = tpu.concatenate %233, %266 in 0 : vector<8x32xf32>, vector<8x32xf32> -> vector<16x32xf32>
    %cst_70 = arith.constant dense<0.000000e+00> : vector<16x32xf32>
    %268 = tpu.matmul %267, %199, %cst_70 {dimension_numbers = #tpu.dot_dimension_numbers<[1], [0], [0], [1], [0, 0, 1, 1], [], []>} : vector<16x32xf32>, vector<32x32xf32>, vector<16x32xf32> -> vector<16x32xf32>
    %269 = vector.broadcast %200 : vector<1x32xf32> to vector<16x32xf32>
    %270 = arith.addf %268, %269 : vector<16x32xf32>
    %271 = arith.addf %183, %270 : vector<16x32xf32>
    %272 = vector.extract_strided_slice %6 {offsets = [16, 0], sizes = [1, 32], strides = [1, 1]} : vector<26x32xf32> to vector<1x32xf32>
    %273 = vector.extract_strided_slice %6 {offsets = [17, 0], sizes = [1, 32], strides = [1, 1]} : vector<26x32xf32> to vector<1x32xf32>
    %cst_71 = arith.constant dense<0.000000e+00> : vector<16xf32>
    %274 = vector.multi_reduction <add>, %271, %cst_71 [1] : vector<16x32xf32> to vector<16xf32>
    %275 = vector.shape_cast %274 : vector<16xf32> to vector<16x1xf32>
    %cst_72 = arith.constant 3.200000e+01 : f32
    %276 = vector.broadcast %cst_72 : f32 to vector<16x1xf32>
    %277 = arith.divf %275, %276 : vector<16x1xf32>
    %278 = vector.broadcast %277 : vector<16x1xf32> to vector<16x32xf32>
    %279 = arith.subf %271, %278 : vector<16x32xf32>
    %280 = arith.mulf %279, %279 : vector<16x32xf32>
    %cst_73 = arith.constant dense<0.000000e+00> : vector<16xf32>
    %281 = vector.multi_reduction <add>, %280, %cst_73 [1] : vector<16x32xf32> to vector<16xf32>
    %282 = vector.shape_cast %281 : vector<16xf32> to vector<16x1xf32>
    %cst_74 = arith.constant 3.200000e+01 : f32
    %283 = vector.broadcast %cst_74 : f32 to vector<16x1xf32>
    %284 = arith.divf %282, %283 : vector<16x1xf32>
    %285 = vector.broadcast %277 : vector<16x1xf32> to vector<16x32xf32>
    %286 = arith.subf %271, %285 : vector<16x32xf32>
    %cst_75 = arith.constant 9.99999974E-6 : f32
    %287 = vector.broadcast %cst_75 : f32 to vector<16x1xf32>
    %288 = arith.addf %284, %287 : vector<16x1xf32>
    %289 = math.rsqrt %288 : vector<16x1xf32>
    %290 = vector.broadcast %289 : vector<16x1xf32> to vector<16x32xf32>
    %291 = arith.mulf %286, %290 : vector<16x32xf32>
    %292 = vector.broadcast %272 : vector<1x32xf32> to vector<16x32xf32>
    %293 = arith.mulf %291, %292 : vector<16x32xf32>
    %294 = vector.broadcast %273 : vector<1x32xf32> to vector<16x32xf32>
    %295 = arith.addf %293, %294 : vector<16x32xf32>
    %296 = vector.extract_strided_slice %4 {offsets = [0, 384], sizes = [32, 128], strides = [1, 1]} : vector<32x576xf32> to vector<32x128xf32>
    %297 = vector.extract_strided_slice %6 {offsets = [18, 0], sizes = [4, 32], strides = [1, 1]} : vector<26x32xf32> to vector<4x32xf32>
    %298 = vector.extract_strided_slice %296 {offsets = [0, 0], sizes = [32, 64], strides = [1, 1]} : vector<32x128xf32> to vector<32x64xf32>
    %cst_76 = arith.constant dense<0.000000e+00> : vector<16x64xf32>
    %299 = tpu.matmul %295, %298, %cst_76 {dimension_numbers = #tpu.dot_dimension_numbers<[1], [0], [0], [1], [0, 0, 1, 1], [], []>} : vector<16x32xf32>, vector<32x64xf32>, vector<16x64xf32> -> vector<16x64xf32>
    %300 = vector.extract_strided_slice %299 {offsets = [0, 0], sizes = [16, 32], strides = [1, 1]} : vector<16x64xf32> to vector<16x32xf32>
    %301 = vector.extract_strided_slice %297 {offsets = [0, 0], sizes = [1, 32], strides = [1, 1]} : vector<4x32xf32> to vector<1x32xf32>
    %302 = vector.broadcast %301 : vector<1x32xf32> to vector<16x32xf32>
    %303 = arith.addf %300, %302 : vector<16x32xf32>
    %304 = vector.extract_strided_slice %299 {offsets = [0, 32], sizes = [16, 32], strides = [1, 1]} : vector<16x64xf32> to vector<16x32xf32>
    %305 = vector.extract_strided_slice %297 {offsets = [1, 0], sizes = [1, 32], strides = [1, 1]} : vector<4x32xf32> to vector<1x32xf32>
    %306 = vector.broadcast %305 : vector<1x32xf32> to vector<16x32xf32>
    %307 = arith.addf %304, %306 : vector<16x32xf32>
    %308 = arith.negf %307 : vector<16x32xf32>
    %309 = math.exp %308 : vector<16x32xf32>
    %cst_77 = arith.constant 1.000000e+00 : f32
    %310 = vector.broadcast %cst_77 : f32 to vector<16x32xf32>
    %311 = arith.addf %310, %309 : vector<16x32xf32>
    %312 = arith.divf %310, %311 : vector<16x32xf32>
    %313 = arith.mulf %303, %312 : vector<16x32xf32>
    %314 = vector.extract_strided_slice %296 {offsets = [0, 64], sizes = [32, 64], strides = [1, 1]} : vector<32x128xf32> to vector<32x64xf32>
    %cst_78 = arith.constant dense<0.000000e+00> : vector<16x64xf32>
    %315 = tpu.matmul %313, %314, %cst_78 {dimension_numbers = #tpu.dot_dimension_numbers<[1], [0], [0], [1], [0, 0, 1, 1], [], []>} : vector<16x32xf32>, vector<32x64xf32>, vector<16x64xf32> -> vector<16x64xf32>
    %316 = vector.extract_strided_slice %315 {offsets = [0, 0], sizes = [16, 32], strides = [1, 1]} : vector<16x64xf32> to vector<16x32xf32>
    %317 = vector.extract_strided_slice %297 {offsets = [2, 0], sizes = [1, 32], strides = [1, 1]} : vector<4x32xf32> to vector<1x32xf32>
    %318 = vector.broadcast %317 : vector<1x32xf32> to vector<16x32xf32>
    %319 = arith.addf %316, %318 : vector<16x32xf32>
    %320 = vector.extract_strided_slice %315 {offsets = [0, 32], sizes = [16, 32], strides = [1, 1]} : vector<16x64xf32> to vector<16x32xf32>
    %321 = vector.extract_strided_slice %297 {offsets = [3, 0], sizes = [1, 32], strides = [1, 1]} : vector<4x32xf32> to vector<1x32xf32>
    %322 = vector.broadcast %321 : vector<1x32xf32> to vector<16x32xf32>
    %323 = arith.addf %320, %322 : vector<16x32xf32>
    %324 = arith.negf %323 : vector<16x32xf32>
    %325 = math.exp %324 : vector<16x32xf32>
    %cst_79 = arith.constant 1.000000e+00 : f32
    %326 = vector.broadcast %cst_79 : f32 to vector<16x32xf32>
    %327 = arith.addf %326, %325 : vector<16x32xf32>
    %328 = arith.divf %326, %327 : vector<16x32xf32>
    %329 = arith.mulf %319, %328 : vector<16x32xf32>
    %330 = arith.addf %329, %295 : vector<16x32xf32>
    %cst_80 = arith.constant 0.000000e+00 : f32
    %331 = vector.broadcast %cst_80 : f32 to vector<16x32xf32>
    %332 = arith.maximumf %330, %331 : vector<16x32xf32>
    %333 = arith.addf %295, %332 : vector<16x32xf32>
    %334 = vector.extract_strided_slice %6 {offsets = [22, 0], sizes = [1, 32], strides = [1, 1]} : vector<26x32xf32> to vector<1x32xf32>
    %335 = vector.extract_strided_slice %6 {offsets = [23, 0], sizes = [1, 32], strides = [1, 1]} : vector<26x32xf32> to vector<1x32xf32>
    %cst_81 = arith.constant dense<0.000000e+00> : vector<16xf32>
    %336 = vector.multi_reduction <add>, %333, %cst_81 [1] : vector<16x32xf32> to vector<16xf32>
    %337 = vector.shape_cast %336 : vector<16xf32> to vector<16x1xf32>
    %cst_82 = arith.constant 3.200000e+01 : f32
    %338 = vector.broadcast %cst_82 : f32 to vector<16x1xf32>
    %339 = arith.divf %337, %338 : vector<16x1xf32>
    %340 = vector.broadcast %339 : vector<16x1xf32> to vector<16x32xf32>
    %341 = arith.subf %333, %340 : vector<16x32xf32>
    %342 = arith.mulf %341, %341 : vector<16x32xf32>
    %cst_83 = arith.constant dense<0.000000e+00> : vector<16xf32>
    %343 = vector.multi_reduction <add>, %342, %cst_83 [1] : vector<16x32xf32> to vector<16xf32>
    %344 = vector.shape_cast %343 : vector<16xf32> to vector<16x1xf32>
    %cst_84 = arith.constant 3.200000e+01 : f32
    %345 = vector.broadcast %cst_84 : f32 to vector<16x1xf32>
    %346 = arith.divf %344, %345 : vector<16x1xf32>
    %347 = vector.broadcast %339 : vector<16x1xf32> to vector<16x32xf32>
    %348 = arith.subf %333, %347 : vector<16x32xf32>
    %cst_85 = arith.constant 9.99999974E-6 : f32
    %349 = vector.broadcast %cst_85 : f32 to vector<16x1xf32>
    %350 = arith.addf %346, %349 : vector<16x1xf32>
    %351 = math.rsqrt %350 : vector<16x1xf32>
    %352 = vector.broadcast %351 : vector<16x1xf32> to vector<16x32xf32>
    %353 = arith.mulf %348, %352 : vector<16x32xf32>
    %354 = vector.broadcast %334 : vector<1x32xf32> to vector<16x32xf32>
    %355 = arith.mulf %353, %354 : vector<16x32xf32>
    %356 = vector.broadcast %335 : vector<1x32xf32> to vector<16x32xf32>
    %357 = arith.addf %355, %356 : vector<16x32xf32>
    %358 = vector.extract_strided_slice %4 {offsets = [0, 512], sizes = [32, 32], strides = [1, 1]} : vector<32x576xf32> to vector<32x32xf32>
    %cst_86 = arith.constant dense<0.000000e+00> : vector<16x32xf32>
    %359 = tpu.matmul %357, %358, %cst_86 {dimension_numbers = #tpu.dot_dimension_numbers<[1], [0], [0], [1], [0, 0, 1, 1], [], []>} : vector<16x32xf32>, vector<32x32xf32>, vector<16x32xf32> -> vector<16x32xf32>
    %360 = vector.extract_strided_slice %6 {offsets = [24, 0], sizes = [1, 32], strides = [1, 1]} : vector<26x32xf32> to vector<1x32xf32>
    %361 = vector.broadcast %360 : vector<1x32xf32> to vector<16x32xf32>
    %362 = arith.addf %359, %361 : vector<16x32xf32>
    %cst_87 = arith.constant 0.000000e+00 : f32
    %363 = vector.broadcast %cst_87 : f32 to vector<16x32xf32>
    %364 = arith.maximumf %362, %363 : vector<16x32xf32>
    %365 = vector.extract_strided_slice %4 {offsets = [0, 544], sizes = [32, 32], strides = [1, 1]} : vector<32x576xf32> to vector<32x32xf32>
    %cst_88 = arith.constant dense<0.000000e+00> : vector<16x32xf32>
    %366 = tpu.matmul %364, %365, %cst_88 {dimension_numbers = #tpu.dot_dimension_numbers<[1], [0], [0], [1], [0, 0, 1, 1], [], []>} : vector<16x32xf32>, vector<32x32xf32>, vector<16x32xf32> -> vector<16x32xf32>
    %367 = vector.extract_strided_slice %6 {offsets = [25, 0], sizes = [1, 32], strides = [1, 1]} : vector<26x32xf32> to vector<1x32xf32>
    %368 = vector.broadcast %367 : vector<1x32xf32> to vector<16x32xf32>
    %369 = arith.addf %366, %368 : vector<16x32xf32>
    %c0_89 = arith.constant 0 : index
    %c0_90 = arith.constant 0 : index
    %370 = vector.load %arg11[%c0_89, %c0_90] : memref<16x32xf32, #tpu.memory_space<vmem>>, vector<16x32xf32>
    tpu.vector_store %arg11[%c0_89, %c0_90], %369 {strides = array<i32>} : memref<16x32xf32, #tpu.memory_space<vmem>>, vector<16x32xf32>,
    %c1_i32 = arith.constant 1 : i32
    %371 = arith.cmpi eq, %arg0, %c1_i32 : i32
    %372 = arith.extui %371 : i1 to i32
    %c0_i32_91 = arith.constant 0 : i32
    %373 = arith.cmpi ne, %372, %c0_i32_91 : i32
    scf.if %373 {
      %c0_92 = arith.constant 0 : index
      %c0_93 = arith.constant 0 : index
      %374 = vector.load %arg8[%c0_92, %c0_93] : memref<32x64xf32, #tpu.memory_space<vmem>>, vector<32x32xf32>
      %cst_94 = arith.constant dense<0.000000e+00> : vector<16x32xf32>
      %375 = tpu.matmul %369, %374, %cst_94 {dimension_numbers = #tpu.dot_dimension_numbers<[1], [0], [0], [1], [0, 0, 1, 1], [], []>} : vector<16x32xf32>, vector<32x32xf32>, vector<16x32xf32> -> vector<16x32xf32>
      %c0_95 = arith.constant 0 : index
      %c0_96 = arith.constant 0 : index
      %376 = vector.load %arg9[%c0_95, %c0_96] : memref<2x32xf32, #tpu.memory_space<vmem>>, vector<1x32xf32>
      %377 = vector.broadcast %376 : vector<1x32xf32> to vector<16x32xf32>
      %378 = arith.addf %375, %377 : vector<16x32xf32>
      %cst_97 = arith.constant 0.000000e+00 : f32
      %379 = vector.broadcast %cst_97 : f32 to vector<16x32xf32>
      %380 = arith.maximumf %378, %379 : vector<16x32xf32>
      %c0_98 = arith.constant 0 : index
      %c32 = arith.constant 32 : index
      %381 = vector.load %arg8[%c0_98, %c32] : memref<32x64xf32, #tpu.memory_space<vmem>>, vector<32x32xf32>
      %cst_99 = arith.constant dense<0.000000e+00> : vector<16x32xf32>
      %382 = tpu.matmul %380, %381, %cst_99 {dimension_numbers = #tpu.dot_dimension_numbers<[1], [0], [0], [1], [0, 0, 1, 1], [], []>} : vector<16x32xf32>, vector<32x32xf32>, vector<16x32xf32> -> vector<16x32xf32>
      %c1 = arith.constant 1 : index
      %c0_100 = arith.constant 0 : index
      %383 = vector.load %arg9[%c1, %c0_100] : memref<2x32xf32, #tpu.memory_space<vmem>>, vector<1x32xf32>
      %384 = vector.broadcast %383 : vector<1x32xf32> to vector<16x32xf32>
      %385 = arith.addf %382, %384 : vector<16x32xf32>
      %c0_101 = arith.constant 0 : index
      %c0_102 = arith.constant 0 : index
      %386 = vector.load %arg10[%c0_101, %c0_102] : memref<16x32xf32, #tpu.memory_space<vmem>>, vector<16x32xf32>
      tpu.vector_store %arg10[%c0_101, %c0_102], %385 {strides = array<i32>} : memref<16x32xf32, #tpu.memory_space<vmem>>, vector<16x32xf32>,
    } else {
    }
    return
  }
  func.func @transform_0(%arg0: i32) -> (i32, i32) {
    %c0_i32 = arith.constant 0 : i32
    %c0_i32_0 = arith.constant 0 : i32
    %c0_i32_1 = arith.constant 0 : i32
    return %c0_i32, %c0_i32_0 : i32, i32
  }
  func.func @transform_1(%arg0: i32) -> (i32, i32) {
    %c0_i32 = arith.constant 0 : i32
    %c0_i32_0 = arith.constant 0 : i32
    %c0_i32_1 = arith.constant 0 : i32
    return %c0_i32, %c0_i32_0 : i32, i32
  }
  func.func @transform_2(%arg0: i32) -> (i32, i32) {
    %c0_i32 = arith.constant 0 : i32
    %c0_i32_0 = arith.constant 0 : i32
    %c0_i32_1 = arith.constant 0 : i32
    return %c0_i32, %c0_i32_0 : i32, i32
  }
  func.func @transform_3(%arg0: i32) -> (i32, i32) {
    %c0_i32 = arith.constant 0 : i32
    %c0_i32_0 = arith.constant 0 : i32
    %c0_i32_1 = arith.constant 0 : i32
    return %c0_i32, %c0_i32_0 : i32, i32
  }
  func.func @transform_4(%arg0: i32) -> (i32, i32) {
    %c0_i32 = arith.constant 0 : i32
    %c0_i32_0 = arith.constant 0 : i32
    %c0_i32_1 = arith.constant 0 : i32
    return %c0_i32, %c0_i32_0 : i32, i32
  }
  func.func @transform_5(%arg0: i32) -> (i32, i32, i32) {
    %c0_i32 = arith.constant 0 : i32
    %c0_i32_0 = arith.constant 0 : i32
    %c0_i32_1 = arith.constant 0 : i32
    return %arg0, %c0_i32, %c0_i32_0 : i32, i32, i32
  }
  func.func @transform_6(%arg0: i32) -> (i32, i32, i32) {
    %c0_i32 = arith.constant 0 : i32
    %c0_i32_0 = arith.constant 0 : i32
    %c0_i32_1 = arith.constant 0 : i32
    return %arg0, %c0_i32, %c0_i32_0 : i32, i32, i32
  }
  func.func @transform_7(%arg0: i32) -> (i32, i32) {
    %c0_i32 = arith.constant 0 : i32
    %c0_i32_0 = arith.constant 0 : i32
    %c0_i32_1 = arith.constant 0 : i32
    return %c0_i32, %c0_i32_0 : i32, i32
  }
  func.func @transform_8(%arg0: i32) -> (i32, i32) {
    %c0_i32 = arith.constant 0 : i32
    %c0_i32_0 = arith.constant 0 : i32
    %c0_i32_1 = arith.constant 0 : i32
    return %c0_i32, %c0_i32_0 : i32, i32
  }
  func.func @transform_9(%arg0: i32) -> (i32, i32) {
    %c0_i32 = arith.constant 0 : i32
    %c0_i32_0 = arith.constant 0 : i32
    %c0_i32_1 = arith.constant 0 : i32
    return %c0_i32, %c0_i32_0 : i32, i32
  }
}

</mosaic_0001>

<bundles_post_ra>
// kernel: transformer_forward.2
= control target key start
LH: loop header
LB: loop body
LE: loop exit
PB: predicated region body
PF: predicated region fallthrough
CT: control target
= control target key end

     0   :  { %11 = vsyncpa [#allocation4], 0  ;;  %s2765_s0 = inlined_call_operand.vmem [shape: f32[16,4], index: 0, kind: input, shape index: {}]   ;;  %s2766_s1 = inlined_call_operand.vmem [shape: f32[16,32], index: 1, kind: input, shape index: {}]   ;;  %s2767_s2 = inlined_call_operand.vmem [shape: f32[4,32], index: 2, kind: input, shape index: {}]   ;;  %s2768_s3 = inlined_call_operand.vmem [shape: f32[3,32], index: 3, kind: input, shape index: {}]   ;;  %s2769_s4 = inlined_call_operand.hbm [shape: f32[2,32,320], index: 4, kind: input, shape index: {}]   ;;  %s2770_s5 = inlined_call_operand.vmem [shape: f32[2,14,32], index: 5, kind: input, shape index: {}]   ;;  %s2771_s6 = inlined_call_operand.vmem [shape: f32[16,32], index: 6, kind: output, shape index: {}]  }
   0x1   :  { %13 = vsyncpa [#allocation4 + $0x1], 0  ;;  %s2410_s21 = smov 0   ;;  %s2412_s22 = smov 0  }
   0x2   :  { %s2414_s23 = smov 0   ;;  %s2416_s24 = smov 0  }
   0x3 LB: > { %s2429_s25 = sadd.s32 4294967295, %s2361_s24   ;;  %s2432_s26 = sadd.s32 1, %s2361_s24   ;;  %s2361_s24 = sphi %s2416_s24, %s2778_s24   ;;  %s2357_s23 = sphi %s2414_s23, %s2777_s23   ;;  %s2353_s22 = sphi %s2412_s22, %s2776_s22   ;;  %s2349_s21 = sphi %s2410_s21, %s2775_s21  }
   0x4   : > { %s107_s27 = ssub.s32 %s2361_s24, %s2432_s26  ;;  %s110_s28 = sadd.s32 1, %s2357_s23 }
   0x5   : > { %p108_p0 = scmp.eq.s32.totalorder %s107_s27, 0  ;;  %p117_p1 = scmp.ne.s32.totalorder %s2357_s23, %s2353_s22 }
   0x6   : > { %p118_p2 = scmp.eq.s32.totalorder %s2361_s24, 0  ;;  %p123_p3 = scmp.ne.s32.totalorder %s2353_s22, %s2349_s21 }
   0x7   : > { %s2442_s29 = scalar_select %p108_p0, %s2357_s23, %s110_s28  }
   0x8   : > { %p119_p4 = por %p118_p2, %p117_p1  ;;  %p124_p5 = scmp.eq.s32.totalorder %s2429_s25, 0 }
   0x9   : > { %p2179_p6 = scmp.lt.s32.totalorder %s2361_s24, 2  ;;  %s206_s7 = sand.u32 1, %s2357_s23  }
   0xa   : > { %p2446_p7 = por %p124_p5, %p123_p3  ;;  %s2170_s8 = smul.u32 96, %s206_s7 }
   0xb   : > { %s2171_s9 = smul.u32 1536, %s2361_s24  ;;  %p2452_p8 = pnand %p2179_p6, %p119_p4 }
   0xc   : > { %s210_s14 = scalar_lea.vmem [#allocation3], %s2170_s8  ;;  %s2464_s16 = scalar_lea.sflag [#allocation4], %s206_s7 }
   0xd   : > { %s2459_s13 = scalar_lea.hbm %s2769_s4, %s2171_s9  ;;  %s217_s15 = sshll.u32 %s210_s14, 4  ;;  %s2461_s15 = int_to_ptr.vmem [resolvable:$true] %s217_s15 }
   0xe   : > { %s2297_s17 = scalar_lea.hbm %s2459_s13, 1536  ;;  %p2299_p11 = pneg %p2452_p8 }
   0xf   : > { %p2298_p10 = scmp.ne.s32.totalorder %s2459_s13, %s2297_s17  ;;  %s2302_s20 = scalar_lea.hbm %s2769_s4, 3072 }
  0x10   : > { %p2303_p0 = scmp.lt.u32.totalorder %s2459_s13, %s2769_s4  ;;  %p2304_p1 = scmp.lt.u32.totalorder %s2302_s20, %s2297_s17 }
  0x11   : > { %p2300_p12 = pnand %p2299_p11, %p2298_p10  ;;  %p2306_p3 = scmp.lt.u32.totalorder %s2297_s17, %s2459_s13 }
  0x12   : > { %p2305_p2 = por %p2304_p1, %p2303_p0 }
  0x13   : > { %p2301_p13 = pneg %p2300_p12 }
  0x14   : > { %p2307_p4 = por %p2306_p3, %p2305_p2 }
  0x16   : > { %p2308_p5 = pnand %p2307_p4, %p2301_p13 }
  0x18   : > { %2311 = shalt.err (!%p2308_p5)
}
  0x19   : > { %s2312_s28 = scalar_lea.vmem %s2461_s15, 1536  ;;  %s2363_s7 = smov [#allocation3]  }
  0x1a   : > { %p2313_p6 = scmp.ne.s32.totalorder %s2461_s15, %s2312_s28  ;;  %s2317_s8 = sshll.u32 %s2363_s7, 4  ;;  %s2318_s8 = int_to_ptr.vmem [resolvable:$false] %s2317_s8 }
  0x1b   : > { %s2319_s9 = scalar_lea.vmem %s2318_s8, 3072  ;;  %p2320_p9 = scmp.lt.s32.totalorder %s2461_s15, %s2318_s8 }
  0x1c   : > { %p2315_p10 = pnand %p2313_p6, %p2299_p11  ;;  %p2321_p0 = scmp.lt.s32.totalorder %s2319_s9, %s2312_s28 }
  0x1e   : > { %p2316_p12 = pneg %p2315_p10  ;;  %p2322_p1 = por %p2321_p0, %p2320_p9 }
  0x20   : > { %p2323_p2 = pnand %p2322_p1, %p2316_p12 }
  0x22   : > { %2326 = shalt.err (!%p2323_p2)
}
  0x23   : > { %s2364_s11 = smov 384   ;;  %s2365_s12 = smov 24  }
  0x24   : > { %2178 = dma.hbm_to_vmem [thread:$0]  (!%p2452_p8), %s2459_s13, 1536, %s2461_s15, %s2464_s16, %s2364_s11, %s2364_s11, %s2365_s12  }
  0x25   : > { %p233_p11 = scmp.lt.s32.totalorder %s2361_s24, 3  ;;  %p2774_p13 = scmp.ge.s32.totalorder %s2361_s24, 1 }
  0x27   : > { %p234_p3 = pnand %p2774_p13, %p233_p11 }
  0x28   : > { %s239_s14 = sand.u32 (!%p234_p3), 1, %s2353_s22  }
  0x29   : > { %237 = sbr.rel (%p234_p3) target bundleno = 4388 (0x1124), region = 44  ;;  %s240_s18 = scalar_lea.sflag (!%p234_p3), [#allocation4], %s239_s14 }
  0x2a   : > { %s2172_s17 = smul.u32 (!%p234_p3), 96, %s239_s14 }
  0x2c   : > { %s2496_s19 = scalar_lea.vmem (!%p234_p3), [#allocation3], %s2172_s17 }
  0x30   : > { %2344 = dma.done.wait (%p2446_p7), %s240_s18, 1536  }
  0x31   : > { %2346 = vsyncadd (%p2446_p7), %s240_s18, 4294965760  ;;  %p272_p9 = scmp.lt.s32.totalorder %s2429_s25, 1  ;;  %p1917_p8 = scmp.ne.s32.totalorder %s2429_s25, 0 }
  0x32   : > { %v283_v0 = vld [vmem:[%s2767_s2] sm:$0xf] (!%p1917_p8)  ;;  %vm296_vm0 = vcmask (!%p1917_p8), 1043456   ;;  %vm289_vm1 = vcmask (!%p1917_p8), 31744   ;;  %v282_v2 = vld [vmem:[%s2765_s0 + $0x8] sm:$0xff] (!%p1917_p8)  ;;  %vm377_vm2 = vcmask (!%p1917_p8), 261120  }
  0x33   : > { %s273_s10 = scalar_select %p272_p9, %s2429_s25, 1 }
  0x34   : > { %280 = sbr.rel (%p1917_p8) target bundleno = 587 (0x24b), region = 52  ;;  %v281_v1 = vld [vmem:[%s2765_s0] sm:$0xff] (!%p1917_p8)  ;;  %2011 = vmatprep.subr.msk.mxu0 (!%p1917_p8), %vm296_vm0, %v283_v0 }
  0x35   : > { %s1955_s13 = sshll.u32 %s273_s10, 4  ;;  %2013 = vmatprep.mubr.msk.f32.mxu0 (!%p1917_p8), %vm289_vm1, %v281_v1  ;;  %2012 = vmatpush3.msk.msra.mxu0 (!%p1917_p8), %vm296_vm0, %v283_v0  ;;  %v1918_v3 = vld [vmem:[%s2768_s3] ss:$0 sm:$0xff] (!%p1917_p8)  ;;  %v1922_v27 = vld [vmem:[%s2768_s3 + $0x1] ss:$0 sm:$0xff] (!%p1917_p8) }
  0x36   : > { %s2507_s16 = scalar_lea.vmem %s2770_s5, %s1955_s13  ;;  %2014 = vmatmul.mubr.msk.f32.vlgmr.msra.gmra.mrb[0].mxu0 (!%p1917_p8), %vm289_vm1, %v282_v2  ;;  %v1923_v29 = vld [vmem:[%s2768_s3 + $0x2] ss:$0 sm:$0xff] (!%p1917_p8) }
 0x109   : > { %v2015_v4 = vpop.f32.mrb[0].mxu0 }
 0x10a   : > { %v366_v5 = vpop.f32.mrb[1].mxu0  ;;  %v372_v7 = vadd.f32 %v2015_v4, %v1918_v3 }
 0x10b   : > { %v367_v6 = vadd.f32 %v1918_v3, %v366_v5 }
 0x10c   : > { %v381_v9 = vsel %vm377_vm2, %v372_v7, 0.0 }
 0x10d   : > { %v378_v8 = vsel %vm377_vm2, %v367_v6, 0.0 }
 0x10e   : > { %379 = vadd.xlane.f32.xlu0 %v378_v8 }
 0x112   : > { %382 = vadd.xlane.f32.xlu0 %v381_v9 }
 0x19b   : > { %v380_v10 = vpop.xlane.xlu0 %379 }
 0x19c   : > { %v385_v11 = vmul.f32 0.03125, %v380_v10 }
 0x19e   : > { %v387_v12 = vsub.f32 %v367_v6, %v385_v11 }
 0x19f   : > { %v383_v13 = vpop.xlane.xlu0 %382 }
 0x1a0   : > { %v386_v14 = vmul.f32 0.03125, %v383_v13  ;;  %v389_v15 = vmul.f32 %v387_v12, %v387_v12 }
 0x1a2   : > { %v388_v16 = vsub.f32 %v372_v7, %v386_v14  ;;  %v391_v17 = vsel %vm377_vm2, %v389_v15, 0.0 }
 0x1a3   : > { %392 = vadd.xlane.f32.xlu1 %v391_v17 }
 0x1a4   : > { %v390_v18 = vmul.f32 %v388_v16, %v388_v16 }
 0x1a6   : > { %v394_v19 = vsel %vm377_vm2, %v390_v18, 0.0 }
 0x1a7   : > { %395 = vadd.xlane.f32.xlu1 %v394_v19 }
 0x230   : > { %v393_v20 = vpop.xlane.xlu1 %392 }
 0x231   : > { %v397_v21 = vmul.f32 0.03125, %v393_v20 }
 0x233   : > { %v399_v22 = vadd.f32 1e-05, %v397_v21 }
 0x234   : > { %v396_v23 = vpop.xlane.xlu1 %395 }
 0x235   : > { %2223 = vrsqrt.f32 %v399_v22  ;;  %v398_v24 = vmul.f32 0.03125, %v396_v23 }
 0x237   : > { %v400_v25 = vadd.f32 1e-05, %v398_v24 }
 0x239   : > { %2225 = vrsqrt.f32 %v400_v25 }
 0x23f   : > { %v2224_v26 = vpop.eup %2223 }
 0x240   : > { %v403_v28 = vmul.f32 %v2224_v26, %v387_v12 }
 0x242   : > { %v409_v30 = vmul.f32 %v1922_v27, %v403_v28 }
 0x243   : > { %v2226_v31 = vpop.eup %2225 }
 0x244   : > { %v415_v32 = vadd.f32 %v1923_v29, %v409_v30  ;;  %v404_v33 = vmul.f32 %v2226_v31, %v388_v16 }
 0x246   : > { %417 = vst.msk [vmem:[#allocation2] sm:$0xff] %vm377_vm2, %v415_v32  ;;  %v410_v34 = vmul.f32 %v1922_v27, %v404_v33 }
 0x248   : > { %v416_v35 = vadd.f32 %v1923_v29, %v410_v34 }
 0x24a   : > { %418 = vst.msk [vmem:[#allocation2 + $0x8] sm:$0xff] %vm377_vm2, %v416_v35 }
 0x24b PF: > { %v2535_v36 = vld [vmem:[%s2496_s19] sm:$0xff]  ;;  %v2538_v37 = vld [vmem:[%s2496_s19 + $0x18] sm:$0xff]  ;;  %v2541_v38 = vld [vmem:[%s2496_s19 + $0x30] sm:$0xff]  ;;  %v521_v39 = vlaneseq  ;;  %vm439_vm3 = vcmask 261120   ;;  %s2366_s15 = smov 32   ;;  %v2367_v54 = vmov 0.0  }
 0x24c   : > { %v2227_v40 = vpack.i.bf16 %v2538_v37, %v2535_v36  ;;  %v2122_v41 = vpack.c.bf16 %v2538_v37, %v2535_v36  ;;  %v2548_v42 = vld [vmem:[%s2496_s19 + $0x48] sm:$0xff]  ;;  %v435_v44 = vld [vmem:[%s2766_s1] sm:$0xff]  ;;  %v436_v50 = vld [vmem:[%s2766_s1 + $0x8] sm:$0xff]  ;;  %2027 = vmatprep.subr.mxu1 %v2367_v54  ;;  %vm2368_vm4 = vmmov 0   ;;  %s2369_s20 = smov 96   ;;  %vm551_vm5 = vcmask 130048  }
 0x24d   : > { %v433_v43 = vld [vmem:[#allocation2] sm:$0xff]  ;;  %v2126_v45 = vpack.c.bf16 %v2548_v42, %v2541_v38  ;;  %v2557_v47 = vshrl.u32 %v521_v39, 7  ;;  %2029 = vmatprep.mubr.msk.f32.mxu1 %vm2368_vm4, %v2367_v54  ;;  %vm627_vm6 = vcmask 64512   ;;  %s2370_s21 = smov 64   ;;  %s2371_s30 = smov 80  }
 0x24e   : > { %v2555_v46 = vadd.f32 %v435_v44, %v433_v43  ;;  %2123 = vmatprep.subr.bf16.mxu0 %v2122_v41  ;;  %v2560_v48 = vld [vmem:[%s2507_s16] sm:$0xff]  ;;  %s2372_s27 = smov 112   ;;  %s2373_s28 = smov 48  }
 0x24f   : > { %2125 = vmatpush3.bf16.msra.mxu0 %v2122_v41  ;;  %v529_v51 = vsub.s32 1, %v2557_v47  ;;  %v523_v55 = vsub.s32 0, %v2557_v47  ;;  %v539_v4 = vsub.s32 2, %v2557_v47  ;;  %s2374_s7 = smov 16   ;;  %p1952_p7 = scmp.ne.s32.totalorder %s2429_s25, 1 }
 0x250   : > { %2024 = vmatprep.mubr.msk.f32.mxu0 %vm439_vm3, %v2555_v46  ;;  %2127 = vmatprep.subr.bf16.mxu0 %v2126_v45 }
 0x251   : > { %v434_v49 = vld [vmem:[#allocation2 + $0x8] sm:$0xff]  ;;  %v530_v52 = vrot.slane %v2560_v48, %v529_v51  ;;  %v524_v56 = vrot.slane %v2560_v48, %v523_v55  ;;  %v540_v5 = vrot.slane %v2560_v48, %v539_v4 }
 0x252   : > { %v2571_v53 = vadd.f32 %v436_v50, %v434_v49 }
 0x253   : > { %2129 = vmatpush3.bf16.msra.mxu0 %v2126_v45  ;;  %532 = vrot.lane.b32.xlu0 %v530_v52, %s2366_s15 }
 0x254   : > { %2047 = vmatprep.subr.mxu0 %v2367_v54 }
 0x256   : > { %2025 = vmatmul.mubr.msk.f32.vlgmr.msra.gmra.mrb[0].mxu0 %vm439_vm3, %v2571_v53 }
 0x257   : > { %2049 = vmatprep.mubr.msk.f32.mxu0 %vm2368_vm4, %v2367_v54 }
 0x2c5   : > { %v533_v57 = vpop.permute.xlu0 %532 }
 0x329   : > { %v2586_v58 = vpop.f32.mrb[0].mxu0 }
 0x32a   : > { %v526_v59 = vadd.f32 %v2586_v58, %v524_v56  ;;  %v512_v60 = vpop.f32.mrb[1].mxu0  ;;  %v536_v13 = vadd.f32 %v2586_v58, %v533_v57 }
 0x32b   : > { %v535_v61 = vadd.f32 %v533_v57, %v512_v60  ;;  %v525_v62 = vadd.f32 %v524_v56, %v512_v60 }
 0x32c   : > { %v886_v14 = vmul.f32 0.25, %v526_v59 }
 0x32d   : > { %549 = vrot.lane.b32.xlu0 %v535_v61, %s2369_s20  ;;  %v547_v0 = vmul.f32 0.25, %v525_v62 }
 0x39f   : > { %v550_v63 = vpop.permute.xlu0 %549 }
 0x3a0   : > { %2028 = vmatpush3.xpose.msk.msra.mxu1 %vm551_vm5, %v550_v63 }
 0x3a1   : > { %2032 = vmatprep.subr.mxu1 %v2367_v54 }
 0x3a3   : > { %2030 = vmatmul.mubr.msk.f32.vlgmr.msra.gmra.mrb[0].mxu1 %vm551_vm5, %v547_v0 }
 0x3a4   : > { %2034 = vmatprep.mubr.msk.f32.mxu1 %vm2368_vm4, %v2367_v54 }
 0x476   : > { %v623_v1 = vpop.f32.mrb[0].mxu1 }
 0x477   : > { %v2031_v2 = vpop.f32.mrb[1].mxu1  ;;  %v628_v3 = vsel %vm627_vm6, %v623_v1, -inf }
 0x478   : > { %629 = vmax.xlane.f32.xlu1 %v628_v3 }
 0x489   : > { %542 = vrot.lane.b32.xlu1 %v540_v5, %s2370_s21 }
 0x505   : > { %v630_v6 = vpop.xlane.xlu1 %629 }
 0x506   : > { %v631_v7 = vsub.f32 %v623_v1, %v630_v6 }
 0x508   : > { %v632_v8 = vmul.f32 1.442695, %v631_v7 }
 0x509   : > { %v2601_v9 = vpop.permute.xlu1 %542 }
 0x50a   : > { %2257 = vpow2.f32 %v632_v8  ;;  %v545_v10 = vadd.f32 %v2601_v9, %v512_v60  ;;  %v546_v56 = vadd.f32 %v2586_v58, %v2601_v9  ;;  %v2232_v9 = vpack.i.bf16 %v2548_v42, %v2541_v38 }
 0x50c   : > { %640 = vrot.lane.b32.xlu1 %v545_v10, %s2370_s21 }
 0x510   : > { %718 = vrot.lane.b32.xlu1 %v535_v61, %s2371_s30 }
 0x514   : > { %v2258_v11 = vpop.eup %2257  ;;  %716 = vrot.lane.b32.xlu1 %v547_v0, %s2372_s27 }
 0x515   : > { %v634_v12 = vsel %vm627_vm6, %v2258_v11, 0.0 }
 0x516   : > { %635 = vadd.xlane.f32.xlu0 %v634_v12 }
 0x518   : > { %888 = vrot.lane.b32.xlu1 %v536_v13, %s2369_s20 }
 0x51c   : > { %1055 = vrot.lane.b32.xlu1 %v536_v13, %s2371_s30 }
 0x52c   : > { %1053 = vrot.lane.b32.xlu0 %v886_v14, %s2372_s27 }
 0x57e   : > { %v641_v15 = vpop.permute.xlu1 %640 }
 0x57f   : > { %2033 = vmatpush3.msra.mxu1 %v641_v15 }
 0x580   : > { %2037 = vmatprep.subr.mxu1 %v2367_v54 }
 0x582   : > { %v719_v16 = vpop.permute.xlu1 %718 }
 0x586   : > { %v717_v17 = vpop.permute.xlu1 %716 }
 0x58a   : > { %v889_v18 = vpop.permute.xlu1 %888 }
 0x58b   : > { %2048 = vmatpush3.xpose.msk.msra.mxu0 %vm551_vm5, %v889_v18 }
 0x58c   : > { %2057 = vmatprep.subr.mxu0 %v2367_v54 }
 0x58e   : > { %2050 = vmatmul.mubr.msk.f32.vlgmr.msra.gmra.mrb[2].mxu0 %vm551_vm5, %v886_v14  ;;  %v1056_v19 = vpop.permute.xlu1 %1055 }
 0x58f   : > { %2058 = vmatpush3.xpose.msk.msra.mxu0 %vm551_vm5, %v1056_v19  ;;  %2059 = vmatprep.mubr.msk.f32.mxu0 %vm2368_vm4, %v2367_v54 }
 0x5a3   : > { %v636_v20 = vpop.xlane.xlu0 %635 }
 0x5a4   : > { %2259 = vrcp.f32 %v636_v20 }
 0x5a7   : > { %v1054_v21 = vpop.permute.xlu0 %1053 }
 0x5a8   : > { %2060 = vmatmul.mubr.msk.f32.vlgmr.msra.gmra.mrb[4].mxu0 %vm551_vm5, %v1054_v21 }
 0x5ae   : > { %v2260_v22 = vpop.eup %2259 }
 0x5af   : > { %v638_v23 = vmul.f32 %v2260_v22, %v2258_v11 }
 0x5b1   : > { %2035 = vmatmul.mubr.msk.f32.vlgmr.msra.gmra.mrb[2].mxu1 %vm627_vm6, %v638_v23 }
 0x5b2   : > { %2038 = vmatpush3.xpose.msk.msra.mxu1 %vm551_vm5, %v719_v16  ;;  %2039 = vmatprep.mubr.msk.f32.mxu1 %vm2368_vm4, %v2367_v54 }
 0x5b3   : > { %2042 = vmatprep.subr.mxu1 %v2367_v54 }
 0x5b5   : > { %2040 = vmatmul.mubr.msk.f32.vlgmr.msra.gmra.mrb[4].mxu1 %vm551_vm5, %v717_v17 }
 0x5b6   : > { %2044 = vmatprep.mubr.msk.f32.mxu1 %vm2368_vm4, %v2367_v54 }
 0x661   : > { %v961_v24 = vpop.f32.mrb[2].mxu0 }
 0x662   : > { %v2051_v25 = vpop.f32.mrb[3].mxu0  ;;  %v965_v26 = vsel %vm627_vm6, %v961_v24, -inf }
 0x663   : > { %966 = vmax.xlane.f32.xlu0 %v965_v26  ;;  %v1225_v25 = vsub.s32 3, %v2557_v47 }
 0x665   : > { %v1226_v26 = vrot.slane %v2560_v48, %v1225_v25 }
 0x679   : > { %805 = vrot.lane.b32.xlu0 %v545_v10, %s2373_s28 }
 0x67b   : > { %v1127_v27 = vpop.f32.mrb[4].mxu0 }
 0x67c   : > { %v2061_v28 = vpop.f32.mrb[5].mxu0  ;;  %v1131_v34 = vsel %vm627_vm6, %v1127_v27, -inf }
 0x67d   : > { %2228 = vrot.lane.b32.xlu0 %v2227_v40, %s2366_s15 }
 0x684   : > { %v2630_v29 = vpop.f32.mrb[2].mxu1 }
 0x685   : > { %v2036_v30 = vpop.f32.mrb[3].mxu1 }
 0x688   : > { %v790_v31 = vpop.f32.mrb[4].mxu1 }
 0x689   : > { %v2041_v32 = vpop.f32.mrb[5].mxu1  ;;  %v794_v33 = vsel %vm627_vm6, %v790_v31, -inf }
 0x68a   : > { %795 = vmax.xlane.f32.xlu1 %v794_v33 }
 0x68e   : > { %1132 = vmax.xlane.f32.xlu1 %v1131_v34 }
 0x6f0   : > { %v967_v35 = vpop.xlane.xlu0 %966 }
 0x6f1   : > { %v968_v39 = vsub.f32 %v961_v24, %v967_v35 }
 0x6f3   : > { %v969_v41 = vmul.f32 1.442695, %v968_v39 }
 0x6f4   : > { %v806_v43 = vpop.permute.xlu0 %805 }
 0x6f5   : > { %2261 = vpow2.f32 %v969_v41  ;;  %2043 = vmatpush3.msra.mxu1 %v806_v43 }
 0x6f6   : > { %2052 = vmatprep.subr.mxu1 %v2367_v54 }
 0x6f8   : > { %v2229_v10 = vpop.permute.xlu0 %2228 }
 0x6f9   : > { %v2231_v11 = vunpack.i.h.bf16 %v2229_v10  ;;  %v2230_v12 = vunpack.i.l.bf16 %v2229_v10 }
 0x6fb   : > { %v2130_v13 = vpack.c.bf16 %v2231_v11, %v2230_v12 }
 0x6fd   : > { %2131 = vmatprep.subr.bf16.mxu0 %v2130_v13 }
 0x6fe   : > { %2133 = vmatpush3.bf16.msra.mxu0 %v2130_v13 }
 0x6ff   : > { %v2262_v36 = vpop.eup %2261 }
 0x700   : > { %v971_v37 = vsel %vm627_vm6, %v2262_v36, 0.0 }
 0x701   : > { %972 = vadd.xlane.f32.xlu1 %v971_v37 }
 0x717   : > { %v796_v40 = vpop.xlane.xlu1 %795 }
 0x718   : > { %v797_v57 = vsub.f32 %v790_v31, %v796_v40 }
 0x71a   : > { %v798_v59 = vmul.f32 1.442695, %v797_v57 }
 0x71b   : > { %v1133_v44 = vpop.xlane.xlu1 %1132 }
 0x71c   : > { %v1134_v45 = vsub.f32 %v1127_v27, %v1133_v44 }
 0x71e   : > { %v1135_v49 = vmul.f32 1.442695, %v1134_v45  ;;  %v420_v45 = vld [vmem:[%s2496_s19 + $0x8] sm:$0xff] }
 0x720   : > { %2263 = vpow2.f32 %v1135_v49  ;;  %v423_v49 = vld [vmem:[%s2496_s19 + $0x20] sm:$0xff] }
 0x721   : > { %2265 = vpow2.f32 %v798_v59  ;;  %v1454_v59 = vsub.s32 7, %v2557_v47 }
 0x72a   : > { %v2264_v50 = vpop.eup %2263 }
 0x72b   : > { %v1137_v52 = vsel %vm627_vm6, %v2264_v50, 0.0  ;;  %v2266_v60 = vpop.eup %2265 }
 0x72c   : > { %1138 = vadd.xlane.f32.xlu1 %v1137_v52  ;;  %v800_v61 = vsel %vm627_vm6, %v2266_v60, 0.0  ;;  %v426_v52 = vld [vmem:[%s2496_s19 + $0x38] sm:$0xff] }
 0x73d   : > { %977 = vrot.lane.b32.xlu1 %v546_v56, %s2370_s21 }
 0x761   : > { %801 = vadd.xlane.f32.xlu1 %v800_v61 }
 0x772   : > { %1142 = vrot.lane.b32.xlu1 %v546_v56, %s2373_s28  ;;  %v429_v56 = vld [vmem:[%s2496_s19 + $0x50] sm:$0xff] }
 0x773   : > { %v2142_v57 = vpack.c.bf16 %v429_v56, %v426_v52 }
 0x776   : > { %2233 = vrot.lane.b32.xlu1 %v2232_v9, %s2366_s15 }
 0x78e   : > { %v973_v62 = vpop.xlane.xlu1 %972 }
 0x7b9   : > { %v1139_v63 = vpop.xlane.xlu1 %1138 }
 0x7bd   : > { %v978_v0 = vpop.permute.xlu1 %977 }
 0x7ee   : > { %v802_v1 = vpop.xlane.xlu1 %801 }
 0x7ef   : > { %2267 = vrcp.f32 %v802_v1 }
 0x7f0   : > { %2269 = vrcp.f32 %v973_v62 }
 0x7f1   : > { %2271 = vrcp.f32 %v1139_v63 }
 0x7f2   : > { %v1143_v7 = vpop.permute.xlu1 %1142 }
 0x7f6   : > { %v2234_v14 = vpop.permute.xlu1 %2233 }
 0x7f7   : > { %v2236_v15 = vunpack.i.h.bf16 %v2234_v14  ;;  %v2235_v16 = vunpack.i.l.bf16 %v2234_v14 }
 0x7f9   : > { %v2268_v2 = vpop.eup %2267  ;;  %v2134_v17 = vpack.c.bf16 %v2236_v15, %v2235_v16  ;;  %v2237_v15 = vpack.i.bf16 %v423_v49, %v420_v45  ;;  %v2242_v16 = vpack.i.bf16 %v429_v56, %v426_v52 }
 0x7fa   : > { %v804_v58 = vmul.f32 %v2268_v2, %v2266_v60  ;;  %v2270_v3 = vpop.eup %2269  ;;  %v1455_v60 = vrot.slane %v2560_v48, %v1454_v59 }
 0x7fb   : > { %v975_v5 = vmul.f32 %v2270_v3, %v2262_v36  ;;  %v2272_v6 = vpop.eup %2271  ;;  %2135 = vmatprep.subr.bf16.mxu0 %v2134_v17  ;;  %v1361_v3 = vsub.s32 5, %v2557_v47 }
 0x7fc   : > { %2045 = vmatmul.mubr.msk.f32.vlgmr.msra.gmra.mrb[6].mxu1 %vm627_vm6, %v804_v58  ;;  %v1141_v8 = vmul.f32 %v2272_v6, %v2264_v50  ;;  %2137 = vmatpush3.bf16.msra.mxu0 %v2134_v17  ;;  %v2138_v50 = vpack.c.bf16 %v423_v49, %v420_v45  ;;  %v1355_v58 = vsub.s32 4, %v2557_v47 }
 0x7fd   : > { %2053 = vmatpush3.msra.mxu1 %v978_v0  ;;  %2054 = vmatprep.mubr.msk.f32.mxu1 %vm2368_vm4, %v2367_v54 }
 0x7fe   : > { %2062 = vmatprep.subr.mxu1 %v2367_v54 }
 0x800   : > { %2055 = vmatmul.mubr.msk.f32.vlgmr.msra.gmra.mrb[8].mxu1 %vm627_vm6, %v975_v5  ;;  %v1356_v5 = vrot.slane %v2560_v48, %v1355_v58 }
 0x801   : > { %2063 = vmatpush3.msra.mxu1 %v1143_v7  ;;  %2064 = vmatprep.mubr.msk.f32.mxu1 %vm2368_vm4, %v2367_v54 }
 0x802   : > { %2139 = vmatprep.subr.bf16.mxu1 %v2138_v50 }
 0x804   : > { %2065 = vmatmul.mubr.msk.f32.vlgmr.msra.gmra.mrb[10].mxu1 %vm627_vm6, %v1141_v8  ;;  %v1362_v8 = vrot.slane %v2560_v48, %v1361_v3 }
 0x805   : > { %2141 = vmatpush3.bf16.msra.mxu1 %v2138_v50 }
 0x806   : > { %2143 = vmatprep.subr.bf16.mxu1 %v2142_v57 }
 0x809   : > { %2145 = vmatpush3.bf16.msra.mxu1 %v2142_v57 }
 0x8cf   : > { %v877_v54 = vpop.f32.mrb[6].mxu1 }
 0x8d0   : > { %882 = vrot.lane.b32.xlu0 %v877_v54, %s2374_s7  ;;  %v2046_v18 = vpop.f32.mrb[7].mxu1 }
 0x8d3   : > { %v1049_v19 = vpop.f32.mrb[8].mxu1 }
 0x8d4   : > { %v2056_v38 = vpop.f32.mrb[9].mxu1 }
 0x8d7   : > { %v1214_v42 = vpop.f32.mrb[10].mxu1 }
 0x8d8   : > { %1219 = vrot.lane.b32.xlu1 %v1214_v42, %s2374_s7  ;;  %v2066_v20 = vpop.f32.mrb[11].mxu1 }
 0x942   : > { %v883_v21 = vpop.permute.xlu0 %882 }
 0x943   : > { %v885_v22 = vsel %vm551_vm5, %v2630_v29, %v883_v21 }
 0x944   : > { %2075 = vmatprep.mubr.msk.f32.mxu0 %vm439_vm3, %v885_v22 }
 0x94a   : > { %v1220_v23 = vpop.permute.xlu1 %1219 }
 0x94b   : > { %v1222_v24 = vsel %vm551_vm5, %v1049_v19, %v1220_v23 }
 0x94c   : > { %2076 = vmatmul.mubr.msk.f32.vlgmr.msra.gmra.mrb[6].mxu0 %vm439_vm3, %v1222_v24 }
 0xa1f   : > { %v2077_v27 = vpop.f32.mrb[6].mxu0 }
 0xa20   : > { %v1321_v28 = vadd.f32 %v2077_v27, %v1226_v26  ;;  %v1315_v30 = vpop.f32.mrb[7].mxu0 }
 0xa21   : > { %v1316_v31 = vadd.f32 %v1315_v30, %v1226_v26 }
 0xa22   : > { %v1325_v32 = vadd.f32 %v1321_v28, %v2571_v53 }
 0xa23   : > { %v1324_v29 = vadd.f32 %v1316_v31, %v2555_v46 }
 0xa24   : > { %v1329_v33 = vsel %vm439_vm3, %v1325_v32, 0.0 }
 0xa25   : > { %1330 = vadd.xlane.f32.xlu1 %v1329_v33  ;;  %v1326_v34 = vsel %vm439_vm3, %v1324_v29, 0.0 }
 0xa26   : > { %1327 = vadd.xlane.f32.xlu0 %v1326_v34  ;;  %v2694_v34 = vld [vmem:[%s2507_s16 + $0x8] sm:$0x3f] }
 0xa36   : > { %1457 = vrot.lane.b32.xlu1 %v1455_v60, %s2366_s15 }
 0xa3a   : > { %2243 = vrot.lane.b32.xlu1 %v2242_v16, %s2370_s21 }
 0xab2   : > { %v1331_v35 = vpop.xlane.xlu1 %1330 }
 0xab3   : > { %v1334_v39 = vmul.f32 0.03125, %v1331_v35  ;;  %v1328_v41 = vpop.xlane.xlu0 %1327 }
 0xab4   : > { %v1333_v43 = vmul.f32 0.03125, %v1328_v41  ;;  %v1590_v41 = vrot.slane %v2694_v34, %v529_v51 }
 0xab5   : > { %v1336_v36 = vsub.f32 %v1325_v32, %v1334_v39 }
 0xab6   : > { %v1335_v37 = vsub.f32 %v1324_v29, %v1333_v43  ;;  %v1458_v17 = vpop.permute.xlu1 %1457  ;;  %v1448_v43 = vsub.s32 6, %v2557_v47 }
 0xab7   : > { %v1338_v46 = vmul.f32 %v1336_v36, %v1336_v36 }
 0xab8   : > { %v1337_v40 = vmul.f32 %v1335_v37, %v1335_v37 }
 0xab9   : > { %v1342_v44 = vsel %vm439_vm3, %v1338_v46, 0.0 }
 0xaba   : > { %v1339_v53 = vsel %vm439_vm3, %v1337_v40, 0.0  ;;  %v2244_v22 = vpop.permute.xlu1 %2243 }
 0xabb   : > { %1340 = vadd.xlane.f32.xlu0 %v1339_v53  ;;  %v2246_v26 = vunpack.i.h.bf16 %v2244_v22  ;;  %v2245_v27 = vunpack.i.l.bf16 %v2244_v22 }
 0xabd   : > { %v2150_v30 = vpack.c.bf16 %v2246_v26, %v2245_v27  ;;  %v424_v26 = vld [vmem:[%s2496_s19 + $0x28] sm:$0xff] }
 0xabf   : > { %1343 = vadd.xlane.f32.xlu0 %v1342_v44 }
 0xad5   : > { %2238 = vrot.lane.b32.xlu0 %v2237_v15, %s2370_s21 }
 0xb48   : > { %v1341_v61 = vpop.xlane.xlu0 %1340 }
 0xb49   : > { %v1345_v62 = vmul.f32 0.03125, %v1341_v61 }
 0xb4b   : > { %v1347_v63 = vadd.f32 1e-05, %v1345_v62 }
 0xb4c   : > { %v1344_v0 = vpop.xlane.xlu0 %1343 }
 0xb4d   : > { %2273 = vrsqrt.f32 %v1347_v63  ;;  %v1346_v1 = vmul.f32 0.03125, %v1344_v0 }
 0xb4f   : > { %v1348_v2 = vadd.f32 1e-05, %v1346_v1  ;;  %v1584_v1 = vrot.slane %v2694_v34, %v523_v55 }
 0xb50   : > { %v2239_v21 = vpop.permute.xlu0 %2238 }
 0xb51   : > { %2275 = vrsqrt.f32 %v1348_v2  ;;  %v2241_v23 = vunpack.i.h.bf16 %v2239_v21  ;;  %v2240_v24 = vunpack.i.l.bf16 %v2239_v21 }
 0xb53   : > { %v2146_v28 = vpack.c.bf16 %v2241_v23, %v2240_v24  ;;  %v421_v24 = vld [vmem:[%s2496_s19 + $0x10] sm:$0xff] }
 0xb54   : > { %v2154_v27 = vpack.c.bf16 %v424_v26, %v421_v24 }
 0xb55   : > { %2147 = vmatprep.subr.bf16.mxu0 %v2146_v28 }
 0xb56   : > { %2149 = vmatpush3.bf16.msra.mxu0 %v2146_v28  ;;  %2155 = vmatprep.subr.bf16.mxu1 %v2154_v27  ;;  %v427_v28 = vld [vmem:[%s2496_s19 + $0x40] sm:$0xff] }
 0xb57   : > { %v2274_v6 = vpop.eup %2273  ;;  %2151 = vmatprep.subr.bf16.mxu0 %v2150_v30 }
 0xb58   : > { %v1351_v7 = vmul.f32 %v2274_v6, %v1335_v37 }
 0xb5a   : > { %v1357_v9 = vmul.f32 %v1356_v5, %v1351_v7  ;;  %2153 = vmatpush3.bf16.msra.mxu0 %v2150_v30  ;;  %v430_v30 = vld [vmem:[%s2496_s19 + $0x58] sm:$0xff] }
 0xb5b   : > { %v2276_v10 = vpop.eup %2275 }
 0xb5c   : > { %v1352_v11 = vmul.f32 %v2276_v10, %v1336_v36  ;;  %v2683_v12 = vadd.f32 %v1362_v8, %v1357_v9  ;;  %v1449_v36 = vrot.slane %v2560_v48, %v1448_v43 }
 0xb5e   : > { %v1358_v13 = vmul.f32 %v1356_v5, %v1352_v11  ;;  %2086 = vmatprep.mubr.msk.f32.mxu1 %vm439_vm3, %v2683_v12 }
 0xb60   : > { %v2687_v14 = vadd.f32 %v1362_v8, %v1358_v13 }
 0xb62   : > { %2087 = vmatmul.mubr.msk.f32.vlgmr.msra.gmra.mrb[12].mxu1 %vm439_vm3, %v2687_v14 }
 0xb63   : > { %2157 = vmatpush3.bf16.msra.mxu1 %v2154_v27 }
 0xc35   : > { %v2088_v54 = vpop.f32.mrb[12].mxu1 }
 0xc36   : > { %v1461_v18 = vadd.f32 %v2088_v54, %v1458_v17  ;;  %v1437_v19 = vpop.f32.mrb[13].mxu1  ;;  %v1451_v53 = vadd.f32 %v2088_v54, %v1449_v36 }
 0xc37   : > { %v1460_v38 = vadd.f32 %v1458_v17, %v1437_v19  ;;  %v1450_v37 = vadd.f32 %v1449_v36, %v1437_v19 }
 0xc38   : > { %v1943_v42 = vmul.f32 -1.442695, %v1461_v18 }
 0xc39   : > { %v1942_v20 = vmul.f32 -1.442695, %v1460_v38 }
 0xc3a   : > { %2277 = vpow2.f32 %v1943_v42 }
 0xc3b   : > { %2279 = vpow2.f32 %v1942_v20 }
 0xc44   : > { %v2278_v31 = vpop.eup %2277 }
 0xc45   : > { %v2280_v32 = vpop.eup %2279  ;;  %v1469_v29 = vadd.f32 1.0, %v2278_v31  ;;  %v2158_v31 = vpack.c.bf16 %v430_v30, %v427_v28 }
 0xc46   : > { %v1468_v33 = vadd.f32 1.0, %v2280_v32  ;;  %v2247_v32 = vpack.i.bf16 %v424_v26, %v421_v24 }
 0xc47   : > { %2281 = vrcp.f32 %v1469_v29  ;;  %2159 = vmatprep.subr.bf16.mxu1 %v2158_v31  ;;  %v2252_v29 = vpack.i.bf16 %v430_v30, %v427_v28 }
 0xc48   : > { %2283 = vrcp.f32 %v1468_v33  ;;  %2161 = vmatpush3.bf16.msra.mxu1 %v2158_v31 }
 0xc51   : > { %v2282_v35 = vpop.eup %2281 }
 0xc52   : > { %v2284_v39 = vpop.eup %2283  ;;  %1478 = vrot.lane.b32.xlu0 %v2282_v35, %s2369_s20 }
 0xc53   : > { %1476 = vrot.lane.b32.xlu1 %v2284_v39, %s2369_s20 }
 0xc57   : > { %1592 = vrot.lane.b32.xlu1 %v1590_v41, %s2366_s15 }
 0xcc4   : > { %v1479_v40 = vpop.permute.xlu0 %1478 }
 0xcc5   : > { %v1477_v46 = vpop.permute.xlu1 %1476  ;;  %v1483_v45 = vmul.f32 %v1479_v40, %v1451_v53 }
 0xcc6   : > { %v1482_v44 = vmul.f32 %v1477_v46, %v1450_v37  ;;  %v1654_v37 = vrot.slane %v2694_v34, %v539_v4 }
 0xcc8   : > { %2097 = vmatprep.mubr.msk.f32.mxu0 %vm439_vm3, %v1482_v44 }
 0xcc9   : > { %2098 = vmatmul.mubr.msk.f32.vlgmr.msra.gmra.mrb[8].mxu0 %vm439_vm3, %v1483_v45  ;;  %v1593_v49 = vpop.permute.xlu1 %1592 }
 0xd9c   : > { %v2099_v50 = vpop.f32.mrb[8].mxu0 }
 0xd9d   : > { %v1596_v52 = vadd.f32 %v2099_v50, %v1593_v49  ;;  %v1572_v51 = vpop.f32.mrb[9].mxu0  ;;  %v1586_v2 = vadd.f32 %v2099_v50, %v1584_v1 }
 0xd9e   : > { %v1595_v56 = vadd.f32 %v1593_v49, %v1572_v51  ;;  %v1585_v5 = vadd.f32 %v1584_v1, %v1572_v51 }
 0xd9f   : > { %v1947_v57 = vmul.f32 -1.442695, %v1596_v52  ;;  %v1660_v52 = vrot.slane %v2694_v34, %v1225_v25  ;;  %v1666_v25 = vrot.slane %v2694_v34, %v1355_v58 }
 0xda0   : > { %v1946_v59 = vmul.f32 -1.442695, %v1595_v56 }
 0xda1   : > { %2285 = vpow2.f32 %v1947_v57 }
 0xda2   : > { %2287 = vpow2.f32 %v1946_v59 }
 0xdab   : > { %v2286_v48 = vpop.eup %2285 }
 0xdac   : > { %v2288_v60 = vpop.eup %2287  ;;  %v1604_v61 = vadd.f32 1.0, %v2286_v48 }
 0xdad   : > { %v1603_v62 = vadd.f32 1.0, %v2288_v60 }
 0xdae   : > { %2289 = vrcp.f32 %v1604_v61 }
 0xdaf   : > { %2291 = vrcp.f32 %v1603_v62 }
 0xdb8   : > { %v2290_v63 = vpop.eup %2289 }
 0xdb9   : > { %v2292_v0 = vpop.eup %2291  ;;  %1613 = vrot.lane.b32.xlu1 %v2290_v63, %s2369_s20 }
 0xdba   : > { %1611 = vrot.lane.b32.xlu0 %v2292_v0, %s2369_s20 }
 0xe2b   : > { %v1614_v6 = vpop.permute.xlu1 %1613 }
 0xe2c   : > { %v1618_v7 = vmul.f32 %v1614_v6, %v1586_v2  ;;  %v1612_v8 = vpop.permute.xlu0 %1611 }
 0xe2d   : > { %v1617_v9 = vmul.f32 %v1612_v8, %v1585_v5 }
 0xe2e   : > { %v1620_v10 = vadd.f32 %v1618_v7, %v2687_v14  ;;  %v1753_v7 = vrot.slane %v2694_v34, %v1361_v3 }
 0xe2f   : > { %v1619_v11 = vadd.f32 %v1617_v9, %v2683_v12 }
 0xe30   : > { %v1622_v13 = vmax.f32 %v1620_v10, 0.0 }
 0xe31   : > { %v1621_v15 = vmax.f32 %v1619_v11, 0.0 }
 0xe32   : > { %v1624_v16 = vadd.f32 %v1622_v13, %v2687_v14 }
 0xe33   : > { %v1623_v17 = vadd.f32 %v1621_v15, %v2683_v12 }
 0xe34   : > { %v1628_v54 = vsel %vm439_vm3, %v1624_v16, 0.0 }
 0xe35   : > { %1629 = vadd.xlane.f32.xlu1 %v1628_v54  ;;  %v1625_v55 = vsel %vm439_vm3, %v1623_v17, 0.0 }
 0xe36   : > { %1626 = vadd.xlane.f32.xlu0 %v1625_v55 }
 0xe46   : > { %2248 = vrot.lane.b32.xlu1 %v2247_v32, %s2369_s20 }
 0xec2   : > { %v1630_v18 = vpop.xlane.xlu1 %1629 }
 0xec3   : > { %v1632_v19 = vmul.f32 0.03125, %v1630_v18  ;;  %v1627_v38 = vpop.xlane.xlu0 %1626 }
 0xec4   : > { %v1631_v42 = vmul.f32 0.03125, %v1627_v38 }
 0xec5   : > { %v1634_v20 = vsub.f32 %v1624_v16, %v1632_v19 }
 0xec6   : > { %v1633_v21 = vsub.f32 %v1623_v17, %v1631_v42  ;;  %v2249_v40 = vpop.permute.xlu1 %2248 }
 0xec7   : > { %v1636_v12 = vmul.f32 %v1634_v20, %v1634_v20  ;;  %v2251_v44 = vunpack.i.h.bf16 %v2249_v40  ;;  %v2250_v45 = vunpack.i.l.bf16 %v2249_v40 }
 0xec8   : > { %v1635_v22 = vmul.f32 %v1633_v21, %v1633_v21 }
 0xec9   : > { %v1640_v23 = vsel %vm439_vm3, %v1636_v12, 0.0  ;;  %v2162_v56 = vpack.c.bf16 %v2251_v44, %v2250_v45 }
 0xeca   : > { %v1637_v14 = vsel %vm439_vm3, %v1635_v22, 0.0 }
 0xecb   : > { %1638 = vadd.xlane.f32.xlu0 %v1637_v14  ;;  %2163 = vmatprep.subr.bf16.mxu0 %v2162_v56 }
 0xecc   : > { %2165 = vmatpush3.bf16.msra.mxu0 %v2162_v56 }
 0xecf   : > { %1641 = vadd.xlane.f32.xlu0 %v1640_v23 }
 0xee5   : > { %2253 = vrot.lane.b32.xlu0 %v2252_v29, %s2369_s20 }
 0xf58   : > { %v1639_v33 = vpop.xlane.xlu0 %1638 }
 0xf59   : > { %v1643_v35 = vmul.f32 0.03125, %v1639_v33 }
 0xf5b   : > { %v1645_v39 = vadd.f32 1e-05, %v1643_v35 }
 0xf5c   : > { %v1642_v41 = vpop.xlane.xlu0 %1641 }
 0xf5d   : > { %2293 = vrsqrt.f32 %v1645_v39  ;;  %v1644_v43 = vmul.f32 0.03125, %v1642_v41 }
 0xf5f   : > { %v1646_v36 = vadd.f32 1e-05, %v1644_v43 }
 0xf60   : > { %v2254_v53 = vpop.permute.xlu0 %2253 }
 0xf61   : > { %2295 = vrsqrt.f32 %v1646_v36  ;;  %v2256_v49 = vunpack.i.h.bf16 %v2254_v53  ;;  %v2255_v50 = vunpack.i.l.bf16 %v2254_v53 }
 0xf63   : > { %v2166_v57 = vpack.c.bf16 %v2256_v49, %v2255_v50 }
 0xf65   : > { %2167 = vmatprep.subr.bf16.mxu0 %v2166_v57 }
 0xf66   : > { %2169 = vmatpush3.bf16.msra.mxu0 %v2166_v57 }
 0xf67   : > { %v2294_v46 = vpop.eup %2293 }
 0xf68   : > { %v1649_v51 = vmul.f32 %v2294_v46, %v1633_v21 }
 0xf6a   : > { %v1655_v59 = vmul.f32 %v1654_v37, %v1649_v51 }
 0xf6b   : > { %v2296_v48 = vpop.eup %2295 }
 0xf6c   : > { %v1650_v60 = vmul.f32 %v2296_v48, %v1634_v20  ;;  %v1661_v61 = vadd.f32 %v1660_v52, %v1655_v59 }
 0xf6e   : > { %2108 = vmatprep.mubr.msk.f32.mxu1 %vm439_vm3, %v1661_v61  ;;  %v1656_v4 = vmul.f32 %v1654_v37, %v1650_v60 }
 0xf70   : > { %v1662_v62 = vadd.f32 %v1660_v52, %v1656_v4 }
 0xf72   : > { %2109 = vmatmul.mubr.msk.f32.vlgmr.msra.gmra.mrb[14].mxu1 %vm439_vm3, %v1662_v62 }
0x1045   : > { %v2110_v63 = vpop.f32.mrb[14].mxu1 }
0x1046   : > { %v1745_v0 = vadd.f32 %v2110_v63, %v1666_v25  ;;  %v1739_v1 = vpop.f32.mrb[15].mxu1 }
0x1047   : > { %v1740_v2 = vadd.f32 %v1739_v1, %v1666_v25 }
0x1048   : > { %v1749_v6 = vmax.f32 %v1745_v0, 0.0 }
0x1049   : > { %v1748_v5 = vmax.f32 %v1740_v2, 0.0 }
0x104b   : > { %2119 = vmatprep.mubr.msk.f32.mxu0 %vm439_vm3, %v1748_v5 }
0x104c   : > { %2120 = vmatmul.mubr.msk.f32.vlgmr.msra.gmra.mrb[10].mxu0 %vm439_vm3, %v1749_v6 }
0x111d   : > { %1856 = sbr.rel (%p1952_p7) target bundleno = 4388 (0x1124), region = 56 }
0x111f   : > { %v2121_v8 = vpop.f32.mrb[10].mxu0 }
0x1120   : > { %v1848_v9 = vadd.f32 %v2121_v8, %v1753_v7  ;;  %v1842_v10 = vpop.f32.mrb[11].mxu0 }
0x1121   : > { %v1843_v11 = vadd.f32 %v1842_v10, %v1753_v7 }
0x1122   : > { %1852 = vst.msk [vmem:[#allocation2 + $0x8] sm:$0xff] %vm439_vm3, %v1848_v9  ;;  %1858 = vst.msk [vmem:[%s2771_s6 + $0x8] sm:$0xff] (!%p1952_p7), %vm439_vm3, %v1848_v9 }
0x1123   : > { %1851 = vst.msk [vmem:[#allocation2] sm:$0xff] %vm439_vm3, %v1843_v11  ;;  %1857 = vst.msk [vmem:[%s2771_s6] sm:$0xff] (!%p1952_p7), %vm439_vm3, %v1843_v11 }
0x1124 PF: > { %p16_p4 = scmp.ge.s32.totalorder %s2432_s26, 4   ;;  %s2775_s21 = smov %s2353_s22 }
0x1125   : > { %s2776_s22 = smov %s2357_s23  ;;  %s2777_s23 = smov %s2442_s29 }
0x1126   : > { %s2778_s24 = smov %s2432_s26  ;;  %18 = sbr.rel (!%p16_p4) target bundleno = 3 (0x3), region = 91 }
0x112d   :  { %1870 = vsyncpa [#allocation4], 1 }
0x112e   :  { %1872 = vsyncpa [#allocation4 + $0x1], 1 }

// kernel: transformer_forward.3
= control target key start
LH: loop header
LB: loop body
LE: loop exit
PB: predicated region body
PF: predicated region fallthrough
CT: control target
= control target key end

     0   :  { %s4233_s30 = smov 0   ;;  %s4692_s0 = inlined_call_operand.vmem [shape: f32[16,4], index: 0, kind: input, shape index: {}]   ;;  %s4693_s1 = inlined_call_operand.vmem [shape: f32[16,32], index: 1, kind: input, shape index: {}]   ;;  %s4694_s2 = inlined_call_operand.vmem [shape: f32[16,32], index: 2, kind: input, shape index: {}]   ;;  %s4695_s3 = inlined_call_operand.vmem [shape: f32[4,32], index: 3, kind: input, shape index: {}]   ;;  %s4696_s4 = inlined_call_operand.vmem [shape: f32[3,32], index: 4, kind: input, shape index: {}]   ;;  %s4697_s5 = inlined_call_operand.vmem [shape: f32[2,32,576], index: 5, kind: input, shape index: {}]   ;;  %s4698_s6 = inlined_call_operand.vmem [shape: f32[2,26,32], index: 6, kind: input, shape index: {}]   ;;  %s4699_s7 = inlined_call_operand.vmem [shape: f32[32,64], index: 7, kind: input, shape index: {}]   ;;  %s4700_s8 = inlined_call_operand.vmem [shape: f32[2,32], index: 8, kind: input, shape index: {}]   ;;  %s4701_s9 = inlined_call_operand.vmem [shape: f32[16,32], index: 9, kind: output, shape index: {}]  }
   0x1 LB: > { %s4239_s10 = sadd.s32 4294967295, %s4171_s30   ;;  %p3472_p0 = scmp.ge.s32.totalorder %s4171_s30, 1  ;;  %s4171_s30 = sphi %s4233_s30, %s19_s30  }
   0x2   : > { %p292_p1 = scmp.lt.s32.totalorder %s4171_s30, 3 }
   0x4   : > { %p293_p2 = pnand %p3472_p0, %p292_p1 }
   0x5   : > { %p328_p3 = scmp.lt.s32.totalorder (!%p293_p2), %s4239_s10, 1  ;;  %p3476_p4 = scmp.ne.s32.totalorder (!%p293_p2), %s4239_s10, 0 }
   0x6   : > { %296 = sbr.rel (%p293_p2) target bundleno = 7547 (0x1d7b), region = 56 }
   0xd   : > { %s329_s11 = scalar_select %p328_p3, %s4239_s10, 1 }
   0xe   : > { %341 = sbr.rel (%p3476_p4) target bundleno = 550 (0x226), region = 60  ;;  %v344_v0 = vld [vmem:[%s4695_s3] sm:$0xf] (!%p3476_p4)  ;;  %vm357_vm0 = vcmask (!%p3476_p4), 1043456   ;;  %vm350_vm1 = vcmask (!%p3476_p4), 31744   ;;  %v343_v2 = vld [vmem:[%s4692_s0 + $0x8] sm:$0xff] (!%p3476_p4) }
   0xf   : > { %s3992_s12 = smul.u32 160, %s329_s11  ;;  %s3546_s13 = sshll.u32 %s329_s11, 5  ;;  %v342_v1 = vld [vmem:[%s4692_s0] sm:$0xff] (!%p3476_p4)  ;;  %3660 = vmatprep.subr.msk.mxu0 (!%p3476_p4), %vm357_vm0, %v344_v0  ;;  %vm438_vm2 = vcmask (!%p3476_p4), 261120  }
  0x10   : > { %s4248_s16 = scalar_lea.vmem %s4698_s6, %s3546_s13  ;;  %3662 = vmatprep.mubr.msk.f32.mxu0 (!%p3476_p4), %vm350_vm1, %v342_v1  ;;  %3661 = vmatpush3.msk.msra.mxu0 (!%p3476_p4), %vm357_vm0, %v344_v0  ;;  %v3477_v3 = vld [vmem:[%s4696_s4] ss:$0 sm:$0xff] (!%p3476_p4)  ;;  %v3481_v27 = vld [vmem:[%s4696_s4 + $0x1] ss:$0 sm:$0xff] (!%p3476_p4)  ;;  %v3482_v29 = vld [vmem:[%s4696_s4 + $0x2] ss:$0 sm:$0xff] (!%p3476_p4) }
  0x11   : > { %s4253_s19 = scalar_lea.vmem %s4697_s5, %s3992_s12  ;;  %3663 = vmatmul.mubr.msk.f32.vlgmr.msra.gmra.mrb[0].mxu0 (!%p3476_p4), %vm350_vm1, %v343_v2 }
  0xe4   : > { %v3664_v4 = vpop.f32.mrb[0].mxu0 }
  0xe5   : > { %v427_v5 = vpop.f32.mrb[1].mxu0  ;;  %v433_v7 = vadd.f32 %v3664_v4, %v3477_v3 }
  0xe6   : > { %v428_v6 = vadd.f32 %v3477_v3, %v427_v5 }
  0xe7   : > { %v442_v9 = vsel %vm438_vm2, %v433_v7, 0.0 }
  0xe8   : > { %v439_v8 = vsel %vm438_vm2, %v428_v6, 0.0 }
  0xe9   : > { %440 = vadd.xlane.f32.xlu0 %v439_v8 }
  0xed   : > { %443 = vadd.xlane.f32.xlu0 %v442_v9 }
 0x176   : > { %v441_v10 = vpop.xlane.xlu0 %440 }
 0x177   : > { %v446_v11 = vmul.f32 0.03125, %v441_v10 }
 0x179   : > { %v448_v12 = vsub.f32 %v428_v6, %v446_v11 }
 0x17a   : > { %v444_v13 = vpop.xlane.xlu0 %443 }
 0x17b   : > { %v447_v14 = vmul.f32 0.03125, %v444_v13  ;;  %v450_v15 = vmul.f32 %v448_v12, %v448_v12 }
 0x17d   : > { %v449_v16 = vsub.f32 %v433_v7, %v447_v14  ;;  %v452_v17 = vsel %vm438_vm2, %v450_v15, 0.0 }
 0x17e   : > { %453 = vadd.xlane.f32.xlu1 %v452_v17 }
 0x17f   : > { %v451_v18 = vmul.f32 %v449_v16, %v449_v16 }
 0x181   : > { %v455_v19 = vsel %vm438_vm2, %v451_v18, 0.0 }
 0x182   : > { %456 = vadd.xlane.f32.xlu1 %v455_v19 }
 0x20b   : > { %v454_v20 = vpop.xlane.xlu1 %453 }
 0x20c   : > { %v458_v21 = vmul.f32 0.03125, %v454_v20 }
 0x20e   : > { %v460_v22 = vadd.f32 1e-05, %v458_v21 }
 0x20f   : > { %v457_v23 = vpop.xlane.xlu1 %456 }
 0x210   : > { %4011 = vrsqrt.f32 %v460_v22  ;;  %v459_v24 = vmul.f32 0.03125, %v457_v23 }
 0x212   : > { %v461_v25 = vadd.f32 1e-05, %v459_v24 }
 0x214   : > { %4013 = vrsqrt.f32 %v461_v25 }
 0x21a   : > { %v4012_v26 = vpop.eup %4011 }
 0x21b   : > { %v464_v28 = vmul.f32 %v4012_v26, %v448_v12 }
 0x21d   : > { %v470_v30 = vmul.f32 %v3481_v27, %v464_v28 }
 0x21e   : > { %v4014_v31 = vpop.eup %4013 }
 0x21f   : > { %v476_v32 = vadd.f32 %v3482_v29, %v470_v30  ;;  %v465_v33 = vmul.f32 %v4014_v31, %v449_v16 }
 0x221   : > { %478 = vst.msk [vmem:[#allocation2] sm:$0xff] %vm438_vm2, %v476_v32  ;;  %v471_v34 = vmul.f32 %v3481_v27, %v465_v33 }
 0x223   : > { %v477_v35 = vadd.f32 %v3482_v29, %v471_v34 }
 0x225   : > { %479 = vst.msk [vmem:[#allocation2 + $0x8] sm:$0xff] %vm438_vm2, %v477_v35 }
 0x226 PF: > { %v4281_v36 = vld [vmem:[%s4253_s19] sm:$0xff]  ;;  %v4284_v37 = vld [vmem:[%s4253_s19 + $0x28] sm:$0xff]  ;;  %v4287_v38 = vld [vmem:[%s4253_s19 + $0x50] sm:$0xff]  ;;  %v594_v39 = vlaneseq  ;;  %vm512_vm3 = vcmask 261120   ;;  %s4173_s18 = smov 32   ;;  %v4174_v54 = vmov 0.0  }
 0x227   : > { %v4015_v40 = vpack.i.bf16 %v4284_v37, %v4281_v36  ;;  %v3888_v41 = vpack.c.bf16 %v4284_v37, %v4281_v36  ;;  %v4294_v42 = vld [vmem:[%s4253_s19 + $0x78] sm:$0xff]  ;;  %v508_v44 = vld [vmem:[%s4694_s2] sm:$0xff]  ;;  %v509_v50 = vld [vmem:[%s4694_s2 + $0x8] sm:$0xff]  ;;  %3676 = vmatprep.subr.mxu1 %v4174_v54  ;;  %vm4175_vm4 = vmmov 0   ;;  %s4176_s20 = smov 96   ;;  %vm624_vm5 = vcmask 130048  }
 0x228   : > { %v506_v43 = vld [vmem:[#allocation2] sm:$0xff]  ;;  %v3892_v45 = vpack.c.bf16 %v4294_v42, %v4287_v38  ;;  %v4303_v47 = vshrl.u32 %v594_v39, 7  ;;  %3678 = vmatprep.mubr.msk.f32.mxu1 %vm4175_vm4, %v4174_v54  ;;  %vm700_vm6 = vcmask 64512   ;;  %s4177_s21 = smov 64   ;;  %s4178_s22 = smov 80  }
 0x229   : > { %v4301_v46 = vadd.f32 %v508_v44, %v506_v43  ;;  %3889 = vmatprep.subr.bf16.mxu0 %v3888_v41  ;;  %v4306_v48 = vld [vmem:[%s4248_s16] sm:$0xff]  ;;  %s4179_s23 = smov 112   ;;  %s4180_s24 = smov 48  }
 0x22a   : > { %3891 = vmatpush3.bf16.msra.mxu0 %v3888_v41  ;;  %v4314_v51 = vsub.s32 1, %v4303_v47  ;;  %v4330_v55 = vsub.s32 0, %v4303_v47  ;;  %v4345_v4 = vsub.s32 2, %v4303_v47  ;;  %s4181_s25 = smov 16   ;;  %p3537_p5 = scmp.ne.s32.totalorder %s4239_s10, 1 }
 0x22b   : > { %3673 = vmatprep.mubr.msk.f32.mxu0 %vm512_vm3, %v4301_v46  ;;  %3893 = vmatprep.subr.bf16.mxu0 %v3892_v45  ;;  %s4182_s10 = smov (!%p3537_p5), 96  }
 0x22c   : > { %v507_v49 = vld [vmem:[#allocation2 + $0x8] sm:$0xff]  ;;  %v603_v52 = vrot.slane %v4306_v48, %v4314_v51  ;;  %v597_v56 = vrot.slane %v4306_v48, %v4330_v55  ;;  %v613_v5 = vrot.slane %v4306_v48, %v4345_v4 }
 0x22d   : > { %v4318_v53 = vadd.f32 %v509_v50, %v507_v49 }
 0x22e   : > { %3895 = vmatpush3.bf16.msra.mxu0 %v3892_v45  ;;  %605 = vrot.lane.b32.xlu0 %v603_v52, %s4173_s18 }
 0x22f   : > { %3696 = vmatprep.subr.mxu0 %v4174_v54 }
 0x231   : > { %3674 = vmatmul.mubr.msk.f32.vlgmr.msra.gmra.mrb[0].mxu0 %vm512_vm3, %v4318_v53 }
 0x232   : > { %3698 = vmatprep.mubr.msk.f32.mxu0 %vm4175_vm4, %v4174_v54 }
 0x2a0   : > { %v606_v57 = vpop.permute.xlu0 %605 }
 0x304   : > { %v4334_v58 = vpop.f32.mrb[0].mxu0 }
 0x305   : > { %v599_v59 = vadd.f32 %v4334_v58, %v597_v56  ;;  %v585_v60 = vpop.f32.mrb[1].mxu0  ;;  %v609_v13 = vadd.f32 %v4334_v58, %v606_v57 }
 0x306   : > { %v608_v61 = vadd.f32 %v606_v57, %v585_v60  ;;  %v598_v62 = vadd.f32 %v597_v56, %v585_v60 }
 0x307   : > { %v959_v14 = vmul.f32 0.25, %v599_v59 }
 0x308   : > { %622 = vrot.lane.b32.xlu0 %v608_v61, %s4176_s20  ;;  %v620_v0 = vmul.f32 0.25, %v598_v62 }
 0x37a   : > { %v623_v63 = vpop.permute.xlu0 %622 }
 0x37b   : > { %3677 = vmatpush3.xpose.msk.msra.mxu1 %vm624_vm5, %v623_v63 }
 0x37c   : > { %3681 = vmatprep.subr.mxu1 %v4174_v54 }
 0x37e   : > { %3679 = vmatmul.mubr.msk.f32.vlgmr.msra.gmra.mrb[0].mxu1 %vm624_vm5, %v620_v0 }
 0x37f   : > { %3683 = vmatprep.mubr.msk.f32.mxu1 %vm4175_vm4, %v4174_v54 }
 0x451   : > { %v696_v1 = vpop.f32.mrb[0].mxu1 }
 0x452   : > { %v3680_v2 = vpop.f32.mrb[1].mxu1  ;;  %v701_v3 = vsel %vm700_vm6, %v696_v1, -inf }
 0x453   : > { %702 = vmax.xlane.f32.xlu1 %v701_v3 }
 0x464   : > { %615 = vrot.lane.b32.xlu1 %v613_v5, %s4177_s21 }
 0x4e0   : > { %v703_v6 = vpop.xlane.xlu1 %702 }
 0x4e1   : > { %v704_v7 = vsub.f32 %v696_v1, %v703_v6 }
 0x4e3   : > { %v705_v8 = vmul.f32 1.442695, %v704_v7 }
 0x4e4   : > { %v4350_v9 = vpop.permute.xlu1 %615 }
 0x4e5   : > { %4075 = vpow2.f32 %v705_v8  ;;  %v618_v10 = vadd.f32 %v4350_v9, %v585_v60  ;;  %v619_v56 = vadd.f32 %v4334_v58, %v4350_v9  ;;  %v4020_v9 = vpack.i.bf16 %v4294_v42, %v4287_v38 }
 0x4e7   : > { %713 = vrot.lane.b32.xlu1 %v618_v10, %s4177_s21 }
 0x4eb   : > { %791 = vrot.lane.b32.xlu1 %v608_v61, %s4178_s22 }
 0x4ef   : > { %v4076_v11 = vpop.eup %4075  ;;  %789 = vrot.lane.b32.xlu1 %v620_v0, %s4179_s23 }
 0x4f0   : > { %v707_v12 = vsel %vm700_vm6, %v4076_v11, 0.0 }
 0x4f1   : > { %708 = vadd.xlane.f32.xlu0 %v707_v12 }
 0x4f3   : > { %961 = vrot.lane.b32.xlu1 %v609_v13, %s4176_s20 }
 0x4f7   : > { %1128 = vrot.lane.b32.xlu1 %v609_v13, %s4178_s22 }
 0x507   : > { %1126 = vrot.lane.b32.xlu0 %v959_v14, %s4179_s23 }
 0x559   : > { %v714_v15 = vpop.permute.xlu1 %713 }
 0x55a   : > { %3682 = vmatpush3.msra.mxu1 %v714_v15 }
 0x55b   : > { %3686 = vmatprep.subr.mxu1 %v4174_v54 }
 0x55d   : > { %v792_v16 = vpop.permute.xlu1 %791 }
 0x561   : > { %v790_v17 = vpop.permute.xlu1 %789 }
 0x565   : > { %v962_v18 = vpop.permute.xlu1 %961 }
 0x566   : > { %3697 = vmatpush3.xpose.msk.msra.mxu0 %vm624_vm5, %v962_v18 }
 0x567   : > { %3706 = vmatprep.subr.mxu0 %v4174_v54 }
 0x569   : > { %3699 = vmatmul.mubr.msk.f32.vlgmr.msra.gmra.mrb[2].mxu0 %vm624_vm5, %v959_v14  ;;  %v1129_v19 = vpop.permute.xlu1 %1128 }
 0x56a   : > { %3707 = vmatpush3.xpose.msk.msra.mxu0 %vm624_vm5, %v1129_v19  ;;  %3708 = vmatprep.mubr.msk.f32.mxu0 %vm4175_vm4, %v4174_v54 }
 0x57e   : > { %v709_v20 = vpop.xlane.xlu0 %708 }
 0x57f   : > { %4077 = vrcp.f32 %v709_v20 }
 0x582   : > { %v1127_v21 = vpop.permute.xlu0 %1126 }
 0x583   : > { %3709 = vmatmul.mubr.msk.f32.vlgmr.msra.gmra.mrb[4].mxu0 %vm624_vm5, %v1127_v21 }
 0x589   : > { %v4078_v22 = vpop.eup %4077 }
 0x58a   : > { %v711_v23 = vmul.f32 %v4078_v22, %v4076_v11 }
 0x58c   : > { %3684 = vmatmul.mubr.msk.f32.vlgmr.msra.gmra.mrb[2].mxu1 %vm700_vm6, %v711_v23 }
 0x58d   : > { %3687 = vmatpush3.xpose.msk.msra.mxu1 %vm624_vm5, %v792_v16  ;;  %3688 = vmatprep.mubr.msk.f32.mxu1 %vm4175_vm4, %v4174_v54 }
 0x58e   : > { %3691 = vmatprep.subr.mxu1 %v4174_v54 }
 0x590   : > { %3689 = vmatmul.mubr.msk.f32.vlgmr.msra.gmra.mrb[4].mxu1 %vm624_vm5, %v790_v17 }
 0x591   : > { %3693 = vmatprep.mubr.msk.f32.mxu1 %vm4175_vm4, %v4174_v54 }
 0x63c   : > { %v1034_v24 = vpop.f32.mrb[2].mxu0 }
 0x63d   : > { %v3700_v25 = vpop.f32.mrb[3].mxu0  ;;  %v1038_v26 = vsel %vm700_vm6, %v1034_v24, -inf }
 0x63e   : > { %1039 = vmax.xlane.f32.xlu0 %v1038_v26  ;;  %v4414_v26 = vsub.s32 3, %v4303_v47 }
 0x654   : > { %878 = vrot.lane.b32.xlu0 %v618_v10, %s4180_s24 }
 0x656   : > { %v1200_v27 = vpop.f32.mrb[4].mxu0 }
 0x657   : > { %v3710_v28 = vpop.f32.mrb[5].mxu0  ;;  %v1204_v34 = vsel %vm700_vm6, %v1200_v27, -inf }
 0x658   : > { %4016 = vrot.lane.b32.xlu0 %v4015_v40, %s4173_s18 }
 0x65f   : > { %v4383_v29 = vpop.f32.mrb[2].mxu1 }
 0x660   : > { %v3685_v30 = vpop.f32.mrb[3].mxu1 }
 0x663   : > { %v863_v31 = vpop.f32.mrb[4].mxu1 }
 0x664   : > { %v3690_v32 = vpop.f32.mrb[5].mxu1  ;;  %v867_v33 = vsel %vm700_vm6, %v863_v31, -inf }
 0x665   : > { %868 = vmax.xlane.f32.xlu1 %v867_v33 }
 0x669   : > { %1205 = vmax.xlane.f32.xlu1 %v1204_v34 }
 0x6cb   : > { %v1040_v35 = vpop.xlane.xlu0 %1039 }
 0x6cc   : > { %v1041_v39 = vsub.f32 %v1034_v24, %v1040_v35 }
 0x6ce   : > { %v1042_v41 = vmul.f32 1.442695, %v1041_v39 }
 0x6cf   : > { %v879_v43 = vpop.permute.xlu0 %878 }
 0x6d0   : > { %4079 = vpow2.f32 %v1042_v41  ;;  %3692 = vmatpush3.msra.mxu1 %v879_v43 }
 0x6d1   : > { %3701 = vmatprep.subr.mxu1 %v4174_v54 }
 0x6d3   : > { %v4017_v10 = vpop.permute.xlu0 %4016 }
 0x6d4   : > { %v4019_v11 = vunpack.i.h.bf16 %v4017_v10  ;;  %v4018_v12 = vunpack.i.l.bf16 %v4017_v10 }
 0x6d6   : > { %v3896_v13 = vpack.c.bf16 %v4019_v11, %v4018_v12 }
 0x6d8   : > { %3897 = vmatprep.subr.bf16.mxu0 %v3896_v13 }
 0x6d9   : > { %3899 = vmatpush3.bf16.msra.mxu0 %v3896_v13 }
 0x6da   : > { %v4080_v36 = vpop.eup %4079 }
 0x6db   : > { %v1044_v37 = vsel %vm700_vm6, %v4080_v36, 0.0 }
 0x6dc   : > { %1045 = vadd.xlane.f32.xlu1 %v1044_v37 }
 0x6f2   : > { %v869_v40 = vpop.xlane.xlu1 %868 }
 0x6f3   : > { %v870_v57 = vsub.f32 %v863_v31, %v869_v40 }
 0x6f5   : > { %v871_v59 = vmul.f32 1.442695, %v870_v57  ;;  %v496_v57 = vld [vmem:[%s4253_s19 + $0x80] sm:$0xff] }
 0x6f6   : > { %v1206_v44 = vpop.xlane.xlu1 %1205 }
 0x6f7   : > { %v1207_v45 = vsub.f32 %v1200_v27, %v1206_v44  ;;  %v1299_v27 = vrot.slane %v4306_v48, %v4414_v26 }
 0x6f9   : > { %v1208_v49 = vmul.f32 1.442695, %v1207_v45 }
 0x6fb   : > { %4081 = vpow2.f32 %v1208_v49  ;;  %v481_v49 = vld [vmem:[%s4253_s19 + $0x8] sm:$0xff] }
 0x6fc   : > { %4083 = vpow2.f32 %v871_v59 }
 0x705   : > { %v4082_v50 = vpop.eup %4081 }
 0x706   : > { %v1210_v52 = vsel %vm700_vm6, %v4082_v50, 0.0  ;;  %v4084_v60 = vpop.eup %4083 }
 0x707   : > { %1211 = vadd.xlane.f32.xlu1 %v1210_v52  ;;  %v873_v61 = vsel %vm700_vm6, %v4084_v60, 0.0 }
 0x718   : > { %1050 = vrot.lane.b32.xlu1 %v619_v56, %s4177_s21 }
 0x73c   : > { %874 = vadd.xlane.f32.xlu1 %v873_v61 }
 0x74d   : > { %1215 = vrot.lane.b32.xlu1 %v619_v56, %s4180_s24  ;;  %v491_v56 = vld [vmem:[%s4253_s19 + $0x58] sm:$0xff] }
 0x74e   : > { %v3908_v59 = vpack.c.bf16 %v496_v57, %v491_v56 }
 0x751   : > { %4021 = vrot.lane.b32.xlu1 %v4020_v9, %s4173_s18 }
 0x769   : > { %v1046_v62 = vpop.xlane.xlu1 %1045 }
 0x794   : > { %v1212_v63 = vpop.xlane.xlu1 %1211 }
 0x798   : > { %v1051_v0 = vpop.permute.xlu1 %1050 }
 0x7c9   : > { %v875_v1 = vpop.xlane.xlu1 %874 }
 0x7ca   : > { %4085 = vrcp.f32 %v875_v1 }
 0x7cb   : > { %4087 = vrcp.f32 %v1046_v62 }
 0x7cc   : > { %4089 = vrcp.f32 %v1212_v63 }
 0x7cd   : > { %v1216_v7 = vpop.permute.xlu1 %1215 }
 0x7d1   : > { %v4022_v14 = vpop.permute.xlu1 %4021 }
 0x7d2   : > { %v4024_v15 = vunpack.i.h.bf16 %v4022_v14  ;;  %v4023_v16 = vunpack.i.l.bf16 %v4022_v14 }
 0x7d4   : > { %v4086_v2 = vpop.eup %4085  ;;  %v3900_v17 = vpack.c.bf16 %v4024_v15, %v4023_v16 }
 0x7d5   : > { %v877_v58 = vmul.f32 %v4086_v2, %v4084_v60  ;;  %v4088_v3 = vpop.eup %4087  ;;  %v4429_v60 = vsub.s32 7, %v4303_v47 }
 0x7d6   : > { %v1048_v5 = vmul.f32 %v4088_v3, %v4080_v36  ;;  %v4090_v6 = vpop.eup %4089  ;;  %3901 = vmatprep.subr.bf16.mxu0 %v3900_v17  ;;  %v4435_v3 = vsub.s32 4, %v4303_v47 }
 0x7d7   : > { %3694 = vmatmul.mubr.msk.f32.vlgmr.msra.gmra.mrb[6].mxu1 %vm700_vm6, %v877_v58  ;;  %v1214_v8 = vmul.f32 %v4090_v6, %v4082_v50  ;;  %3903 = vmatpush3.bf16.msra.mxu0 %v3900_v17  ;;  %v486_v50 = vld [vmem:[%s4253_s19 + $0x30] sm:$0xff]  ;;  %v1528_v61 = vrot.slane %v4306_v48, %v4429_v60  ;;  %v4030_v17 = vpack.i.bf16 %v496_v57, %v491_v56 }
 0x7d8   : > { %3702 = vmatpush3.msra.mxu1 %v1051_v0  ;;  %3703 = vmatprep.mubr.msk.f32.mxu1 %vm4175_vm4, %v4174_v54  ;;  %v3904_v52 = vpack.c.bf16 %v486_v50, %v481_v49  ;;  %v1429_v6 = vrot.slane %v4306_v48, %v4435_v3  ;;  %v4025_v16 = vpack.i.bf16 %v486_v50, %v481_v49 }
 0x7d9   : > { %3711 = vmatprep.subr.mxu1 %v4174_v54 }
 0x7db   : > { %3704 = vmatmul.mubr.msk.f32.vlgmr.msra.gmra.mrb[8].mxu1 %vm700_vm6, %v1048_v5  ;;  %v4438_v5 = vsub.s32 5, %v4303_v47 }
 0x7dc   : > { %3712 = vmatpush3.msra.mxu1 %v1216_v7  ;;  %3713 = vmatprep.mubr.msk.f32.mxu1 %vm4175_vm4, %v4174_v54 }
 0x7dd   : > { %3905 = vmatprep.subr.bf16.mxu1 %v3904_v52  ;;  %v1435_v9 = vrot.slane %v4306_v48, %v4438_v5 }
 0x7df   : > { %3714 = vmatmul.mubr.msk.f32.vlgmr.msra.gmra.mrb[10].mxu1 %vm700_vm6, %v1214_v8 }
 0x7e0   : > { %3907 = vmatpush3.bf16.msra.mxu1 %v3904_v52 }
 0x7e1   : > { %3909 = vmatprep.subr.bf16.mxu1 %v3908_v59 }
 0x7e4   : > { %3911 = vmatpush3.bf16.msra.mxu1 %v3908_v59 }
 0x8aa   : > { %v950_v18 = vpop.f32.mrb[6].mxu1 }
 0x8ab   : > { %955 = vrot.lane.b32.xlu0 %v950_v18, %s4181_s25  ;;  %v3695_v19 = vpop.f32.mrb[7].mxu1 }
 0x8ae   : > { %v1122_v38 = vpop.f32.mrb[8].mxu1 }
 0x8af   : > { %v3705_v42 = vpop.f32.mrb[9].mxu1 }
 0x8b2   : > { %v1287_v20 = vpop.f32.mrb[10].mxu1 }
 0x8b3   : > { %1292 = vrot.lane.b32.xlu1 %v1287_v20, %s4181_s25  ;;  %v3715_v21 = vpop.f32.mrb[11].mxu1 }
 0x91d   : > { %v956_v22 = vpop.permute.xlu0 %955 }
 0x91e   : > { %v958_v23 = vsel %vm624_vm5, %v4383_v29, %v956_v22 }
 0x91f   : > { %3724 = vmatprep.mubr.msk.f32.mxu0 %vm512_vm3, %v958_v23 }
 0x925   : > { %v1293_v24 = vpop.permute.xlu1 %1292 }
 0x926   : > { %v1295_v25 = vsel %vm624_vm5, %v1122_v38, %v1293_v24 }
 0x927   : > { %3725 = vmatmul.mubr.msk.f32.vlgmr.msra.gmra.mrb[6].mxu0 %vm512_vm3, %v1295_v25 }
 0x9fa   : > { %v3726_v28 = vpop.f32.mrb[6].mxu0 }
 0x9fb   : > { %v1394_v30 = vadd.f32 %v3726_v28, %v1299_v27  ;;  %v1388_v31 = vpop.f32.mrb[7].mxu0 }
 0x9fc   : > { %v1389_v32 = vadd.f32 %v1388_v31, %v1299_v27 }
 0x9fd   : > { %v1398_v33 = vadd.f32 %v1394_v30, %v4318_v53 }
 0x9fe   : > { %v1397_v29 = vadd.f32 %v1389_v32, %v4301_v46 }
 0x9ff   : > { %v1402_v34 = vsel %vm512_vm3, %v1398_v33, 0.0 }
 0xa00   : > { %1403 = vadd.xlane.f32.xlu1 %v1402_v34  ;;  %v1399_v35 = vsel %vm512_vm3, %v1397_v29, 0.0 }
 0xa01   : > { %1400 = vadd.xlane.f32.xlu0 %v1399_v35 }
 0xa11   : > { %1530 = vrot.lane.b32.xlu1 %v1528_v61, %s4173_s18 }
 0xa15   : > { %4031 = vrot.lane.b32.xlu1 %v4030_v17, %s4177_s21 }
 0xa8d   : > { %v1404_v39 = vpop.xlane.xlu1 %1403 }
 0xa8e   : > { %v1407_v41 = vmul.f32 0.03125, %v1404_v39  ;;  %v1401_v43 = vpop.xlane.xlu0 %1400  ;;  %v4455_v39 = vld [vmem:[%s4248_s16 + $0x8] sm:$0xff] }
 0xa8f   : > { %v1406_v36 = vmul.f32 0.03125, %v1401_v43 }
 0xa90   : > { %v1409_v37 = vsub.f32 %v1398_v33, %v1407_v41 }
 0xa91   : > { %v1408_v40 = vsub.f32 %v1397_v29, %v1406_v36  ;;  %v1531_v18 = vpop.permute.xlu1 %1530  ;;  %v1663_v36 = vrot.slane %v4455_v39, %v4314_v51 }
 0xa92   : > { %v1411_v46 = vmul.f32 %v1409_v37, %v1409_v37 }
 0xa93   : > { %v1410_v44 = vmul.f32 %v1408_v40, %v1408_v40 }
 0xa94   : > { %v1415_v45 = vsel %vm512_vm3, %v1411_v46, 0.0 }
 0xa95   : > { %v1412_v53 = vsel %vm512_vm3, %v1410_v44, 0.0  ;;  %v4032_v24 = vpop.permute.xlu1 %4031 }
 0xa96   : > { %1413 = vadd.xlane.f32.xlu0 %v1412_v53  ;;  %v4034_v28 = vunpack.i.h.bf16 %v4032_v24  ;;  %v4033_v30 = vunpack.i.l.bf16 %v4032_v24 }
 0xa98   : > { %v3916_v32 = vpack.c.bf16 %v4034_v28, %v4033_v30 }
 0xa9a   : > { %1416 = vadd.xlane.f32.xlu0 %v1415_v45 }
 0xab0   : > { %4026 = vrot.lane.b32.xlu0 %v4025_v16, %s4177_s21 }
 0xb23   : > { %v1414_v62 = vpop.xlane.xlu0 %1413 }
 0xb24   : > { %v1418_v63 = vmul.f32 0.03125, %v1414_v62 }
 0xb26   : > { %v1420_v0 = vadd.f32 1e-05, %v1418_v63 }
 0xb27   : > { %v1417_v1 = vpop.xlane.xlu0 %1416 }
 0xb28   : > { %4091 = vrsqrt.f32 %v1420_v0  ;;  %v1419_v2 = vmul.f32 0.03125, %v1417_v1 }
 0xb2a   : > { %v1421_v58 = vadd.f32 1e-05, %v1419_v2 }
 0xb2b   : > { %v4027_v23 = vpop.permute.xlu0 %4026 }
 0xb2c   : > { %4093 = vrsqrt.f32 %v1421_v58  ;;  %v4029_v25 = vunpack.i.h.bf16 %v4027_v23  ;;  %v4028_v27 = vunpack.i.l.bf16 %v4027_v23 }
 0xb2e   : > { %v3912_v31 = vpack.c.bf16 %v4029_v25, %v4028_v27 }
 0xb30   : > { %3913 = vmatprep.subr.bf16.mxu0 %v3912_v31 }
 0xb31   : > { %3915 = vmatpush3.bf16.msra.mxu0 %v3912_v31 }
 0xb32   : > { %v4092_v7 = vpop.eup %4091  ;;  %3917 = vmatprep.subr.bf16.mxu0 %v3916_v32 }
 0xb33   : > { %v1424_v8 = vmul.f32 %v4092_v7, %v1408_v40 }
 0xb35   : > { %v1430_v10 = vmul.f32 %v1429_v6, %v1424_v8  ;;  %3919 = vmatpush3.bf16.msra.mxu0 %v3916_v32 }
 0xb36   : > { %v4094_v11 = vpop.eup %4093 }
 0xb37   : > { %v1425_v12 = vmul.f32 %v4094_v11, %v1409_v37  ;;  %v4444_v13 = vadd.f32 %v1435_v9, %v1430_v10  ;;  %v4463_v37 = vsub.s32 6, %v4303_v47 }
 0xb39   : > { %v1431_v14 = vmul.f32 %v1429_v6, %v1425_v12  ;;  %3735 = vmatprep.mubr.msk.f32.mxu1 %vm512_vm3, %v4444_v13  ;;  %v1522_v40 = vrot.slane %v4306_v48, %v4463_v37  ;;  %v1657_v6 = vrot.slane %v4455_v39, %v4330_v55 }
 0xb3b   : > { %v4448_v15 = vadd.f32 %v1435_v9, %v1431_v14 }
 0xb3d   : > { %3736 = vmatmul.mubr.msk.f32.vlgmr.msra.gmra.mrb[12].mxu1 %vm512_vm3, %v4448_v15 }
 0xc10   : > { %v3737_v19 = vpop.f32.mrb[12].mxu1 }
 0xc11   : > { %v1534_v38 = vadd.f32 %v3737_v19, %v1531_v18  ;;  %v1510_v42 = vpop.f32.mrb[13].mxu1  ;;  %v1524_v46 = vadd.f32 %v3737_v19, %v1522_v40 }
 0xc12   : > { %v1533_v20 = vadd.f32 %v1531_v18, %v1510_v42  ;;  %v1523_v44 = vadd.f32 %v1522_v40, %v1510_v42 }
 0xc13   : > { %v3502_v21 = vmul.f32 -1.442695, %v1534_v38 }
 0xc14   : > { %v3501_v22 = vmul.f32 -1.442695, %v1533_v20 }
 0xc15   : > { %4095 = vpow2.f32 %v3502_v21  ;;  %v482_v21 = vld [vmem:[%s4253_s19 + $0x10] sm:$0xff] }
 0xc16   : > { %4097 = vpow2.f32 %v3501_v22  ;;  %v487_v22 = vld [vmem:[%s4253_s19 + $0x38] sm:$0xff] }
 0xc17   : > { %v4481_v23 = vpack.i.bf16 %v487_v22, %v482_v21 }
 0xc1f   : > { %v4096_v33 = vpop.eup %4095 }
 0xc20   : > { %v4098_v29 = vpop.eup %4097  ;;  %v1542_v34 = vadd.f32 1.0, %v4096_v33 }
 0xc21   : > { %v1541_v35 = vadd.f32 1.0, %v4098_v29  ;;  %v492_v29 = vld [vmem:[%s4253_s19 + $0x60] sm:$0xff] }
 0xc22   : > { %4099 = vrcp.f32 %v1542_v34  ;;  %v497_v34 = vld [vmem:[%s4253_s19 + $0x88] sm:$0xff] }
 0xc23   : > { %4101 = vrcp.f32 %v1541_v35  ;;  %v4489_v35 = vpack.i.bf16 %v497_v34, %v492_v29 }
 0xc2c   : > { %v4100_v41 = vpop.eup %4099 }
 0xc2d   : > { %v4102_v43 = vpop.eup %4101  ;;  %1551 = vrot.lane.b32.xlu0 %v4100_v41, %s4176_s20 }
 0xc2e   : > { %1549 = vrot.lane.b32.xlu1 %v4102_v43, %s4176_s20 }
 0xc32   : > { %1665 = vrot.lane.b32.xlu1 %v1663_v36, %s4173_s18 }
 0xc9f   : > { %v1552_v53 = vpop.permute.xlu0 %1551 }
 0xca0   : > { %v1550_v45 = vpop.permute.xlu1 %1549  ;;  %v1556_v50 = vmul.f32 %v1552_v53, %v1524_v46  ;;  %v3924_v53 = vpack.c.bf16 %v497_v34, %v492_v29  ;;  %v504_v46 = vld [vmem:[%s4693_s1] sm:$0xff] }
 0xca1   : > { %v1555_v49 = vmul.f32 %v1550_v45, %v1523_v44  ;;  %v3920_v44 = vpack.c.bf16 %v487_v22, %v482_v21 }
 0xca3   : > { %3746 = vmatprep.mubr.msk.f32.mxu0 %vm512_vm3, %v1555_v49  ;;  %3921 = vmatprep.subr.bf16.mxu1 %v3920_v44 }
 0xca4   : > { %3747 = vmatmul.mubr.msk.f32.vlgmr.msra.gmra.mrb[8].mxu0 %vm512_vm3, %v1556_v50  ;;  %v1666_v52 = vpop.permute.xlu1 %1665  ;;  %3923 = vmatpush3.bf16.msra.mxu1 %v3920_v44  ;;  %v1927_v44 = vrot.slane %v4455_v39, %v4463_v37 }
 0xca5   : > { %3768 = vmatprep.mubr.msk.f32.mxu0 %vm512_vm3, %v504_v46  ;;  %3925 = vmatprep.subr.bf16.mxu1 %v3924_v53 }
 0xca8   : > { %3927 = vmatpush3.bf16.msra.mxu1 %v3924_v53 }
 0xca9   : > { %3771 = vmatprep.subr.mxu1 %v4174_v54 }
 0xd77   : > { %v3748_v56 = vpop.f32.mrb[8].mxu0 }
 0xd78   : > { %v1669_v57 = vadd.f32 %v3748_v56, %v1666_v52  ;;  %v1645_v59 = vpop.f32.mrb[9].mxu0  ;;  %v1659_v7 = vadd.f32 %v3748_v56, %v1657_v6 }
 0xd79   : > { %v1668_v61 = vadd.f32 %v1666_v52, %v1645_v59  ;;  %v1658_v8 = vadd.f32 %v1657_v6, %v1645_v59 }
 0xd7a   : > { %v3506_v47 = vmul.f32 -1.442695, %v1669_v57 }
 0xd7b   : > { %v3505_v62 = vmul.f32 -1.442695, %v1668_v61 }
 0xd7c   : > { %4103 = vpow2.f32 %v3506_v47 }
 0xd7d   : > { %4105 = vpow2.f32 %v3505_v62 }
 0xd86   : > { %v4104_v48 = vpop.eup %4103 }
 0xd87   : > { %v4106_v63 = vpop.eup %4105  ;;  %v1677_v0 = vadd.f32 1.0, %v4104_v48  ;;  %v505_v48 = vld [vmem:[%s4693_s1 + $0x8] sm:$0xff] }
 0xd88   : > { %v1676_v1 = vadd.f32 1.0, %v4106_v63 }
 0xd89   : > { %4107 = vrcp.f32 %v1677_v0 }
 0xd8a   : > { %4109 = vrcp.f32 %v1676_v1  ;;  %v1727_v1 = vrot.slane %v4455_v39, %v4345_v4 }
 0xd93   : > { %v4108_v2 = vpop.eup %4107 }
 0xd94   : > { %v4110_v58 = vpop.eup %4109  ;;  %1686 = vrot.lane.b32.xlu1 %v4108_v2, %s4176_s20 }
 0xd95   : > { %1684 = vrot.lane.b32.xlu0 %v4110_v58, %s4176_s20 }
 0xe06   : > { %v1687_v9 = vpop.permute.xlu1 %1686 }
 0xe07   : > { %v1691_v10 = vmul.f32 %v1687_v9, %v1659_v7  ;;  %v1685_v11 = vpop.permute.xlu0 %1684  ;;  %v1733_v7 = vrot.slane %v4455_v39, %v4414_v26 }
 0xe08   : > { %v1690_v12 = vmul.f32 %v1685_v11, %v1658_v8  ;;  %v1921_v11 = vrot.slane %v4455_v39, %v4438_v5 }
 0xe09   : > { %v1693_v14 = vadd.f32 %v1691_v10, %v4448_v15 }
 0xe0a   : > { %v1692_v16 = vadd.f32 %v1690_v12, %v4444_v13 }
 0xe0b   : > { %v1695_v17 = vmax.f32 %v1693_v14, 0.0 }
 0xe0c   : > { %v1694_v18 = vmax.f32 %v1692_v16, 0.0 }
 0xe0d   : > { %v1697_v19 = vadd.f32 %v1695_v17, %v4448_v15 }
 0xe0e   : > { %v1696_v38 = vadd.f32 %v1694_v18, %v4444_v13  ;;  %v1739_v18 = vrot.slane %v4455_v39, %v4435_v3 }
 0xe0f   : > { %v1701_v42 = vsel %vm512_vm3, %v1697_v19, 0.0 }
 0xe10   : > { %1702 = vadd.xlane.f32.xlu1 %v1701_v42  ;;  %v1698_v20 = vsel %vm512_vm3, %v1696_v38, 0.0 }
 0xe11   : > { %1699 = vadd.xlane.f32.xlu0 %v1698_v20 }
 0xe21   : > { %4036 = vrot.lane.b32.xlu1 %v4481_v23, %s4176_s20 }
 0xe9d   : > { %v1703_v24 = vpop.xlane.xlu1 %1702 }
 0xe9e   : > { %v1705_v25 = vmul.f32 0.03125, %v1703_v24  ;;  %v1700_v15 = vpop.xlane.xlu0 %1699 }
 0xe9f   : > { %v1704_v27 = vmul.f32 0.03125, %v1700_v15 }
 0xea0   : > { %v1707_v13 = vsub.f32 %v1697_v19, %v1705_v25 }
 0xea1   : > { %v1706_v28 = vsub.f32 %v1696_v38, %v1704_v27  ;;  %v4037_v41 = vpop.permute.xlu1 %4036 }
 0xea2   : > { %v1709_v30 = vmul.f32 %v1707_v13, %v1707_v13  ;;  %v4039_v43 = vunpack.i.h.bf16 %v4037_v41  ;;  %v4038_v36 = vunpack.i.l.bf16 %v4037_v41 }
 0xea3   : > { %v1708_v32 = vmul.f32 %v1706_v28, %v1706_v28 }
 0xea4   : > { %v1713_v31 = vsel %vm512_vm3, %v1709_v30, 0.0  ;;  %v3928_v40 = vpack.c.bf16 %v4039_v43, %v4038_v36 }
 0xea5   : > { %1714 = vadd.xlane.f32.xlu0 %v1713_v31  ;;  %v1710_v33 = vsel %vm512_vm3, %v1708_v32, 0.0 }
 0xea6   : > { %3929 = vmatprep.subr.bf16.mxu0 %v3928_v40 }
 0xea7   : > { %3931 = vmatpush3.bf16.msra.mxu0 %v3928_v40 }
 0xea9   : > { %1711 = vadd.xlane.f32.xlu0 %v1710_v33 }
 0xebf   : > { %4041 = vrot.lane.b32.xlu0 %v4489_v35, %s4176_s20 }
 0xf32   : > { %v1715_v45 = vpop.xlane.xlu0 %1714 }
 0xf33   : > { %v1717_v49 = vmul.f32 0.03125, %v1715_v45 }
 0xf35   : > { %v1719_v50 = vadd.f32 1e-05, %v1717_v49 }
 0xf36   : > { %v1712_v52 = vpop.xlane.xlu0 %1711 }
 0xf37   : > { %4111 = vrsqrt.f32 %v1719_v50  ;;  %v1716_v56 = vmul.f32 0.03125, %v1712_v52 }
 0xf39   : > { %v1718_v57 = vadd.f32 1e-05, %v1716_v56 }
 0xf3a   : > { %v4042_v59 = vpop.permute.xlu0 %4041 }
 0xf3b   : > { %4113 = vrsqrt.f32 %v1718_v57  ;;  %v4044_v61 = vunpack.i.h.bf16 %v4042_v59  ;;  %v4043_v47 = vunpack.i.l.bf16 %v4042_v59 }
 0xf3d   : > { %v3932_v62 = vpack.c.bf16 %v4044_v61, %v4043_v47 }
 0xf3f   : > { %3933 = vmatprep.subr.bf16.mxu0 %v3932_v62 }
 0xf40   : > { %3935 = vmatpush3.bf16.msra.mxu0 %v3932_v62 }
 0xf41   : > { %v4112_v63 = vpop.eup %4111  ;;  %3781 = vmatprep.subr.mxu0 %v4174_v54 }
 0xf42   : > { %v1723_v0 = vmul.f32 %v4112_v63, %v1707_v13 }
 0xf43   : > { %3769 = vmatmul.mubr.msk.f32.vlgmr.msra.gmra.mrb[10].mxu0 %vm512_vm3, %v505_v48 }
 0xf44   : > { %3783 = vmatprep.mubr.msk.f32.mxu0 %vm4175_vm4, %v4174_v54  ;;  %v1729_v6 = vmul.f32 %v1727_v1, %v1723_v0 }
 0xf45   : > { %v4114_v2 = vpop.eup %4113 }
 0xf46   : > { %v1722_v58 = vmul.f32 %v4114_v2, %v1706_v28  ;;  %v4511_v10 = vadd.f32 %v1733_v7, %v1729_v6 }
 0xf48   : > { %v1728_v8 = vmul.f32 %v1727_v1, %v1722_v58 }
 0xf4a   : > { %v4509_v9 = vadd.f32 %v1733_v7, %v1728_v8 }
 0xf4c   : > { %3757 = vmatprep.mubr.msk.f32.mxu1 %vm512_vm3, %v4509_v9 }
 0xf4d   : > { %3758 = vmatmul.mubr.msk.f32.vlgmr.msra.gmra.mrb[14].mxu1 %vm512_vm3, %v4511_v10 }
 0xf4e   : > { %3773 = vmatprep.mubr.msk.f32.mxu1 %vm4175_vm4, %v4174_v54 }
0x1016   : > { %v4521_v12 = vpop.f32.mrb[10].mxu0 }
0x1017   : > { %v1923_v14 = vadd.f32 %v4521_v12, %v1921_v11  ;;  %v1909_v16 = vpop.f32.mrb[11].mxu0 }
0x1018   : > { %v1922_v17 = vadd.f32 %v1921_v11, %v1909_v16 }
0x1019   : > { %2436 = vrot.lane.b32.xlu0 %v1923_v14, %s4179_s23 }
0x101a   : > { %2101 = vrot.lane.b32.xlu1 %v1922_v17, %s4179_s23  ;;  %3772 = vmatpush3.xpose.msk.msra.mxu1 %vm624_vm5, %v1922_v17 }
0x101b   : > { %3776 = vmatprep.subr.mxu1 %v4174_v54 }
0x1020   : > { %v3759_v19 = vpop.f32.mrb[14].mxu1 }
0x1021   : > { %v1812_v38 = vpop.f32.mrb[15].mxu1  ;;  %v1818_v20 = vadd.f32 %v3759_v19, %v1739_v18 }
0x1022   : > { %v1813_v42 = vadd.f32 %v1812_v38, %v1739_v18 }
0x1023   : > { %v2269_v22 = vmul.f32 0.25, %v1818_v20 }
0x1024   : > { %v1934_v21 = vmul.f32 0.25, %v1813_v42 }
0x1026   : > { %2099 = vrot.lane.b32.xlu1 %v1934_v21, %s4179_s23  ;;  %3774 = vmatmul.mubr.msk.f32.vlgmr.msra.gmra.mrb[16].mxu1 %vm624_vm5, %v1934_v21 }
0x1027   : > { %3778 = vmatprep.mubr.msk.f32.mxu1 %vm4175_vm4, %v4174_v54 }
0x102a   : > { %2434 = vrot.lane.b32.xlu1 %v2269_v22, %s4179_s23 }
0x108b   : > { %v2437_v15 = vpop.permute.xlu0 %2436 }
0x108c   : > { %v2102_v24 = vpop.permute.xlu1 %2101 }
0x108d   : > { %3782 = vmatpush3.xpose.msk.msra.mxu0 %vm624_vm5, %v2102_v24 }
0x108e   : > { %3791 = vmatprep.subr.mxu0 %v4174_v54 }
0x1098   : > { %v2100_v25 = vpop.permute.xlu1 %2099 }
0x1099   : > { %3784 = vmatmul.mubr.msk.f32.vlgmr.msra.gmra.mrb[12].mxu0 %vm624_vm5, %v2100_v25 }
0x109a   : > { %3792 = vmatpush3.xpose.msk.msra.mxu0 %vm624_vm5, %v1923_v14  ;;  %3793 = vmatprep.mubr.msk.f32.mxu0 %vm4175_vm4, %v4174_v54 }
0x109b   : > { %3801 = vmatprep.subr.mxu0 %v4174_v54 }
0x109c   : > { %v2435_v27 = vpop.permute.xlu1 %2434 }
0x109d   : > { %3794 = vmatmul.mubr.msk.f32.vlgmr.msra.gmra.mrb[14].mxu0 %vm624_vm5, %v2269_v22 }
0x109e   : > { %3802 = vmatpush3.xpose.msk.msra.mxu0 %vm624_vm5, %v2437_v15  ;;  %3803 = vmatprep.mubr.msk.f32.mxu0 %vm4175_vm4, %v4174_v54 }
0x10a1   : > { %3804 = vmatmul.mubr.msk.f32.vlgmr.msra.gmra.mrb[16].mxu0 %vm624_vm5, %v2435_v27 }
0x10f9   : > { %v2007_v13 = vpop.f32.mrb[16].mxu1 }
0x10fa   : > { %v3775_v28 = vpop.f32.mrb[17].mxu1  ;;  %v2011_v30 = vsel %vm700_vm6, %v2007_v13, -inf }
0x10fb   : > { %2012 = vmax.xlane.f32.xlu0 %v2011_v30 }
0x116c   : > { %v2173_v31 = vpop.f32.mrb[12].mxu0 }
0x116d   : > { %v3785_v32 = vpop.f32.mrb[13].mxu0  ;;  %v2177_v33 = vsel %vm700_vm6, %v2173_v31, -inf }
0x116e   : > { %2178 = vmax.xlane.f32.xlu1 %v2177_v33 }
0x1170   : > { %v2342_v29 = vpop.f32.mrb[14].mxu0 }
0x1171   : > { %v3795_v34 = vpop.f32.mrb[15].mxu0  ;;  %v2346_v41 = vsel %vm700_vm6, %v2342_v29, -inf }
0x1172   : > { %2347 = vmax.xlane.f32.xlu0 %v2346_v41 }
0x1174   : > { %v2508_v43 = vpop.f32.mrb[16].mxu0 }
0x1175   : > { %v3805_v36 = vpop.f32.mrb[17].mxu0  ;;  %v2512_v40 = vsel %vm700_vm6, %v2508_v43, -inf }
0x1176   : > { %2513 = vmax.xlane.f32.xlu0 %v2512_v40 }
0x117f   : > { %1929 = vrot.lane.b32.xlu1 %v1927_v44, %s4173_s18 }
0x1188   : > { %v2013_v53 = vpop.xlane.xlu0 %2012 }
0x1189   : > { %v2014_v46 = vsub.f32 %v2007_v13, %v2013_v53 }
0x118b   : > { %v2015_v45 = vmul.f32 1.442695, %v2014_v46 }
0x118d   : > { %4115 = vpow2.f32 %v2015_v45 }
0x1197   : > { %v4116_v49 = vpop.eup %4115 }
0x1198   : > { %v2017_v50 = vsel %vm700_vm6, %v4116_v49, 0.0 }
0x1199   : > { %2018 = vadd.xlane.f32.xlu0 %v2017_v50 }
0x11fb   : > { %v2179_v52 = vpop.xlane.xlu1 %2178 }
0x11fc   : > { %v2180_v56 = vsub.f32 %v2173_v31, %v2179_v52 }
0x11fe   : > { %v2181_v57 = vmul.f32 1.442695, %v2180_v56  ;;  %v2607_v56 = vrot.slane %v4455_v39, %v4429_v60 }
0x11ff   : > { %v1930_v59 = vpop.permute.xlu1 %1929  ;;  %v2348_v61 = vpop.xlane.xlu0 %2347 }
0x1200   : > { %4117 = vpow2.f32 %v2181_v57  ;;  %v1932_v47 = vadd.f32 %v1930_v59, %v1909_v16  ;;  %v2349_v62 = vsub.f32 %v2342_v29, %v2348_v61  ;;  %v1933_v0 = vadd.f32 %v4521_v12, %v1930_v59 }
0x1202   : > { %v2350_v48 = vmul.f32 1.442695, %v2349_v62  ;;  %2023 = vrot.lane.b32.xlu1 %v1932_v47, %s4176_s20 }
0x1203   : > { %v2514_v63 = vpop.xlane.xlu0 %2513 }
0x1204   : > { %4119 = vpow2.f32 %v2350_v48  ;;  %v2515_v1 = vsub.f32 %v2508_v43, %v2514_v63 }
0x1206   : > { %v2516_v2 = vmul.f32 1.442695, %v2515_v1  ;;  %2358 = vrot.lane.b32.xlu1 %v1933_v0, %s4176_s20 }
0x1208   : > { %4121 = vpow2.f32 %v2516_v2 }
0x120a   : > { %v4118_v58 = vpop.eup %4117  ;;  %2523 = vrot.lane.b32.xlu1 %v1933_v0, %s4178_s22 }
0x120b   : > { %v2183_v6 = vsel %vm700_vm6, %v4118_v58, 0.0 }
0x120c   : > { %2184 = vadd.xlane.f32.xlu0 %v2183_v6 }
0x120e   : > { %v4120_v7 = vpop.eup %4119  ;;  %4046 = vrot.lane.b32.xlu1 %v4481_v23, %s4173_s18 }
0x120f   : > { %v2352_v8 = vsel %vm700_vm6, %v4120_v7, 0.0 }
0x1210   : > { %2353 = vadd.xlane.f32.xlu0 %v2352_v8 }
0x1212   : > { %v4122_v11 = vpop.eup %4121  ;;  %4051 = vrot.lane.b32.xlu1 %v4489_v35, %s4173_s18 }
0x1213   : > { %v2518_v14 = vsel %vm700_vm6, %v4122_v11, 0.0 }
0x1214   : > { %2519 = vadd.xlane.f32.xlu0 %v2518_v14  ;;  %v483_v14 = vld [vmem:[%s4253_s19 + $0x18] sm:$0xff] }
0x1226   : > { %v2019_v12 = vpop.xlane.xlu0 %2018 }
0x1227   : > { %4123 = vrcp.f32 %v2019_v12  ;;  %v488_v12 = vld [vmem:[%s4253_s19 + $0x40] sm:$0xff] }
0x122a   : > { %2188 = vrot.lane.b32.xlu0 %v1932_v47, %s4178_s22 }
0x1231   : > { %v4124_v16 = vpop.eup %4123 }
0x1232   : > { %v2021_v17 = vmul.f32 %v4124_v16, %v4116_v49  ;;  %v3944_v16 = vpack.c.bf16 %v488_v12, %v483_v14 }
0x1274   : > { %v2024_v18 = vpop.permute.xlu1 %2023 }
0x1275   : > { %3777 = vmatpush3.msra.mxu1 %v2024_v18  ;;  %v498_v18 = vld [vmem:[%s4253_s19 + $0x90] sm:$0xff] }
0x1276   : > { %3779 = vmatmul.mubr.msk.f32.vlgmr.msra.gmra.mrb[18].mxu1 %vm700_vm6, %v2021_v17  ;;  %3786 = vmatprep.subr.mxu1 %v4174_v54  ;;  %v493_v17 = vld [vmem:[%s4253_s19 + $0x68] sm:$0xff] }
0x1277   : > { %3788 = vmatprep.mubr.msk.f32.mxu1 %vm4175_vm4, %v4174_v54 }
0x1278   : > { %v2359_v21 = vpop.permute.xlu1 %2358 }
0x127c   : > { %v2524_v27 = vpop.permute.xlu1 %2523 }
0x1280   : > { %v4047_v30 = vpop.permute.xlu1 %4046 }
0x1281   : > { %v4049_v31 = vunpack.i.h.bf16 %v4047_v30  ;;  %v4048_v32 = vunpack.i.l.bf16 %v4047_v30 }
0x1283   : > { %v3936_v33 = vpack.c.bf16 %v4049_v31, %v4048_v32 }
0x1284   : > { %v4052_v29 = vpop.permute.xlu1 %4051 }
0x1285   : > { %v4054_v34 = vunpack.i.h.bf16 %v4052_v29  ;;  %v4053_v41 = vunpack.i.l.bf16 %v4052_v29  ;;  %3937 = vmatprep.subr.bf16.mxu0 %v3936_v33 }
0x1286   : > { %3939 = vmatpush3.bf16.msra.mxu0 %v3936_v33 }
0x1287   : > { %v3940_v43 = vpack.c.bf16 %v4054_v34, %v4053_v41  ;;  %v4055_v41 = vpack.i.bf16 %v488_v12, %v483_v14 }
0x1289   : > { %3941 = vmatprep.subr.bf16.mxu0 %v3940_v43 }
0x128a   : > { %3943 = vmatpush3.bf16.msra.mxu0 %v3940_v43  ;;  %v4060_v43 = vpack.i.bf16 %v498_v18, %v493_v17 }
0x1299   : > { %v2185_v19 = vpop.xlane.xlu0 %2184 }
0x129a   : > { %4125 = vrcp.f32 %v2185_v19  ;;  %v3948_v19 = vpack.c.bf16 %v498_v18, %v493_v17 }
0x129d   : > { %v2354_v38 = vpop.xlane.xlu0 %2353 }
0x129e   : > { %4127 = vrcp.f32 %v2354_v38  ;;  %v4599_v38 = vld [vmem:[%s4248_s16 + $0x10] sm:$0xff] }
0x12a1   : > { %v2520_v42 = vpop.xlane.xlu0 %2519 }
0x12a2   : > { %4129 = vrcp.f32 %v2520_v42  ;;  %v2831_v42 = vrot.slane %v4599_v38, %v4414_v26  ;;  %v2738_v26 = vrot.slane %v4599_v38, %v4314_v51 }
0x12a4   : > { %v4126_v20 = vpop.eup %4125 }
0x12a5   : > { %v2187_v22 = vmul.f32 %v4126_v20, %v4118_v58  ;;  %v2189_v24 = vpop.permute.xlu0 %2188 }
0x12a6   : > { %3787 = vmatpush3.msra.mxu1 %v2189_v24 }
0x12a7   : > { %3789 = vmatmul.mubr.msk.f32.vlgmr.msra.gmra.mrb[20].mxu1 %vm700_vm6, %v2187_v22  ;;  %3796 = vmatprep.subr.mxu1 %v4174_v54 }
0x12a8   : > { %v4128_v25 = vpop.eup %4127  ;;  %3797 = vmatpush3.msra.mxu1 %v2359_v21  ;;  %3798 = vmatprep.mubr.msk.f32.mxu1 %vm4175_vm4, %v4174_v54 }
0x12a9   : > { %v2356_v15 = vmul.f32 %v4128_v25, %v4120_v7  ;;  %3806 = vmatprep.subr.mxu1 %v4174_v54 }
0x12ab   : > { %3799 = vmatmul.mubr.msk.f32.vlgmr.msra.gmra.mrb[22].mxu1 %vm700_vm6, %v2356_v15 }
0x12ac   : > { %v4130_v13 = vpop.eup %4129  ;;  %3807 = vmatpush3.msra.mxu1 %v2524_v27  ;;  %3808 = vmatprep.mubr.msk.f32.mxu1 %vm4175_vm4, %v4174_v54  ;;  %v2732_v27 = vrot.slane %v4599_v38, %v4330_v55 }
0x12ad   : > { %v2522_v28 = vmul.f32 %v4130_v13, %v4122_v11  ;;  %3945 = vmatprep.subr.bf16.mxu1 %v3944_v16 }
0x12af   : > { %3809 = vmatmul.mubr.msk.f32.vlgmr.msra.gmra.mrb[24].mxu1 %vm700_vm6, %v2522_v28 }
0x12b0   : > { %3947 = vmatpush3.bf16.msra.mxu1 %v3944_v16 }
0x12b1   : > { %3949 = vmatprep.subr.bf16.mxu1 %v3948_v19 }
0x12b4   : > { %3951 = vmatpush3.bf16.msra.mxu1 %v3948_v19 }
0x1349   : > { %v2095_v54 = vpop.f32.mrb[18].mxu1 }
0x134a   : > { %v3780_v36 = vpop.f32.mrb[19].mxu1 }
0x137a   : > { %v2260_v40 = vpop.f32.mrb[20].mxu1 }
0x137b   : > { %2265 = vrot.lane.b32.xlu1 %v2260_v40, %s4181_s25  ;;  %v3790_v23 = vpop.f32.mrb[21].mxu1 }
0x137e   : > { %v2430_v44 = vpop.f32.mrb[22].mxu1 }
0x137f   : > { %v3800_v35 = vpop.f32.mrb[23].mxu1 }
0x1382   : > { %v2595_v53 = vpop.f32.mrb[24].mxu1 }
0x1383   : > { %2600 = vrot.lane.b32.xlu0 %v2595_v53, %s4181_s25  ;;  %v3810_v46 = vpop.f32.mrb[25].mxu1 }
0x13ed   : > { %v2266_v45 = vpop.permute.xlu1 %2265 }
0x13ee   : > { %v2268_v49 = vsel %vm624_vm5, %v2095_v54, %v2266_v45 }
0x13ef   : > { %3819 = vmatprep.mubr.msk.f32.mxu0 %vm512_vm3, %v2268_v49 }
0x13f5   : > { %v2601_v50 = vpop.permute.xlu0 %2600 }
0x13f6   : > { %v2603_v52 = vsel %vm624_vm5, %v2430_v44, %v2601_v50 }
0x13f7   : > { %3820 = vmatmul.mubr.msk.f32.vlgmr.msra.gmra.mrb[18].mxu0 %vm512_vm3, %v2603_v52 }
0x14ca   : > { %v3821_v57 = vpop.f32.mrb[18].mxu0 }
0x14cb   : > { %v2698_v59 = vadd.f32 %v3821_v57, %v2607_v56  ;;  %v2692_v61 = vpop.f32.mrb[19].mxu0 }
0x14cc   : > { %v2693_v47 = vadd.f32 %v2692_v61, %v2607_v56 }
0x14cd   : > { %v2702_v62 = vadd.f32 %v2698_v59, %v4511_v10 }
0x14ce   : > { %v2701_v48 = vadd.f32 %v2693_v47, %v4509_v9 }
0x14cf   : > { %v2706_v63 = vsel %vm512_vm3, %v2702_v62, 0.0 }
0x14d0   : > { %2707 = vadd.xlane.f32.xlu0 %v2706_v63  ;;  %v2703_v0 = vsel %vm512_vm3, %v2701_v48, 0.0 }
0x14d1   : > { %2704 = vadd.xlane.f32.xlu1 %v2703_v0 }
0x155d   : > { %v2708_v1 = vpop.xlane.xlu0 %2707 }
0x155e   : > { %v2710_v39 = vmul.f32 0.03125, %v2708_v1  ;;  %v2705_v2 = vpop.xlane.xlu1 %2704  ;;  %v2966_v1 = vrot.slane %v4599_v38, %v4438_v5 }
0x155f   : > { %v2709_v58 = vmul.f32 0.03125, %v2705_v2 }
0x1560   : > { %v2712_v6 = vsub.f32 %v2702_v62, %v2710_v39  ;;  %v2825_v39 = vrot.slane %v4599_v38, %v4345_v4 }
0x1561   : > { %v2711_v7 = vsub.f32 %v2701_v48, %v2709_v58 }
0x1562   : > { %v2714_v8 = vmul.f32 %v2712_v6, %v2712_v6 }
0x1563   : > { %v2713_v10 = vmul.f32 %v2711_v7, %v2711_v7 }
0x1564   : > { %v2718_v9 = vsel %vm512_vm3, %v2714_v8, 0.0 }
0x1565   : > { %2719 = vadd.xlane.f32.xlu1 %v2718_v9  ;;  %v2715_v11 = vsel %vm512_vm3, %v2713_v10, 0.0 }
0x1566   : > { %2716 = vadd.xlane.f32.xlu0 %v2715_v11 }
0x1576   : > { %4056 = vrot.lane.b32.xlu1 %v4055_v41, %s4177_s21 }
0x157a   : > { %4061 = vrot.lane.b32.xlu1 %v4060_v43, %s4177_s21 }
0x157c   : > { %2833 = vrot.lane.b32.xlu0 %v2831_v42, %s4173_s18 }
0x15f2   : > { %v2720_v20 = vpop.xlane.xlu1 %2719 }
0x15f3   : > { %v2722_v21 = vmul.f32 0.03125, %v2720_v20  ;;  %v2717_v22 = vpop.xlane.xlu0 %2716 }
0x15f4   : > { %v2721_v24 = vmul.f32 0.03125, %v2717_v22  ;;  %v2960_v22 = vrot.slane %v4599_v38, %v4435_v3 }
0x15f5   : > { %v2724_v25 = vadd.f32 1e-05, %v2722_v21 }
0x15f6   : > { %v2723_v15 = vadd.f32 1e-05, %v2721_v24  ;;  %v4057_v46 = vpop.permute.xlu1 %4056 }
0x15f7   : > { %4131 = vrsqrt.f32 %v2724_v25  ;;  %v2834_v54 = vpop.permute.xlu0 %2833  ;;  %v4059_v45 = vunpack.i.h.bf16 %v4057_v46  ;;  %v4058_v49 = vunpack.i.l.bf16 %v4057_v46 }
0x15f8   : > { %4133 = vrsqrt.f32 %v2723_v15 }
0x15f9   : > { %v3952_v50 = vpack.c.bf16 %v4059_v45, %v4058_v49  ;;  %v484_v45 = vld [vmem:[%s4253_s19 + $0x20] sm:$0xff]  ;;  %v489_v49 = vld [vmem:[%s4253_s19 + $0x48] sm:$0xff] }
0x15fa   : > { %v4062_v52 = vpop.permute.xlu1 %4061 }
0x15fb   : > { %v4064_v56 = vunpack.i.h.bf16 %v4062_v52  ;;  %v4063_v57 = vunpack.i.l.bf16 %v4062_v52  ;;  %3953 = vmatprep.subr.bf16.mxu0 %v3952_v50  ;;  %v494_v52 = vld [vmem:[%s4253_s19 + $0x70] sm:$0xff] }
0x15fc   : > { %3955 = vmatpush3.bf16.msra.mxu0 %v3952_v50  ;;  %v3960_v50 = vpack.c.bf16 %v489_v49, %v484_v45 }
0x15fd   : > { %v3956_v59 = vpack.c.bf16 %v4064_v56, %v4063_v57  ;;  %v499_v56 = vld [vmem:[%s4253_s19 + $0x98] sm:$0xff] }
0x15fe   : > { %3961 = vmatprep.subr.bf16.mxu1 %v3960_v50  ;;  %v3964_v57 = vpack.c.bf16 %v499_v56, %v494_v52 }
0x15ff   : > { %3957 = vmatprep.subr.bf16.mxu0 %v3956_v59 }
0x1600   : > { %3959 = vmatpush3.bf16.msra.mxu0 %v3956_v59  ;;  %v4065_v59 = vpack.i.bf16 %v489_v49, %v484_v45 }
0x1601   : > { %v4132_v13 = vpop.eup %4131 }
0x1602   : > { %v4134_v28 = vpop.eup %4133  ;;  %v2728_v30 = vmul.f32 %v4132_v13, %v2712_v6 }
0x1603   : > { %v2727_v31 = vmul.f32 %v4134_v28, %v2711_v7 }
0x1604   : > { %v2734_v32 = vmul.f32 %v2732_v27, %v2728_v30 }
0x1605   : > { %v2733_v33 = vmul.f32 %v2732_v27, %v2727_v31 }
0x1606   : > { %v4610_v34 = vadd.f32 %v2738_v26, %v2734_v32 }
0x1607   : > { %v4608_v29 = vadd.f32 %v2738_v26, %v2733_v33 }
0x1609   : > { %3830 = vmatprep.mubr.msk.f32.mxu1 %vm512_vm3, %v4608_v29 }
0x160a   : > { %3831 = vmatmul.mubr.msk.f32.vlgmr.msra.gmra.mrb[26].mxu1 %vm512_vm3, %v4610_v34 }
0x160b   : > { %3963 = vmatpush3.bf16.msra.mxu1 %v3960_v50 }
0x160c   : > { %3965 = vmatprep.subr.bf16.mxu1 %v3964_v57 }
0x160f   : > { %3967 = vmatpush3.bf16.msra.mxu1 %v3964_v57 }
0x16dd   : > { %v3832_v36 = vpop.f32.mrb[26].mxu1 }
0x16de   : > { %v2837_v40 = vadd.f32 %v3832_v36, %v2834_v54  ;;  %v2813_v23 = vpop.f32.mrb[27].mxu1  ;;  %v2827_v6 = vadd.f32 %v3832_v36, %v2825_v39 }
0x16df   : > { %v2836_v44 = vadd.f32 %v2834_v54, %v2813_v23  ;;  %v2826_v2 = vadd.f32 %v2825_v39, %v2813_v23 }
0x16e0   : > { %v3528_v35 = vmul.f32 -1.442695, %v2837_v40 }
0x16e1   : > { %v3527_v53 = vmul.f32 -1.442695, %v2836_v44 }
0x16e2   : > { %4135 = vpow2.f32 %v3528_v35 }
0x16e3   : > { %4137 = vpow2.f32 %v3527_v53 }
0x16ec   : > { %v4136_v61 = vpop.eup %4135 }
0x16ed   : > { %v4138_v47 = vpop.eup %4137  ;;  %v2845_v62 = vadd.f32 1.0, %v4136_v61  ;;  %v4070_v61 = vpack.i.bf16 %v499_v56, %v494_v52  ;;  %v3541_v56 = vld [vmem:[%s4700_s8 + $0x1] ss:$0 sm:$0xff] (!%p3537_p5) }
0x16ee   : > { %v2844_v48 = vadd.f32 1.0, %v4138_v47 }
0x16ef   : > { %4139 = vrcp.f32 %v2845_v62 }
0x16f0   : > { %4141 = vrcp.f32 %v2844_v48 }
0x16f9   : > { %v4140_v63 = vpop.eup %4139 }
0x16fa   : > { %v4142_v0 = vpop.eup %4141  ;;  %2854 = vrot.lane.b32.xlu1 %v4140_v63, %s4176_s20 }
0x16fb   : > { %2852 = vrot.lane.b32.xlu0 %v4142_v0, %s4176_s20 }
0x16ff   : > { %2968 = vrot.lane.b32.xlu0 %v2966_v1, %s4173_s18 }
0x176c   : > { %v2855_v58 = vpop.permute.xlu1 %2854 }
0x176d   : > { %v2853_v7 = vpop.permute.xlu0 %2852  ;;  %v2859_v10 = vmul.f32 %v2855_v58, %v2827_v6 }
0x176e   : > { %v2858_v8 = vmul.f32 %v2853_v7, %v2826_v2 }
0x1770   : > { %3841 = vmatprep.mubr.msk.f32.mxu0 %vm512_vm3, %v2858_v8 }
0x1771   : > { %3842 = vmatmul.mubr.msk.f32.vlgmr.msra.gmra.mrb[20].mxu0 %vm512_vm3, %v2859_v10  ;;  %v2969_v9 = vpop.permute.xlu0 %2968  ;;  %v3030_v10 = vrot.slane %v4599_v38, %v4463_v37  ;;  %v503_v37 = vld [vmem:[%s4248_s16 + $0x18] sm:$0x3] }
0x1844   : > { %v3843_v11 = vpop.f32.mrb[20].mxu0 }
0x1845   : > { %v2972_v14 = vadd.f32 %v3843_v11, %v2969_v9  ;;  %v2948_v12 = vpop.f32.mrb[21].mxu0  ;;  %v2962_v24 = vadd.f32 %v3843_v11, %v2960_v22 }
0x1846   : > { %v2971_v5 = vadd.f32 %v2969_v9, %v2948_v12  ;;  %v2961_v25 = vadd.f32 %v2960_v22, %v2948_v12 }
0x1847   : > { %v3532_v16 = vmul.f32 -1.442695, %v2972_v14 }
0x1848   : > { %v3531_v17 = vmul.f32 -1.442695, %v2971_v5 }
0x1849   : > { %4143 = vpow2.f32 %v3532_v16 }
0x184a   : > { %4145 = vpow2.f32 %v3531_v17  ;;  %v3036_v17 = vrot.slane %v4599_v38, %v4429_v60 }
0x1853   : > { %v4144_v4 = vpop.eup %4143 }
0x1854   : > { %v4146_v18 = vpop.eup %4145  ;;  %v2980_v19 = vadd.f32 1.0, %v4144_v4 }
0x1855   : > { %v2979_v42 = vadd.f32 1.0, %v4146_v18 }
0x1856   : > { %4147 = vrcp.f32 %v2980_v19 }
0x1857   : > { %4149 = vrcp.f32 %v2979_v42 }
0x1860   : > { %v4148_v20 = vpop.eup %4147 }
0x1861   : > { %v4150_v21 = vpop.eup %4149  ;;  %2989 = vrot.lane.b32.xlu0 %v4148_v20, %s4176_s20  ;;  %v3042_v20 = vrot.slane %v503_v37, %v4330_v55  ;;  %v3233_v55 = vld [vmem:[%s4699_s7] sm:$0xff] (!%p3537_p5) }
0x1862   : > { %2987 = vrot.lane.b32.xlu1 %v4150_v21, %s4176_s20 }
0x18d3   : > { %v2990_v15 = vpop.permute.xlu0 %2989 }
0x18d4   : > { %v2994_v27 = vmul.f32 %v2990_v15, %v2962_v24  ;;  %v2988_v13 = vpop.permute.xlu1 %2987  ;;  %v3129_v15 = vrot.slane %v503_v37, %v4314_v51  ;;  %v3235_v51 = vld [vmem:[%s4699_s7 + $0x10] sm:$0xff] (!%p3537_p5) }
0x18d5   : > { %v2993_v28 = vmul.f32 %v2988_v13, %v2961_v25 }
0x18d6   : > { %v2996_v30 = vadd.f32 %v2994_v27, %v4610_v34 }
0x18d7   : > { %v2995_v31 = vadd.f32 %v2993_v28, %v4608_v29 }
0x18d8   : > { %v2998_v26 = vmax.f32 %v2996_v30, 0.0 }
0x18d9   : > { %v2997_v32 = vmax.f32 %v2995_v31, 0.0  ;;  %v3234_v31 = vld [vmem:[%s4699_s7 + $0x8] sm:$0xff] (!%p3537_p5) }
0x18da   : > { %v3000_v33 = vadd.f32 %v2998_v26, %v4610_v34  ;;  %v3976_v26 = vpack.c.bf16 (!%p3537_p5), %v3234_v31, %v3233_v55 }
0x18db   : > { %v2999_v41 = vadd.f32 %v2997_v32, %v4608_v29  ;;  %v3236_v32 = vld [vmem:[%s4699_s7 + $0x18] sm:$0xff] (!%p3537_p5) }
0x18dc   : > { %v3004_v43 = vsel %vm512_vm3, %v3000_v33, 0.0 }
0x18dd   : > { %3005 = vadd.xlane.f32.xlu0 %v3004_v43  ;;  %v3001_v3 = vsel %vm512_vm3, %v2999_v41, 0.0  ;;  %v4160_v43 = vpack.i.bf16 (!%p3537_p5), %v3236_v32, %v3235_v51 }
0x18de   : > { %3002 = vadd.xlane.f32.xlu1 %v3001_v3 }
0x196a   : > { %v3006_v54 = vpop.xlane.xlu0 %3005 }
0x196b   : > { %v3008_v36 = vmul.f32 0.03125, %v3006_v54  ;;  %v3003_v40 = vpop.xlane.xlu1 %3002 }
0x196c   : > { %v3007_v23 = vmul.f32 0.03125, %v3003_v40 }
0x196d   : > { %v3010_v44 = vsub.f32 %v3000_v33, %v3008_v36  ;;  %v4155_v33 = vpack.i.bf16 (!%p3537_p5), %v3234_v31, %v3233_v55 }
0x196e   : > { %v3009_v35 = vsub.f32 %v2999_v41, %v3007_v23  ;;  %v3980_v41 = vpack.c.bf16 (!%p3537_p5), %v3236_v32, %v3235_v51 }
0x196f   : > { %v3012_v53 = vmul.f32 %v3010_v44, %v3010_v44 }
0x1970   : > { %v3011_v34 = vmul.f32 %v3009_v35, %v3009_v35 }
0x1971   : > { %v3016_v29 = vsel %vm512_vm3, %v3012_v53, 0.0 }
0x1972   : > { %3017 = vadd.xlane.f32.xlu1 %v3016_v29  ;;  %v3013_v46 = vsel %vm512_vm3, %v3011_v34, 0.0  ;;  %v3538_v34 = vld [vmem:[%s4700_s8] ss:$0 sm:$0xff] (!%p3537_p5) }
0x1973   : > { %3014 = vadd.xlane.f32.xlu0 %v3013_v46 }
0x1983   : > { %4071 = vrot.lane.b32.xlu1 %v4070_v61, %s4176_s20 }
0x1989   : > { %4066 = vrot.lane.b32.xlu0 %v4065_v59, %s4176_s20 }
0x198d   : > { %4156 = vrot.lane.b32.xlu0 (!%p3537_p5), %v4155_v33, %s4182_s10 }
0x1991   : > { %4161 = vrot.lane.b32.xlu0 (!%p3537_p5), %v4160_v43, %s4182_s10 }
0x19ff   : > { %v3018_v47 = vpop.xlane.xlu1 %3017 }
0x1a00   : > { %v3020_v62 = vmul.f32 0.03125, %v3018_v47  ;;  %v3015_v48 = vpop.xlane.xlu0 %3014 }
0x1a01   : > { %v3019_v63 = vmul.f32 0.03125, %v3015_v48 }
0x1a02   : > { %v3022_v0 = vadd.f32 1e-05, %v3020_v62 }
0x1a03   : > { %v3021_v1 = vadd.f32 1e-05, %v3019_v63  ;;  %v4072_v2 = vpop.permute.xlu1 %4071 }
0x1a04   : > { %4151 = vrsqrt.f32 %v3022_v0  ;;  %v4067_v39 = vpop.permute.xlu0 %4066  ;;  %v4074_v7 = vunpack.i.h.bf16 %v4072_v2  ;;  %v4073_v8 = vunpack.i.l.bf16 %v4072_v2 }
0x1a05   : > { %4153 = vrsqrt.f32 %v3021_v1  ;;  %v4069_v58 = vunpack.i.h.bf16 %v4067_v39  ;;  %v4068_v6 = vunpack.i.l.bf16 %v4067_v39 }
0x1a06   : > { %v3972_v14 = vpack.c.bf16 %v4074_v7, %v4073_v8 }
0x1a07   : > { %v3968_v11 = vpack.c.bf16 %v4069_v58, %v4068_v6 }
0x1a08   : > { %v4157_v3 = vpop.permute.xlu0 (!%p3537_p5), %4156 }
0x1a09   : > { %3969 = vmatprep.subr.bf16.mxu0 %v3968_v11  ;;  %v4159_v54 = vunpack.i.h.bf16 (!%p3537_p5), %v4157_v3  ;;  %v4158_v36 = vunpack.i.l.bf16 (!%p3537_p5), %v4157_v3 }
0x1a0a   : > { %3971 = vmatpush3.bf16.msra.mxu0 %v3968_v11 }
0x1a0b   : > { %3973 = vmatprep.subr.bf16.mxu0 %v3972_v14  ;;  %v3984_v40 = vpack.c.bf16 (!%p3537_p5), %v4159_v54, %v4158_v36 }
0x1a0c   : > { %v4162_v23 = vpop.permute.xlu0 (!%p3537_p5), %4161 }
0x1a0d   : > { %3985 = vmatprep.subr.bf16.mxu1 (!%p3537_p5), %v3984_v40 }
0x1a0e   : > { %v4152_v9 = vpop.eup %4151  ;;  %3975 = vmatpush3.bf16.msra.mxu0 %v3972_v14 }
0x1a0f   : > { %v4154_v12 = vpop.eup %4153  ;;  %v3026_v5 = vmul.f32 %v4152_v9, %v3010_v44  ;;  %3977 = vmatprep.subr.bf16.mxu0 (!%p3537_p5), %v3976_v26  ;;  %v4164_v44 = vunpack.i.h.bf16 (!%p3537_p5), %v4162_v23 }
0x1a10   : > { %v3025_v16 = vmul.f32 %v4154_v12, %v3009_v35  ;;  %v4163_v35 = vunpack.i.l.bf16 (!%p3537_p5), %v4162_v23 }
0x1a11   : > { %v3032_v4 = vmul.f32 %v3030_v10, %v3026_v5 }
0x1a12   : > { %v3031_v18 = vmul.f32 %v3030_v10, %v3025_v16  ;;  %v3988_v53 = vpack.c.bf16 (!%p3537_p5), %v4164_v44, %v4163_v35 }
0x1a13   : > { %v3038_v42 = vadd.f32 %v3036_v17, %v3032_v4 }
0x1a14   : > { %v3037_v19 = vadd.f32 %v3036_v17, %v3031_v18 }
0x1a16   : > { %3852 = vmatprep.mubr.msk.f32.mxu1 %vm512_vm3, %v3037_v19 }
0x1a17   : > { %3853 = vmatmul.mubr.msk.f32.vlgmr.msra.gmra.mrb[28].mxu1 %vm512_vm3, %v3038_v42 }
0x1a18   : > { %3987 = vmatpush3.bf16.msra.mxu1 (!%p3537_p5), %v3984_v40 }
0x1a19   : > { %3989 = vmatprep.subr.bf16.mxu1 (!%p3537_p5), %v3988_v53 }
0x1a1c   : > { %3991 = vmatpush3.bf16.msra.mxu1 (!%p3537_p5), %v3988_v53 }
0x1aea   : > { %v3854_v21 = vpop.f32.mrb[28].mxu1 }
0x1aeb   : > { %v3121_v22 = vadd.f32 %v3854_v21, %v3042_v20  ;;  %v3115_v24 = vpop.f32.mrb[29].mxu1 }
0x1aec   : > { %v3116_v25 = vadd.f32 %v3115_v24, %v3042_v20 }
0x1aed   : > { %v3125_v38 = vmax.f32 %v3121_v22, 0.0 }
0x1aee   : > { %v3124_v60 = vmax.f32 %v3116_v25, 0.0 }
0x1af0   : > { %3863 = vmatprep.mubr.msk.f32.mxu0 %vm512_vm3, %v3124_v60 }
0x1af1   : > { %3864 = vmatmul.mubr.msk.f32.vlgmr.msra.gmra.mrb[22].mxu0 %vm512_vm3, %v3125_v38 }
0x1af2   : > { %3979 = vmatpush3.bf16.msra.mxu0 (!%p3537_p5), %v3976_v26 }
0x1af3   : > { %3981 = vmatprep.subr.bf16.mxu0 (!%p3537_p5), %v3980_v41 }
0x1af6   : > { %3983 = vmatpush3.bf16.msra.mxu0 (!%p3537_p5), %v3980_v41 }
0x1bc2   : > { %3232 = sbr.rel (%p3537_p5) target bundleno = 7547 (0x1d7b), region = 64 }
0x1bc4   : > { %v3865_v27 = vpop.f32.mrb[22].mxu0 }
0x1bc5   : > { %v3224_v13 = vadd.f32 %v3865_v27, %v3129_v15  ;;  %v3218_v28 = vpop.f32.mrb[23].mxu0 }
0x1bc6   : > { %v3219_v30 = vadd.f32 %v3218_v28, %v3129_v15 }
0x1bc7   : > { %3228 = vst.msk [vmem:[#allocation2 + $0x8] sm:$0xff] %vm512_vm3, %v3224_v13 }
0x1bc8   : > { %3227 = vst.msk [vmem:[#allocation2] sm:$0xff] %vm512_vm3, %v3219_v30  ;;  %3874 = vmatprep.mubr.msk.f32.mxu0 (!%p3537_p5), %vm512_vm3, %v3219_v30 }
0x1bc9   : > { %3875 = vmatmul.mubr.msk.f32.vlgmr.msra.gmra.mrb[0].mxu0 %vm512_vm3, %v3224_v13 }
0x1c9c   : > { %v3876_v29 = vpop.f32.mrb[0].mxu0 }
0x1c9d   : > { %v3320_v46 = vadd.f32 %v3876_v29, %v3538_v34  ;;  %v3314_v45 = vpop.f32.mrb[1].mxu0 }
0x1c9e   : > { %v3315_v49 = vadd.f32 %v3538_v34, %v3314_v45 }
0x1c9f   : > { %v3324_v52 = vmax.f32 %v3320_v46, 0.0 }
0x1ca0   : > { %v3323_v50 = vmax.f32 %v3315_v49, 0.0 }
0x1ca2   : > { %3885 = vmatprep.mubr.msk.f32.mxu1 %vm512_vm3, %v3323_v50 }
0x1ca3   : > { %3886 = vmatmul.mubr.msk.f32.vlgmr.msra.gmra.mrb[0].mxu1 %vm512_vm3, %v3324_v52 }
0x1d76   : > { %v3887_v57 = vpop.f32.mrb[0].mxu1 }
0x1d77   : > { %v3424_v59 = vadd.f32 %v3887_v57, %v3541_v56  ;;  %v3418_v61 = vpop.f32.mrb[1].mxu1 }
0x1d78   : > { %v3419_v47 = vadd.f32 %v3541_v56, %v3418_v61 }
0x1d79   : > { %3428 = vst.msk [vmem:[%s4701_s9 + $0x8] sm:$0xff] %vm512_vm3, %v3424_v59 }
0x1d7a   : > { %3427 = vst.msk [vmem:[%s4701_s9] sm:$0xff] %vm512_vm3, %v3419_v47 }
0x1d7b PF: > { %s19_s30 = sadd.s32 1, %s4171_s30  }
0x1d7c   : > { %p16_p6 = scmp.ge.s32.totalorder %s19_s30, 4  }
0x1d7e   :  { %18 = sbr.rel (!%p16_p6) target bundleno = 1 (0x1), region = 93 }

</bundles_post_ra>
